<compile_context>
chip_gen: v6e
topology: v6e:2x2x1
jax: 0.10.0
libtpu: 0.0.40
codegen_flags: <defaults>
</compile_context>

<pallas_src>
import functools

import numpy as np
import jax
import jax.numpy as jnp
from jax import lax
from jax.experimental import pallas as pl
from jax.experimental.pallas import tpu as pltpu

EPS = 1e-5
_NT = (((1,), (1,)), ((), ()))     # dot_general: contract the minor dim of both


def bn_fold(gamma, beta, mean=0.0, var=1.0, eps=EPS):
    s = gamma / jnp.sqrt(var + eps)
    return s, beta - mean * s


def _pick_batch(n):
    # Amortize per-grid-step overhead for large N while keeping >= 2 grid steps
    # so the "parallel" axis still splits across v7x's two TensorCores.
    for b in (8, 4, 2):
        if n % b == 0 and (n // b) >= 2:
            return b
    return 1


# ---------------------------------------------------------------------------
# Fused per-step kernel (B images per grid step):
#   h0 = relu(bn1(x)); shortcut^T = wsc^T . h0^T; a = relu(h0 @ (w1*s2) + b2)
#   conv3x3: one im2col dot against w2 (reshaped to (9P, P), BN3 scale folded)
#   c^T = w3^T . bact^T; SPA pool/transform/upsample/gate; out^T = c^T*g + sc^T
# Everything between the input image and the gated residual stays in VMEM.
# ---------------------------------------------------------------------------
def _block_kernel(x_ref, mask_ref, s1_ref, b1_ref, wsc_t_ref, w1s_ref, b2_ref,
                  w2col_ref, b3_ref, w3t_ref, mpool_ref, wa_t_ref, bt_ref,
                  wb_t_ref, up_ref, o_ref, stage_ref, slab_ref,
                  *, batch, mo, wp, lead, planes):
    f32 = jnp.float32

    x2 = x_ref[...].reshape(batch * mo, -1)                       # (B*Mo, Cin)
    h0 = jnp.maximum(x2 * s1_ref[...] + b1_ref[...], 0.0)

    # Channels-major (lane-dense) shortcut: (C, B*Mo).
    shortcut_t = lax.dot_general(wsc_t_ref[...], h0, _NT,
                                 preferred_element_type=f32)
    # conv1 (+ BN2 scale folded into w1s) + ReLU; spatial-major for the conv.
    a = jnp.maximum(jnp.dot(h0, w1s_ref[...], preferred_element_type=f32)
                    + b2_ref[...], 0.0)                           # (B*Mo, P)
    mask = mask_ref[...]                                          # (Mo, 1)

    for b in range(batch):
        am = a[b * mo:(b + 1) * mo, :] * mask                     # (Mo, P)

        # ------- 3x3 conv as ONE (Mo, 9P) x (9P, P) matmul -------------------
        # dx = +-1 shifted copies of the masked activation.  The stage scratch
        # has one zeroed row above/below the image; the +-1-row reads are the
        # only sublane-misaligned accesses left in the kernel.
        stage_ref[lead - 8:lead, :] = jnp.zeros((8, planes), f32)
        stage_ref[lead + mo:lead + mo + 8, :] = jnp.zeros((8, planes), f32)
        stage_ref[lead:lead + mo, :] = am
        am_e = stage_ref[lead + 1:lead + 1 + mo, :]               # a[m+1], dx=+1
        am_w = stage_ref[lead - 1:lead - 1 + mo, :]               # a[m-1], dx=-1
        v24 = jnp.concatenate([am_e, am, am_w], axis=1)           # (Mo, 3P)

        # dy = +-1 shifts are whole padded rows (Wp is a multiple of 8), so the
        # shifted slabs come from 8-aligned, full-width reads of the slab
        # scratch (zeroed Wp-row margins supply the vertical zero padding).
        slab_ref[lead - wp:lead, :] = jnp.zeros((wp, 3 * planes), f32)
        slab_ref[lead + mo:lead + mo + wp, :] = jnp.zeros((wp, 3 * planes), f32)
        slab_ref[lead:lead + mo, :] = v24
        im2col = jnp.concatenate(
            [slab_ref[lead - wp:lead - wp + mo, :],               # dy = -1
             v24,                                                 # dy =  0
             slab_ref[lead + wp:lead + wp + mo, :]],              # dy = +1
            axis=1)                                               # (Mo, 9P)
        acc = jnp.dot(im2col, w2col_ref[...], preferred_element_type=f32)

        bact = jnp.maximum(acc + b3_ref[...], 0.0)                # (Mo, P)
        # conv3; channels-major (Mo lanes -> lane dense) from here on.
        c_t = lax.dot_general(w3t_ref[...], bact, _NT,
                              preferred_element_type=f32)         # (C, Mo)

        # SPA: weighted multi-scale avg-pool (folded into mpool) -> 1x1 ->
        # BN(+folded scale) -> ReLU -> 1x1 -> sigmoid -> nearest upsample.
        y_t = lax.dot_general(c_t, mpool_ref[...], _NT,
                              preferred_element_type=f32)         # (C, 16)
        t_t = jnp.maximum(jnp.dot(wa_t_ref[...], y_t,
                                  preferred_element_type=f32) + bt_ref[...],
                          0.0)                                    # (crp, 16)
        g_t = jax.nn.sigmoid(jnp.dot(wb_t_ref[...], t_t,
                                     preferred_element_type=f32))  # (C, 16)
        gate_t = lax.dot_general(g_t, up_ref[...], _NT,
                                 preferred_element_type=f32)      # (C, Mo)

        # Gated residual, stored lane-dense (C sublanes x Mo lanes, unmasked).
        o_ref[b] = (c_t * gate_t
                    + shortcut_t[:, b * mo:(b + 1) * mo]).astype(o_ref.dtype)


# ---------------------------------------------------------------------------
# SPA pooling / upsampling matrices + pad-column mask ("wide" flat layout,
# row pitch Wp is a multiple of 8).  Deterministic constants, layout glue only.
# ---------------------------------------------------------------------------
def build_spa_matrices_wide(H, W, Wp):
    Mo = H * Wp

    def pool_mat(n):
        bh, bw = H // n, W // n
        P = np.zeros((n * n, Mo), np.float32)
        for i in range(H):
            for j in range(W):
                P[(i // bh) * n + (j // bw), i * Wp + (j + 1)] = 1.0 / (bh * bw)
        return P

    def up_to4(n):
        U = np.zeros((16, n * n), np.float32)
        for i in range(4):
            for j in range(4):
                U[i * 4 + j, (i * n // 4) * n + (j * n // 4)] = 1.0
        return U

    P4 = pool_mat(4)
    P2u = up_to4(2) @ pool_mat(2)
    P1u = up_to4(1) @ pool_mat(1)

    Ufull = np.zeros((Mo, 16), np.float32)
    for i in range(H):
        for c in range(Wp):
            j = min(max(c - 1, 0), W - 1)      # pad columns: value is discarded
            Ufull[i * Wp + c, (i * 4 // H) * 4 + (j * 4 // W)] = 1.0

    mask = np.zeros((Mo, 1), np.float32)
    for i in range(H):
        for j in range(W):
            mask[i * Wp + j + 1, 0] = 1.0

    return P4, P2u, P1u, Ufull, mask


# ---------------------------------------------------------------------------
# Full module forward (Pallas path).  Accepts / returns NCHW like PyTorch.
# NOTE: correctness relies on the pad columns being masked before the conv and
# zero-weighted in m_pool; do not drop the mask or read those columns.
# ---------------------------------------------------------------------------
def preact_bottleneck_forward(x_nchw, p, *, stride=1):
    # TODO(synk): stride > 1 (strided conv2 / strided shortcut) not implemented;
    #             the module default (stride=1) is exercised here.
    assert stride == 1
    N, cin, H, W = x_nchw.shape
    assert H % 4 == 0 and W % 4 == 0
    planes = p["w1"].shape[1]
    out_c = p["w3"].shape[1]
    cr = p["wa"].shape[1]
    crp = max(8, -(-cr // 8) * 8)          # pad 1x1-transform width to >= 8

    wp = -(-(W + 2) // 8) * 8              # padded row pitch, multiple of 8
    mo = H * wp                            # flat padded image length
    lead = wp + 8                          # 8-aligned interior start in scratch
    lx = lead + mo + wp                    # scratch rows (covers all margins)

    B = _pick_batch(N)
    G = N // B

    s1, b1 = bn_fold(p["bn1_g"], p["bn1_b"])
    s2, b2 = bn_fold(p["bn2_g"], p["bn2_b"])
    s3, b3 = bn_fold(p["bn3_g"], p["bn3_b"])
    st, bt = bn_fold(p["bnt_g"], p["bnt_b"])

    # Fold BN scales into the adjacent weights; only bias+ReLU stays in-kernel.
    wsc_t = jnp.transpose(p["wsc"])                              # (C, Cin)
    w1s = p["w1"] * s2                                           # (Cin, P)
    # im2col weight: rows = (dy, dx=+1/0/-1, cin)  <->  slab lane layout.
    w2col = p["w2"][:, ::-1].reshape(9 * planes, planes) * s3    # (9P, P)
    w3_t = jnp.transpose(p["w3"])                                # (C, P)
    wa_t = jnp.zeros((crp, out_c), jnp.float32).at[:cr].set((p["wa"] * st).T)
    bt_c = jnp.zeros((crp, 1), jnp.float32).at[:cr, 0].set(bt)
    wb_t = jnp.zeros((out_c, crp), jnp.float32).at[:, :cr].set(p["wb"].T)

    P4, P2u, P1u, ufull, mask = build_spa_matrices_wide(H, W, wp)
    wsp = p["spa_w"]
    m_pool = wsp[0] * P4 + wsp[1] * P2u + wsp[2] * P1u           # (16, Mo)
    ufull = jnp.asarray(ufull)
    mask = jnp.asarray(mask)

    # Layout glue: NCHW -> NHWC -> zero pad columns to pitch Wp -> flat rows.
    x = jnp.transpose(x_nchw, (0, 2, 3, 1)).astype(jnp.float32)
    x_wide = jnp.pad(x, ((0, 0), (0, 0), (1, wp - 1 - W), (0, 0))
                     ).reshape(N, mo, cin)

    kern = functools.partial(_block_kernel, batch=B, mo=mo, wp=wp, lead=lead,
                             planes=planes)
    rep2 = lambda g: (0, 0)

    flops_img = (2 * mo * (cin * (out_c + planes) + 9 * planes * planes
                           + planes * out_c + 2 * 16 * out_c)
                 + 2 * 2 * 16 * out_c * crp)
    weight_bytes = 4 * (out_c * cin + cin * planes + 9 * planes * planes
                        + out_c * planes + 2 * 16 * mo + mo
                        + 2 * crp * out_c + crp + 2 * (cin + planes))
    cost = pl.CostEstimate(flops=int(N * flops_img),
                           transcendentals=int(N * 16 * out_c),
                           bytes_accessed=int(4 * N * mo * (cin + out_c)
                                              + weight_bytes))

    out_wide = pl.pallas_call(
        kern,
        out_shape=jax.ShapeDtypeStruct((N, out_c, mo), jnp.float32),
        grid=(G,),
        in_specs=[
            pl.BlockSpec((B, mo, cin), lambda g: (g, 0, 0)),     # x (B images)
            pl.BlockSpec((mo, 1), rep2),                         # pad-col mask
            pl.BlockSpec((1, cin), rep2),                        # bn1 scale
            pl.BlockSpec((1, cin), rep2),                        # bn1 shift
            pl.BlockSpec((out_c, cin), rep2),                    # wsc^T
            pl.BlockSpec((cin, planes), rep2),                   # w1 * s2
            pl.BlockSpec((1, planes), rep2),                     # b2
            pl.BlockSpec((9 * planes, planes), rep2),            # w2 im2col*s3
            pl.BlockSpec((1, planes), rep2),                     # b3
            pl.BlockSpec((out_c, planes), rep2),                 # w3^T
            pl.BlockSpec((16, mo), rep2),                        # SPA pool mat
            pl.BlockSpec((crp, out_c), rep2),                    # (wa*st)^T
            pl.BlockSpec((crp, 1), rep2),                        # bt
            pl.BlockSpec((out_c, crp), rep2),                    # wb^T
            pl.BlockSpec((mo, 16), rep2),                        # upsample mat
        ],
        out_specs=pl.BlockSpec((B, out_c, mo), lambda g: (g, 0, 0)),
        scratch_shapes=[pltpu.VMEM((lx, planes), jnp.float32),      # stage
                        pltpu.VMEM((lx, 3 * planes), jnp.float32)],  # conv slab
        compiler_params=pltpu.CompilerParams(
            dimension_semantics=("parallel",),
            # Plenty at these sizes; re-derive (<= ~48 MiB) if H/W/planes scale
            # up, since v7x has 64 MiB VMEM per TC vs 128 MiB on v5e/v6e.
            vmem_limit_bytes=32 * 1024 * 1024),
        cost_estimate=cost,
    )(x_wide, mask, s1.reshape(1, -1), b1.reshape(1, -1), wsc_t, w1s,
      b2.reshape(1, -1), w2col, b3.reshape(1, -1), w3_t,
      m_pool, wa_t, bt_c, wb_t, ufull)

    # Channels-major output: drop the pad columns and we are already NCHW.
    return out_wide.reshape(N, out_c, H, wp)[:, :, :, 1:W + 1]


# ---------------------------------------------------------------------------
# Deterministic parameter init (shapes follow the PyTorch module __init__)
# ---------------------------------------------------------------------------
def init_params(key, in_planes, planes, reduction=16):
    expansion = 4
    out_c = expansion * planes
    cr = out_c // reduction
    keys = jax.random.split(key, 14)

    def conv_w(k, ci, co):
        return 0.1 * jax.random.normal(k, (ci, co), jnp.float32)

    p = {}
    p["bn1_g"] = 1.0 + 0.1 * jax.random.normal(keys[0], (in_planes,), jnp.float32)
    p["bn1_b"] = 0.1 * jax.random.normal(keys[1], (in_planes,), jnp.float32)
    p["w1"] = conv_w(keys[2], in_planes, planes)
    p["bn2_g"] = 1.0 + 0.1 * jax.random.normal(keys[3], (planes,), jnp.float32)
    p["bn2_b"] = 0.1 * jax.random.normal(keys[4], (planes,), jnp.float32)
    p["w2"] = 0.1 * jax.random.normal(keys[5], (3, 3, planes, planes), jnp.float32)
    p["bn3_g"] = 1.0 + 0.1 * jax.random.normal(keys[6], (planes,), jnp.float32)
    p["bn3_b"] = 0.1 * jax.random.normal(keys[7], (planes,), jnp.float32)
    p["w3"] = conv_w(keys[8], planes, out_c)
    p["wsc"] = conv_w(keys[9], in_planes, out_c)
    # SPA layer
    p["spa_w"] = jnp.ones((3,), jnp.float32)   # Parameter(torch.ones(1,3,1,1,1))
    p["wa"] = conv_w(keys[10], out_c, cr)
    p["bnt_g"] = 1.0 + 0.1 * jax.random.normal(keys[11], (cr,), jnp.float32)
    p["bnt_b"] = 0.1 * jax.random.normal(keys[12], (cr,), jnp.float32)
    p["wb"] = conv_w(keys[13], cr, out_c)
    return p


# ---------------------------------------------------------------------------
# Pure-JAX reference (for correctness check)
# ---------------------------------------------------------------------------
def ref_forward(x_nchw, p):
    x = jnp.transpose(x_nchw, (0, 2, 3, 1)).astype(jnp.float32)
    N, H, W, _ = x.shape
    s1, b1 = bn_fold(p["bn1_g"], p["bn1_b"])
    s2, b2 = bn_fold(p["bn2_g"], p["bn2_b"])
    s3, b3 = bn_fold(p["bn3_g"], p["bn3_b"])
    st, bt = bn_fold(p["bnt_g"], p["bnt_b"])

    h0 = jnp.maximum(x * s1 + b1, 0.0)
    shortcut = jnp.einsum("nhwc,cd->nhwd", h0, p["wsc"])
    a = jnp.maximum(jnp.einsum("nhwc,cd->nhwd", h0, p["w1"]) * s2 + b2, 0.0)
    b = lax.conv_general_dilated(a, p["w2"], window_strides=(1, 1),
                                 padding="SAME",
                                 dimension_numbers=("NHWC", "HWIO", "NHWC"))
    b = jnp.maximum(b * s3 + b3, 0.0)
    c = jnp.einsum("nhwc,cd->nhwd", b, p["w3"])
    C = c.shape[-1]
    y4 = c.reshape(N, 4, H // 4, 4, W // 4, C).mean(axis=(2, 4))
    y2 = c.reshape(N, 2, H // 2, 2, W // 2, C).mean(axis=(2, 4))
    y1 = c.mean(axis=(1, 2), keepdims=True)
    w3 = p["spa_w"]
    y = (w3[0] * y4
         + w3[1] * jnp.repeat(jnp.repeat(y2, 2, axis=1), 2, axis=2)
         + w3[2] * y1)
    t = jnp.maximum(jnp.einsum("nhwc,cd->nhwd", y, p["wa"]) * st + bt, 0.0)
    g = jax.nn.sigmoid(jnp.einsum("nhwc,cd->nhwd", t, p["wb"]))
    gate = jnp.repeat(jnp.repeat(g, H // 4, axis=1), W // 4, axis=2)
    out = c * gate + shortcut
    return jnp.transpose(out, (0, 3, 1, 2))


if __name__ == "__main__":
    key = jax.random.PRNGKey(0)
    k_x, k_p = jax.random.split(key)
    N, in_planes, planes, H, W = 2, 16, 8, 16, 16     # expansion*planes = 32
    x = jax.random.normal(k_x, (N, in_planes, H, W), jnp.float32)   # NCHW input
    params = init_params(k_p, in_planes, planes, reduction=16)

    out = preact_bottleneck_forward(x, params)
    out = jax.block_until_ready(out)
    assert out.shape == (N, 4 * planes, H, W)

    ref = ref_forward(x, params)
    max_err = float(jnp.max(jnp.abs(out - ref)))
    if not bool(jnp.allclose(out, ref, rtol=3e-2, atol=3e-2)):
        raise SystemExit(f"mismatch vs reference, max abs err = {max_err}")
    print("KERNEL_OK")
</pallas_src>

<mosaic_0001>
module attributes {stable_mosaic.version = 11 : i64} {
  func.func @_block_kernel(%arg0: i32, %arg1: memref<1x384x16xf32, #tpu.memory_space<vmem>>, %arg2: memref<384x1xf32, #tpu.memory_space<vmem>>, %arg3: memref<1x16xf32, #tpu.memory_space<vmem>>, %arg4: memref<1x16xf32, #tpu.memory_space<vmem>>, %arg5: memref<32x16xf32, #tpu.memory_space<vmem>>, %arg6: memref<16x8xf32, #tpu.memory_space<vmem>>, %arg7: memref<1x8xf32, #tpu.memory_space<vmem>>, %arg8: memref<72x8xf32, #tpu.memory_space<vmem>>, %arg9: memref<1x8xf32, #tpu.memory_space<vmem>>, %arg10: memref<32x8xf32, #tpu.memory_space<vmem>>, %arg11: memref<16x384xf32, #tpu.memory_space<vmem>>, %arg12: memref<8x32xf32, #tpu.memory_space<vmem>>, %arg13: memref<8x1xf32, #tpu.memory_space<vmem>>, %arg14: memref<32x8xf32, #tpu.memory_space<vmem>>, %arg15: memref<384x16xf32, #tpu.memory_space<vmem>>, %arg16: memref<1x32x384xf32, #tpu.memory_space<vmem>>, %arg17: memref<440x8xf32, #tpu.memory_space<vmem>>, %arg18: memref<440x24xf32, #tpu.memory_space<vmem>>) attributes {dimension_semantics = [#tpu.dimension_semantics<parallel>], iteration_bounds = array<i64: 2>, scalar_prefetch = 0 : i64, scratch_operands = 2 : i64, tpu.core_type = #tpu.core_type<tc>, window_params = [{transform_indices = @transform_0, window_bounds = array<i64: 1, 384, 16>}, {pipeline_mode = #tpu.pipeline_mode<synchronous>, transform_indices = @transform_1, window_bounds = array<i64: 384, 1>}, {pipeline_mode = #tpu.pipeline_mode<synchronous>, transform_indices = @transform_2, window_bounds = array<i64: 1, 16>}, {pipeline_mode = #tpu.pipeline_mode<synchronous>, transform_indices = @transform_3, window_bounds = array<i64: 1, 16>}, {pipeline_mode = #tpu.pipeline_mode<synchronous>, transform_indices = @transform_4, window_bounds = array<i64: 32, 16>}, {pipeline_mode = #tpu.pipeline_mode<synchronous>, transform_indices = @transform_5, window_bounds = array<i64: 16, 8>}, {pipeline_mode = #tpu.pipeline_mode<synchronous>, transform_indices = @transform_6, window_bounds = array<i64: 1, 8>}, {pipeline_mode = #tpu.pipeline_mode<synchronous>, transform_indices = @transform_7, window_bounds = array<i64: 72, 8>}, {pipeline_mode = #tpu.pipeline_mode<synchronous>, transform_indices = @transform_8, window_bounds = array<i64: 1, 8>}, {pipeline_mode = #tpu.pipeline_mode<synchronous>, transform_indices = @transform_9, window_bounds = array<i64: 32, 8>}, {pipeline_mode = #tpu.pipeline_mode<synchronous>, transform_indices = @transform_10, window_bounds = array<i64: 16, 384>}, {pipeline_mode = #tpu.pipeline_mode<synchronous>, transform_indices = @transform_11, window_bounds = array<i64: 8, 32>}, {pipeline_mode = #tpu.pipeline_mode<synchronous>, transform_indices = @transform_12, window_bounds = array<i64: 8, 1>}, {pipeline_mode = #tpu.pipeline_mode<synchronous>, transform_indices = @transform_13, window_bounds = array<i64: 32, 8>}, {pipeline_mode = #tpu.pipeline_mode<synchronous>, transform_indices = @transform_14, window_bounds = array<i64: 384, 16>}, {transform_indices = @transform_15, window_bounds = array<i64: 1, 32, 384>}]} {
    %c0 = arith.constant 0 : index
    %c0_0 = arith.constant 0 : index
    %c0_1 = arith.constant 0 : index
    %0 = vector.load %arg1[%c0, %c0_0, %c0_1] : memref<1x384x16xf32, #tpu.memory_space<vmem>>, vector<1x384x16xf32>
    %1 = vector.shape_cast %0 : vector<1x384x16xf32> to vector<384x16xf32>
    %c0_2 = arith.constant 0 : index
    %c0_3 = arith.constant 0 : index
    %2 = vector.load %arg3[%c0_2, %c0_3] : memref<1x16xf32, #tpu.memory_space<vmem>>, vector<1x16xf32>
    %3 = vector.broadcast %2 : vector<1x16xf32> to vector<384x16xf32>
    %4 = arith.mulf %1, %3 : vector<384x16xf32>
    %c0_4 = arith.constant 0 : index
    %c0_5 = arith.constant 0 : index
    %5 = vector.load %arg4[%c0_4, %c0_5] : memref<1x16xf32, #tpu.memory_space<vmem>>, vector<1x16xf32>
    %6 = vector.broadcast %5 : vector<1x16xf32> to vector<384x16xf32>
    %7 = arith.addf %4, %6 : vector<384x16xf32>
    %cst = arith.constant 0.000000e+00 : f32
    %8 = vector.broadcast %cst : f32 to vector<384x16xf32>
    %9 = arith.maximumf %7, %8 : vector<384x16xf32>
    %c0_6 = arith.constant 0 : index
    %c0_7 = arith.constant 0 : index
    %10 = vector.load %arg5[%c0_6, %c0_7] : memref<32x16xf32, #tpu.memory_space<vmem>>, vector<32x16xf32>
    %cst_8 = arith.constant dense<0.000000e+00> : vector<32x384xf32>
    %11 = tpu.matmul %10, %9, %cst_8 {dimension_numbers = #tpu.dot_dimension_numbers<[1], [1], [0], [0], [0, 0, 1, 0], [], []>} : vector<32x16xf32>, vector<384x16xf32>, vector<32x384xf32> -> vector<32x384xf32>
    %c0_9 = arith.constant 0 : index
    %c0_10 = arith.constant 0 : index
    %12 = vector.load %arg6[%c0_9, %c0_10] : memref<16x8xf32, #tpu.memory_space<vmem>>, vector<16x8xf32>
    %cst_11 = arith.constant dense<0.000000e+00> : vector<384x8xf32>
    %13 = tpu.matmul %9, %12, %cst_11 {dimension_numbers = #tpu.dot_dimension_numbers<[1], [0], [0], [1], [0, 0, 1, 1], [], []>} : vector<384x16xf32>, vector<16x8xf32>, vector<384x8xf32> -> vector<384x8xf32>
    %c0_12 = arith.constant 0 : index
    %c0_13 = arith.constant 0 : index
    %14 = vector.load %arg7[%c0_12, %c0_13] : memref<1x8xf32, #tpu.memory_space<vmem>>, vector<1x8xf32>
    %15 = vector.broadcast %14 : vector<1x8xf32> to vector<384x8xf32>
    %16 = arith.addf %13, %15 : vector<384x8xf32>
    %cst_14 = arith.constant 0.000000e+00 : f32
    %17 = vector.broadcast %cst_14 : f32 to vector<384x8xf32>
    %18 = arith.maximumf %16, %17 : vector<384x8xf32>
    %c0_15 = arith.constant 0 : index
    %c0_16 = arith.constant 0 : index
    %19 = vector.load %arg2[%c0_15, %c0_16] : memref<384x1xf32, #tpu.memory_space<vmem>>, vector<384x1xf32>
    %20 = vector.broadcast %19 : vector<384x1xf32> to vector<384x8xf32>
    %21 = arith.mulf %18, %20 : vector<384x8xf32>
    %cst_17 = arith.constant 0.000000e+00 : f32
    %22 = vector.broadcast %cst_17 : f32 to vector<8x8xf32>
    %c24 = arith.constant 24 : index
    %c0_18 = arith.constant 0 : index
    %23 = vector.load %arg17[%c24, %c0_18] : memref<440x8xf32, #tpu.memory_space<vmem>>, vector<8x8xf32>
    tpu.vector_store %arg17[%c24, %c0_18], %22 {strides = array<i32>} : memref<440x8xf32, #tpu.memory_space<vmem>>, vector<8x8xf32>,
    %cst_19 = arith.constant 0.000000e+00 : f32
    %24 = vector.broadcast %cst_19 : f32 to vector<8x8xf32>
    %c416 = arith.constant 416 : index
    %c0_20 = arith.constant 0 : index
    %25 = vector.load %arg17[%c416, %c0_20] : memref<440x8xf32, #tpu.memory_space<vmem>>, vector<8x8xf32>
    tpu.vector_store %arg17[%c416, %c0_20], %24 {strides = array<i32>} : memref<440x8xf32, #tpu.memory_space<vmem>>, vector<8x8xf32>,
    %c32 = arith.constant 32 : index
    %c0_21 = arith.constant 0 : index
    %26 = vector.load %arg17[%c32, %c0_21] : memref<440x8xf32, #tpu.memory_space<vmem>>, vector<384x8xf32>
    tpu.vector_store %arg17[%c32, %c0_21], %21 {strides = array<i32>} : memref<440x8xf32, #tpu.memory_space<vmem>>, vector<384x8xf32>,
    %c33 = arith.constant 33 : index
    %c0_22 = arith.constant 0 : index
    %27 = vector.load %arg17[%c33, %c0_22] : memref<440x8xf32, #tpu.memory_space<vmem>>, vector<384x8xf32>
    %c31 = arith.constant 31 : index
    %c0_23 = arith.constant 0 : index
    %28 = vector.load %arg17[%c31, %c0_23] : memref<440x8xf32, #tpu.memory_space<vmem>>, vector<384x8xf32>
    %29 = tpu.concatenate %27, %21, %28 in 1 : vector<384x8xf32>, vector<384x8xf32>, vector<384x8xf32> -> vector<384x24xf32>
    %cst_24 = arith.constant 0.000000e+00 : f32
    %30 = vector.broadcast %cst_24 : f32 to vector<24x24xf32>
    %c8 = arith.constant 8 : index
    %c0_25 = arith.constant 0 : index
    %31 = vector.load %arg18[%c8, %c0_25] : memref<440x24xf32, #tpu.memory_space<vmem>>, vector<24x24xf32>
    tpu.vector_store %arg18[%c8, %c0_25], %30 {strides = array<i32>} : memref<440x24xf32, #tpu.memory_space<vmem>>, vector<24x24xf32>,
    %cst_26 = arith.constant 0.000000e+00 : f32
    %32 = vector.broadcast %cst_26 : f32 to vector<24x24xf32>
    %c416_27 = arith.constant 416 : index
    %c0_28 = arith.constant 0 : index
    %33 = vector.load %arg18[%c416_27, %c0_28] : memref<440x24xf32, #tpu.memory_space<vmem>>, vector<24x24xf32>
    tpu.vector_store %arg18[%c416_27, %c0_28], %32 {strides = array<i32>} : memref<440x24xf32, #tpu.memory_space<vmem>>, vector<24x24xf32>,
    %c32_29 = arith.constant 32 : index
    %c0_30 = arith.constant 0 : index
    %34 = vector.load %arg18[%c32_29, %c0_30] : memref<440x24xf32, #tpu.memory_space<vmem>>, vector<384x24xf32>
    tpu.vector_store %arg18[%c32_29, %c0_30], %29 {strides = array<i32>} : memref<440x24xf32, #tpu.memory_space<vmem>>, vector<384x24xf32>,
    %c8_31 = arith.constant 8 : index
    %c0_32 = arith.constant 0 : index
    %35 = vector.load %arg18[%c8_31, %c0_32] : memref<440x24xf32, #tpu.memory_space<vmem>>, vector<384x24xf32>
    %c56 = arith.constant 56 : index
    %c0_33 = arith.constant 0 : index
    %36 = vector.load %arg18[%c56, %c0_33] : memref<440x24xf32, #tpu.memory_space<vmem>>, vector<384x24xf32>
    %37 = tpu.concatenate %35, %29, %36 in 1 : vector<384x24xf32>, vector<384x24xf32>, vector<384x24xf32> -> vector<384x72xf32>
    %c0_34 = arith.constant 0 : index
    %c0_35 = arith.constant 0 : index
    %38 = vector.load %arg8[%c0_34, %c0_35] : memref<72x8xf32, #tpu.memory_space<vmem>>, vector<72x8xf32>
    %cst_36 = arith.constant dense<0.000000e+00> : vector<384x8xf32>
    %39 = tpu.matmul %37, %38, %cst_36 {dimension_numbers = #tpu.dot_dimension_numbers<[1], [0], [0], [1], [0, 0, 1, 1], [], []>} : vector<384x72xf32>, vector<72x8xf32>, vector<384x8xf32> -> vector<384x8xf32>
    %c0_37 = arith.constant 0 : index
    %c0_38 = arith.constant 0 : index
    %40 = vector.load %arg9[%c0_37, %c0_38] : memref<1x8xf32, #tpu.memory_space<vmem>>, vector<1x8xf32>
    %41 = vector.broadcast %40 : vector<1x8xf32> to vector<384x8xf32>
    %42 = arith.addf %39, %41 : vector<384x8xf32>
    %cst_39 = arith.constant 0.000000e+00 : f32
    %43 = vector.broadcast %cst_39 : f32 to vector<384x8xf32>
    %44 = arith.maximumf %42, %43 : vector<384x8xf32>
    %c0_40 = arith.constant 0 : index
    %c0_41 = arith.constant 0 : index
    %45 = vector.load %arg10[%c0_40, %c0_41] : memref<32x8xf32, #tpu.memory_space<vmem>>, vector<32x8xf32>
    %cst_42 = arith.constant dense<0.000000e+00> : vector<32x384xf32>
    %46 = tpu.matmul %45, %44, %cst_42 {dimension_numbers = #tpu.dot_dimension_numbers<[1], [1], [0], [0], [0, 0, 1, 0], [], []>} : vector<32x8xf32>, vector<384x8xf32>, vector<32x384xf32> -> vector<32x384xf32>
    %c0_43 = arith.constant 0 : index
    %c0_44 = arith.constant 0 : index
    %47 = vector.load %arg11[%c0_43, %c0_44] : memref<16x384xf32, #tpu.memory_space<vmem>>, vector<16x384xf32>
    %cst_45 = arith.constant dense<0.000000e+00> : vector<32x16xf32>
    %48 = tpu.matmul %46, %47, %cst_45 {dimension_numbers = #tpu.dot_dimension_numbers<[1], [1], [0], [0], [0, 0, 1, 0], [], []>} : vector<32x384xf32>, vector<16x384xf32>, vector<32x16xf32> -> vector<32x16xf32>
    %c0_46 = arith.constant 0 : index
    %c0_47 = arith.constant 0 : index
    %49 = vector.load %arg12[%c0_46, %c0_47] : memref<8x32xf32, #tpu.memory_space<vmem>>, vector<8x32xf32>
    %cst_48 = arith.constant dense<0.000000e+00> : vector<8x16xf32>
    %50 = tpu.matmul %49, %48, %cst_48 {dimension_numbers = #tpu.dot_dimension_numbers<[1], [0], [0], [1], [0, 0, 1, 1], [], []>} : vector<8x32xf32>, vector<32x16xf32>, vector<8x16xf32> -> vector<8x16xf32>
    %c0_49 = arith.constant 0 : index
    %c0_50 = arith.constant 0 : index
    %51 = vector.load %arg13[%c0_49, %c0_50] : memref<8x1xf32, #tpu.memory_space<vmem>>, vector<8x1xf32>
    %52 = vector.broadcast %51 : vector<8x1xf32> to vector<8x16xf32>
    %53 = arith.addf %50, %52 : vector<8x16xf32>
    %cst_51 = arith.constant 0.000000e+00 : f32
    %54 = vector.broadcast %cst_51 : f32 to vector<8x16xf32>
    %55 = arith.maximumf %53, %54 : vector<8x16xf32>
    %c0_52 = arith.constant 0 : index
    %c0_53 = arith.constant 0 : index
    %56 = vector.load %arg14[%c0_52, %c0_53] : memref<32x8xf32, #tpu.memory_space<vmem>>, vector<32x8xf32>
    %cst_54 = arith.constant dense<0.000000e+00> : vector<32x16xf32>
    %57 = tpu.matmul %56, %55, %cst_54 {dimension_numbers = #tpu.dot_dimension_numbers<[1], [0], [0], [1], [0, 0, 1, 1], [], []>} : vector<32x8xf32>, vector<8x16xf32>, vector<32x16xf32> -> vector<32x16xf32>
    %58 = arith.negf %57 : vector<32x16xf32>
    %59 = math.exp %58 : vector<32x16xf32>
    %cst_55 = arith.constant 1.000000e+00 : f32
    %60 = vector.broadcast %cst_55 : f32 to vector<32x16xf32>
    %61 = arith.addf %60, %59 : vector<32x16xf32>
    %62 = arith.divf %60, %61 : vector<32x16xf32>
    %c0_56 = arith.constant 0 : index
    %c0_57 = arith.constant 0 : index
    %63 = vector.load %arg15[%c0_56, %c0_57] : memref<384x16xf32, #tpu.memory_space<vmem>>, vector<384x16xf32>
    %cst_58 = arith.constant dense<0.000000e+00> : vector<32x384xf32>
    %64 = tpu.matmul %62, %63, %cst_58 {dimension_numbers = #tpu.dot_dimension_numbers<[1], [1], [0], [0], [0, 0, 1, 0], [], []>} : vector<32x16xf32>, vector<384x16xf32>, vector<32x384xf32> -> vector<32x384xf32>
    %65 = arith.mulf %46, %64 : vector<32x384xf32>
    %66 = arith.addf %65, %11 : vector<32x384xf32>
    %c0_59 = arith.constant 0 : index
    %c0_60 = arith.constant 0 : index
    %c0_61 = arith.constant 0 : index
    %67 = vector.load %arg16[%c0_59, %c0_60, %c0_61] : memref<1x32x384xf32, #tpu.memory_space<vmem>>, vector<1x32x384xf32>
    %68 = vector.shape_cast %67 : vector<1x32x384xf32> to vector<32x384xf32>
    %69 = vector.shape_cast %66 : vector<32x384xf32> to vector<1x32x384xf32>
    tpu.vector_store %arg16[%c0_59, %c0_60, %c0_61], %69 {strides = array<i32>} : memref<1x32x384xf32, #tpu.memory_space<vmem>>, vector<1x32x384xf32>,
    return
  }
  func.func @transform_0(%arg0: i32) -> (i32, i32, i32) {
    %c0_i32 = arith.constant 0 : i32
    %c0_i32_0 = arith.constant 0 : i32
    %c0_i32_1 = arith.constant 0 : i32
    return %arg0, %c0_i32, %c0_i32_0 : i32, i32, i32
  }
  func.func @transform_1(%arg0: i32) -> (i32, i32) {
    %c0_i32 = arith.constant 0 : i32
    %c0_i32_0 = arith.constant 0 : i32
    %c0_i32_1 = arith.constant 0 : i32
    return %c0_i32, %c0_i32_0 : i32, i32
  }
  func.func @transform_2(%arg0: i32) -> (i32, i32) {
    %c0_i32 = arith.constant 0 : i32
    %c0_i32_0 = arith.constant 0 : i32
    %c0_i32_1 = arith.constant 0 : i32
    return %c0_i32, %c0_i32_0 : i32, i32
  }
  func.func @transform_3(%arg0: i32) -> (i32, i32) {
    %c0_i32 = arith.constant 0 : i32
    %c0_i32_0 = arith.constant 0 : i32
    %c0_i32_1 = arith.constant 0 : i32
    return %c0_i32, %c0_i32_0 : i32, i32
  }
  func.func @transform_4(%arg0: i32) -> (i32, i32) {
    %c0_i32 = arith.constant 0 : i32
    %c0_i32_0 = arith.constant 0 : i32
    %c0_i32_1 = arith.constant 0 : i32
    return %c0_i32, %c0_i32_0 : i32, i32
  }
  func.func @transform_5(%arg0: i32) -> (i32, i32) {
    %c0_i32 = arith.constant 0 : i32
    %c0_i32_0 = arith.constant 0 : i32
    %c0_i32_1 = arith.constant 0 : i32
    return %c0_i32, %c0_i32_0 : i32, i32
  }
  func.func @transform_6(%arg0: i32) -> (i32, i32) {
    %c0_i32 = arith.constant 0 : i32
    %c0_i32_0 = arith.constant 0 : i32
    %c0_i32_1 = arith.constant 0 : i32
    return %c0_i32, %c0_i32_0 : i32, i32
  }
  func.func @transform_7(%arg0: i32) -> (i32, i32) {
    %c0_i32 = arith.constant 0 : i32
    %c0_i32_0 = arith.constant 0 : i32
    %c0_i32_1 = arith.constant 0 : i32
    return %c0_i32, %c0_i32_0 : i32, i32
  }
  func.func @transform_8(%arg0: i32) -> (i32, i32) {
    %c0_i32 = arith.constant 0 : i32
    %c0_i32_0 = arith.constant 0 : i32
    %c0_i32_1 = arith.constant 0 : i32
    return %c0_i32, %c0_i32_0 : i32, i32
  }
  func.func @transform_9(%arg0: i32) -> (i32, i32) {
    %c0_i32 = arith.constant 0 : i32
    %c0_i32_0 = arith.constant 0 : i32
    %c0_i32_1 = arith.constant 0 : i32
    return %c0_i32, %c0_i32_0 : i32, i32
  }
  func.func @transform_10(%arg0: i32) -> (i32, i32) {
    %c0_i32 = arith.constant 0 : i32
    %c0_i32_0 = arith.constant 0 : i32
    %c0_i32_1 = arith.constant 0 : i32
    return %c0_i32, %c0_i32_0 : i32, i32
  }
  func.func @transform_11(%arg0: i32) -> (i32, i32) {
    %c0_i32 = arith.constant 0 : i32
    %c0_i32_0 = arith.constant 0 : i32
    %c0_i32_1 = arith.constant 0 : i32
    return %c0_i32, %c0_i32_0 : i32, i32
  }
  func.func @transform_12(%arg0: i32) -> (i32, i32) {
    %c0_i32 = arith.constant 0 : i32
    %c0_i32_0 = arith.constant 0 : i32
    %c0_i32_1 = arith.constant 0 : i32
    return %c0_i32, %c0_i32_0 : i32, i32
  }
  func.func @transform_13(%arg0: i32) -> (i32, i32) {
    %c0_i32 = arith.constant 0 : i32
    %c0_i32_0 = arith.constant 0 : i32
    %c0_i32_1 = arith.constant 0 : i32
    return %c0_i32, %c0_i32_0 : i32, i32
  }
  func.func @transform_14(%arg0: i32) -> (i32, i32) {
    %c0_i32 = arith.constant 0 : i32
    %c0_i32_0 = arith.constant 0 : i32
    %c0_i32_1 = arith.constant 0 : i32
    return %c0_i32, %c0_i32_0 : i32, i32
  }
  func.func @transform_15(%arg0: i32) -> (i32, i32, i32) {
    %c0_i32 = arith.constant 0 : i32
    %c0_i32_0 = arith.constant 0 : i32
    %c0_i32_1 = arith.constant 0 : i32
    return %arg0, %c0_i32, %c0_i32_0 : i32, i32, i32
  }
}

</mosaic_0001>

<bundles_post_ra>
// kernel: tpu_custom_call.1
= control target key start
LH: loop header
LB: loop body
LE: loop exit
PB: predicated region body
PF: predicated region fallthrough
CT: control target
= control target key end

     0   :  { %s8462_s0 = inlined_call_operand.vmem [shape: f32[2,384,16], index: 0, kind: input, shape index: {}]   ;;  %s8463_s1 = inlined_call_operand.vmem [shape: f32[384,1], index: 1, kind: input, shape index: {}]   ;;  %s8464_s2 = inlined_call_operand.vmem [shape: f32[1,16], index: 2, kind: input, shape index: {}]   ;;  %s8465_s3 = inlined_call_operand.vmem [shape: f32[1,16], index: 3, kind: input, shape index: {}]   ;;  %s8466_s4 = inlined_call_operand.vmem [shape: f32[32,16], index: 4, kind: input, shape index: {}]   ;;  %s8467_s5 = inlined_call_operand.vmem [shape: f32[16,8], index: 5, kind: input, shape index: {}]   ;;  %s8468_s6 = inlined_call_operand.vmem [shape: f32[1,8], index: 6, kind: input, shape index: {}]   ;;  %s8469_s7 = inlined_call_operand.vmem [shape: f32[72,8], index: 7, kind: input, shape index: {}]   ;;  %s8470_s8 = inlined_call_operand.vmem [shape: f32[1,8], index: 8, kind: input, shape index: {}]   ;;  %s8471_s9 = inlined_call_operand.vmem [shape: f32[32,8], index: 9, kind: input, shape index: {}]   ;;  %s8472_s10 = inlined_call_operand.vmem [shape: f32[16,384], index: 10, kind: input, shape index: {}]   ;;  %s8473_s11 = inlined_call_operand.vmem [shape: f32[8,32], index: 11, kind: input, shape index: {}]   ;;  %s8474_s12 = inlined_call_operand.vmem [shape: f32[8,1], index: 12, kind: input, shape index: {}]   ;;  %s8475_s13 = inlined_call_operand.vmem [shape: f32[32,8], index: 13, kind: input, shape index: {}]   ;;  %s8476_s14 = inlined_call_operand.vmem [shape: f32[384,16], index: 14, kind: input, shape index: {}]   ;;  %s8477_s15 = inlined_call_operand.hbm [shape: f32[2,32,384], index: 15, kind: output, shape index: {}]  }
   0x1   :  { %8498 = sst [smem:[#allocation13_spill]] %s8462_s0 }
   0x2   :  { %20 = vsyncpa [#allocation5], 0 }
   0x3   :  { %22 = vsyncpa [#allocation5 + $0x1], 0  ;;  %s5786_s18 = smov 0   ;;  %s5788_s19 = smov 0  }
   0x4   :  { %s5790_s20 = smov 0   ;;  %s5792_s21 = smov 0  }
   0x5 LB: > { %8499 = sst [smem:[#allocation7_spill]] %s5691_s20  ;;  %s5807_s22 = sadd.s32 4294967295, %s5695_s21   ;;  %s5695_s21 = sphi %s5792_s21, %s8526_s21   ;;  %s5691_s20 = sphi %s5790_s20, %s8528_s20   ;;  %s5687_s19 = sphi %s5788_s19, %s8530_s19   ;;  %s5683_s18 = sphi %s5786_s18, %s8529_s18  }
   0x6   : > { %s4670_s23 = sadd.s32 4294967294, %s5695_s21   ;;  %s5811_s24 = sadd.s32 1, %s5695_s21  }
   0x7   : > { %8500 = sst [smem:[#allocation8_spill]] %s5811_s24  ;;  %s355_s25 = sadd.s32 1, %s5691_s20 }
   0x8   : > { %s352_s26 = ssub.s32 %s5695_s21, %s5811_s24  ;;  %p365_p0 = scmp.ne.s32.totalorder %s5691_s20, %s5687_s19 }
   0x9   : > { %p353_p1 = scmp.eq.s32.totalorder %s352_s26, 0  ;;  %p366_p2 = scmp.eq.s32.totalorder %s5807_s22, 1 }
   0xa   : > { %p371_p3 = scmp.ne.s32.totalorder %s5687_s19, %s5683_s18  ;;  %p372_p4 = scmp.eq.s32.totalorder %s4670_s23, 1 }
   0xb   : > { %s5822_s27 = scalar_select %p353_p1, %s5691_s20, %s355_s25  }
   0xc   : > { %p5824_p5 = por %p366_p2, %p365_p0  ;;  %p5828_p6 = por %p372_p4, %p371_p3 }
   0xd   : > { %8501 = sst [smem:[#allocation9_spill]] %s5822_s27  ;;  %p4673_p7 = scmp.ge.s32.totalorder %s5695_s21, 1 }
   0xe   : > { %s8503_s29 = scalar_select %p5828_p6, 1, 0 }
   0xf   : > { %p440_p8 = scmp.lt.s32.totalorder %s5695_s21, 3 }
  0x10   : > { %8504 = sst [smem:[#allocation10_spill]] %s8503_s29 }
  0x11   : > { %p441_p9 = pnand %p4673_p7, %p440_p8 }
  0x13   : > { %444 = sbr.rel (%p441_p9) target bundleno = 2130 (0x852), region = 80 }
  0x18   : > { %p488_p10 = scmp.lt.s32.totalorder %s5807_s22, 1  ;;  %v1400_v0 = vld [vmem:[%s8463_s1 + $0x20] sm:$0xff]  ;;  %v1398_v1 = vld [vmem:[%s8463_s1 + $0x10] sm:$0xff]  ;;  %v5697_v2 = vmov 0   ;;  %vm703_vm0 = vcmask 130048   ;;  %v1401_v4 = vld [vmem:[%s8463_s1 + $0x28] sm:$0xff] }
  0x19   : > { %5618 = vset.pattern.permute.xlu1 %v5697_v2  ;;  %5617 = vset.pattern.permute.xlu0 %v5697_v2  ;;  %v5845_v3 = vld [vmem:[%s8466_s4] sm:$0xff]  ;;  %v1399_v5 = vld [vmem:[%s8463_s1 + $0x18] sm:$0xff]  ;;  %s8505_s0 = sld [smem:[#allocation13_spill]]  ;;  %v1402_v16 = vld [vmem:[%s8463_s1 + $0x30] sm:$0xff]  ;;  %vm2359_vm1 = vcmask 195584   ;;  %vm1732_vm2 = vcmask 64512  }
  0x1a   : > { %s489_s25 = scalar_select %p488_p10, %s5807_s22, 1  ;;  %1466 = vperm.xlu1 %5618, %v1400_v0   ;;  %1456 = vperm.xlu0 %5617, %v1398_v1   ;;  %v5860_v6 = vld [vmem:[%s8464_s2] ss:$0 sm:$0xff]  ;;  %v1403_v24 = vld [vmem:[%s8463_s1 + $0x38] sm:$0xff]  ;;  %v1397_v25 = vld [vmem:[%s8463_s1 + $0x8] sm:$0xff]  ;;  %vm2900_vm3 = vcmask 392192  }
  0x1b   : > { %5290 = vmatprep.mubr.msk.f32.mxu1 %vm703_vm0, %v5845_v3  ;;  %4987 = vmatprep.mubr.msk.f32.mxu0 %vm703_vm0, %v5845_v3  ;;  %v5870_v7 = vld [vmem:[%s8465_s3] ss:$0 sm:$0xff]  ;;  %v1405_v27 = vld [vmem:[%s8463_s1 + $0x48] sm:$0xff]  ;;  %v1407_v43 = vld [vmem:[%s8463_s1 + $0x58] sm:$0xff]  ;;  %s5701_s26 = smov 16   ;;  %s8497_s30 = smov 24  }
  0x1c   : > { %s5568_s20 = smul.u32 384, %s489_s25  ;;  %v1396_v14 = vld [vmem:[%s8463_s1] sm:$0xff]  ;;  %v1406_v53 = vld [vmem:[%s8463_s1 + $0x50] sm:$0xff]  ;;  %v1409_v0 = vld [vmem:[%s8463_s1 + $0x68] sm:$0xff]  ;;  %s5700_s25 = smov 8   ;;  %vm2965_vm4 = vcmask 588800  }
  0x1d   : > { %v1404_v32 = vld [vmem:[%s8463_s1 + $0x40] sm:$0xff]  ;;  %vm5703_vm5 = vmmov 0   ;;  %vm3980_vm6 = vcmask 261120   ;;  %s5704_s23 = smov [#allocation4]  }
  0x1e   : > { %1471 = vperm.xlu1 %5618, %v1401_v4   ;;  %1461 = vperm.xlu0 %5617, %v1399_v5   ;;  %v1408_v4 = vld [vmem:[%s8463_s1 + $0x60] sm:$0xff] }
  0x1f   : > { %s5865_s24 = scalar_lea.vmem %s8505_s0, %s5568_s20  ;;  %s5569_s20 = smul.u32 1536, %s5807_s22 }
  0x20   : > { %v540_v8 = vld [vmem:[%s5865_s24 + $0x178] sm:$0xff]  ;;  %v539_v9 = vld [vmem:[%s5865_s24 + $0x170] sm:$0xff]  ;;  %v538_v10 = vld [vmem:[%s5865_s24 + $0x168] sm:$0xff] }
  0x21   : > { %v595_v11 = vmul.f32 %v5860_v6, %v540_v8  ;;  %v594_v12 = vmul.f32 %v5860_v6, %v539_v9  ;;  %v593_v13 = vmul.f32 %v5860_v6, %v538_v10  ;;  %v537_v15 = vld [vmem:[%s5865_s24 + $0x160] sm:$0xff]  ;;  %v536_v23 = vld [vmem:[%s5865_s24 + $0x158] sm:$0xff]  ;;  %v535_v30 = vld [vmem:[%s5865_s24 + $0x150] sm:$0xff] }
  0x22   : > { %1446 = vperm.xlu1 %5618, %v1396_v14   ;;  %v592_v22 = vmul.f32 %v5860_v6, %v537_v15  ;;  %1476 = vperm.xlu0 %5617, %v1402_v16   ;;  %v591_v26 = vmul.f32 %v5860_v6, %v536_v23  ;;  %v534_v31 = vld [vmem:[%s5865_s24 + $0x148] sm:$0xff]  ;;  %v493_v33 = vld [vmem:[%s5865_s24] sm:$0xff]  ;;  %v495_v35 = vld [vmem:[%s5865_s24 + $0x10] sm:$0xff]  ;;  %v590_v40 = vmul.f32 %v5860_v6, %v535_v30 }
  0x23   : > { %v650_v17 = vadd.f32 %v5870_v7, %v595_v11  ;;  %v649_v18 = vadd.f32 %v5870_v7, %v594_v12  ;;  %v648_v21 = vadd.f32 %v5870_v7, %v593_v13  ;;  %v494_v34 = vld [vmem:[%s5865_s24 + $0x8] sm:$0xff]  ;;  %v496_v36 = vld [vmem:[%s5865_s24 + $0x18] sm:$0xff]  ;;  %v497_v37 = vld [vmem:[%s5865_s24 + $0x20] sm:$0xff]  ;;  %v548_v44 = vmul.f32 %v5860_v6, %v493_v33 }
  0x24   : > { %v647_v29 = vadd.f32 %v5870_v7, %v592_v22  ;;  %v498_v38 = vld [vmem:[%s5865_s24 + $0x28] sm:$0xff]  ;;  %v646_v39 = vadd.f32 %v5870_v7, %v591_v26  ;;  %v499_v41 = vld [vmem:[%s5865_s24 + $0x30] sm:$0xff]  ;;  %v549_v45 = vmul.f32 %v5860_v6, %v494_v34  ;;  %v550_v46 = vmul.f32 %v5860_v6, %v495_v35  ;;  %v500_v56 = vld [vmem:[%s5865_s24 + $0x38] sm:$0xff] }
  0x25   : > { %v5887_v19 = vmax.f32 %v650_v17, 0.0  ;;  %v5889_v20 = vmax.f32 %v649_v18, 0.0  ;;  %v5910_v28 = vmax.f32 %v648_v21, 0.0  ;;  %v589_v47 = vmul.f32 %v5860_v6, %v534_v31  ;;  %v501_v60 = vld [vmem:[%s5865_s24 + $0x40] sm:$0xff]  ;;  %v532_v12 = vld [vmem:[%s5865_s24 + $0x138] sm:$0xff]  ;;  %v510_v16 = vld [vmem:[%s5865_s24 + $0x88] sm:$0xff] }
  0x26   : > { %1481 = vperm.xlu1 %5618, %v1403_v24   ;;  %1451 = vperm.xlu0 %5617, %v1397_v25   ;;  %v5931_v42 = vmax.f32 %v647_v29, 0.0  ;;  %v551_v48 = vmul.f32 %v5860_v6, %v496_v36  ;;  %v552_v49 = vmul.f32 %v5860_v6, %v497_v37  ;;  %v553_v50 = vmul.f32 %v5860_v6, %v498_v38  ;;  %v533_v63 = vld [vmem:[%s5865_s24 + $0x140] sm:$0xff]  ;;  %v1411_v13 = vld [vmem:[%s8463_s1 + $0x78] sm:$0xff]  ;;  %v511_v17 = vld [vmem:[%s5865_s24 + $0x90] sm:$0xff] }
  0x27   : > { %5258 = vmatprep.subr.msk.mxu1 %vm703_vm0, %v5887_v19  ;;  %v5944_v51 = vadd.f32 %v5870_v7, %v548_v44  ;;  %v5947_v52 = vadd.f32 %v5870_v7, %v549_v45  ;;  %v5953_v54 = vadd.f32 %v5870_v7, %v550_v46  ;;  %v554_v55 = vmul.f32 %v5860_v6, %v499_v41  ;;  %v509_v15 = vld [vmem:[%s5865_s24 + $0x80] sm:$0xff]  ;;  %v1410_v18 = vld [vmem:[%s8463_s1 + $0x70] sm:$0xff]  ;;  %v512_v21 = vld [vmem:[%s5865_s24 + $0x98] sm:$0xff] }
  0x28   : > { %5259 = vmatpush3.xpose.msk.msra.mxu1 %vm703_vm0, %v5887_v19  ;;  %v5960_v57 = vadd.f32 %v5870_v7, %v551_v48  ;;  %v5963_v58 = vadd.f32 %v5870_v7, %v552_v49  ;;  %v5966_v59 = vadd.f32 %v5870_v7, %v553_v50  ;;  %v5971_v61 = vmax.f32 %v646_v39, 0.0  ;;  %v513_v22 = vld [vmem:[%s5865_s24 + $0xa0] sm:$0xff]  ;;  %v514_v25 = vld [vmem:[%s5865_s24 + $0xa8] sm:$0xff]  ;;  %v531_v33 = vld [vmem:[%s5865_s24 + $0x130] sm:$0xff] }
  0x29   : > { %5260 = vmatprep.subr.msk.mxu1 %vm703_vm0, %v5889_v20  ;;  %v645_v62 = vadd.f32 %v5870_v7, %v590_v40  ;;  %v5979_v1 = vadd.f32 %v5870_v7, %v554_v55  ;;  %v555_v2 = vmul.f32 %v5860_v6, %v500_v56  ;;  %v556_v5 = vmul.f32 %v5860_v6, %v501_v60  ;;  %v1412_v36 = vld [vmem:[%s8463_s1 + $0x80] sm:$0xff]  ;;  %v516_v41 = vld [vmem:[%s5865_s24 + $0xb8] sm:$0xff] }
  0x2a   : > { %1491 = vperm.xlu1 %5618, %v1405_v27   ;;  %1486 = vperm.xlu0 %5617, %v1404_v32   ;;  %v644_v8 = vadd.f32 %v5870_v7, %v589_v47  ;;  %v588_v9 = vmul.f32 %v5860_v6, %v533_v63  ;;  %v587_v26 = vmul.f32 %v5860_v6, %v532_v12  ;;  %v1413_v27 = vld [vmem:[%s8463_s1 + $0x88] sm:$0xff]  ;;  %v515_v32 = vld [vmem:[%s5865_s24 + $0xb0] sm:$0xff]  ;;  %v1415_v49 = vld [vmem:[%s8463_s1 + $0x98] sm:$0xff] }
  0x2b   : > { %v5991_v10 = vadd.f32 %v5870_v7, %v555_v2  ;;  %v5995_v11 = vmax.f32 %v645_v62, 0.0  ;;  %v6002_v14 = vadd.f32 %v5870_v7, %v556_v5  ;;  %v564_v29 = vmul.f32 %v5860_v6, %v509_v15  ;;  %v508_v55 = vld [vmem:[%s5865_s24 + $0x78] sm:$0xff]  ;;  %v1414_v62 = vld [vmem:[%s8463_s1 + $0x90] sm:$0xff] }
  0x2c   : > { %5261 = vmatpush3.xpose.msk.msra.mxu1 %vm703_vm0, %v5889_v20  ;;  %v6014_v23 = vmax.f32 %v644_v8, 0.0  ;;  %v643_v24 = vadd.f32 %v5870_v7, %v588_v9  ;;  %v565_v30 = vmul.f32 %v5860_v6, %v510_v16  ;;  %v566_v31 = vmul.f32 %v5860_v6, %v511_v17  ;;  %v529_v8 = vld [vmem:[%s5865_s24 + $0x120] sm:$0xff]  ;;  %v1417_v9 = vld [vmem:[%s8463_s1 + $0xa8] sm:$0xff]  ;;  %v507_v15 = vld [vmem:[%s5865_s24 + $0x70] sm:$0xff] }
  0x2d   : > { %5262 = vmatprep.subr.msk.mxu1 %vm703_vm0, %v5910_v28  ;;  %v567_v34 = vmul.f32 %v5860_v6, %v512_v21  ;;  %v568_v35 = vmul.f32 %v5860_v6, %v513_v22  ;;  %v6035_v37 = vadd.f32 %v5870_v7, %v564_v29  ;;  %v569_v40 = vmul.f32 %v5860_v6, %v514_v25  ;;  %v1416_v16 = vld [vmem:[%s8463_s1 + $0xa0] sm:$0xff]  ;;  %v522_v21 = vld [vmem:[%s5865_s24 + $0xe8] sm:$0xff] }
  0x2e   : > { %1501 = vperm.xlu1 %5618, %v1407_v43   ;;  %1496 = vperm.xlu0 %5617, %v1406_v53   ;;  %v6038_v38 = vadd.f32 %v5870_v7, %v565_v30  ;;  %v6041_v39 = vadd.f32 %v5870_v7, %v566_v31  ;;  %v570_v45 = vmul.f32 %v5860_v6, %v515_v32  ;;  %v6056_v46 = vmax.f32 %v643_v24, 0.0  ;;  %v530_v53 = vld [vmem:[%s5865_s24 + $0x128] sm:$0xff] }
  0x2f   : > { %v6048_v43 = vadd.f32 %v5870_v7, %v567_v34  ;;  %v6051_v44 = vadd.f32 %v5870_v7, %v568_v35  ;;  %v642_v47 = vadd.f32 %v5870_v7, %v587_v26  ;;  %v586_v48 = vmul.f32 %v5860_v6, %v531_v33  ;;  %v528_v26 = vld [vmem:[%s5865_s24 + $0x118] sm:$0xff]  ;;  %v506_v31 = vld [vmem:[%s5865_s24 + $0x68] sm:$0xff]  ;;  %v1418_v33 = vld [vmem:[%s8463_s1 + $0xb0] sm:$0xff] }
  0x30   : > { %5263 = vmatpush3.xpose.msk.msra.mxu1 %vm703_vm0, %v5910_v28  ;;  %v6064_v50 = vadd.f32 %v5870_v7, %v569_v40  ;;  %v6069_v56 = vadd.f32 %v5870_v7, %v570_v45  ;;  %v571_v60 = vmul.f32 %v5860_v6, %v516_v41  ;;  %v585_v5 = vmul.f32 %v5860_v6, %v530_v53  ;;  %v521_v41 = vld [vmem:[%s5865_s24 + $0xe0] sm:$0xff]  ;;  %v1421_v53 = vld [vmem:[%s8463_s1 + $0xc8] sm:$0xff] }
  0x31   : > { %5264 = vmatprep.subr.msk.mxu1 %vm703_vm0, %v5931_v42  ;;  %v6083_v2 = vmax.f32 %v642_v47, 0.0  ;;  %v563_v12 = vmul.f32 %v5860_v6, %v508_v55  ;;  %v562_v29 = vmul.f32 %v5860_v6, %v507_v15  ;;  %v577_v34 = vmul.f32 %v5860_v6, %v522_v21 }
  0x32   : > { %1511 = vperm.xlu1 %5618, %v1409_v0   ;;  %1506 = vperm.xlu0 %5617, %v1408_v4   ;;  %v6078_v63 = vadd.f32 %v5870_v7, %v571_v60  ;;  %v523_v0 = vld [vmem:[%s5865_s24 + $0xf0] sm:$0xff]  ;;  %v641_v4 = vadd.f32 %v5870_v7, %v586_v48  ;;  %v640_v25 = vadd.f32 %v5870_v7, %v585_v5 }
  0x33   : > { %v578_v17 = vmul.f32 %v5860_v6, %v523_v0  ;;  %v6114_v30 = vadd.f32 %v5870_v7, %v563_v12  ;;  %v583_v40 = vmul.f32 %v5860_v6, %v528_v26  ;;  %v527_v48 = vld [vmem:[%s5865_s24 + $0x110] sm:$0xff]  ;;  %v6143_v55 = vadd.f32 %v5870_v7, %v562_v29  ;;  %v1420_v0 = vld [vmem:[%s8463_s1 + $0xc0] sm:$0xff] }
  0x34   : > { %5265 = vmatpush3.xpose.msk.msra.mxu1 %vm703_vm0, %v5931_v42  ;;  %v6105_v24 = vmax.f32 %v641_v4, 0.0  ;;  %v6135_v47 = vmax.f32 %v640_v25, 0.0  ;;  %v576_v4 = vmul.f32 %v5860_v6, %v521_v41  ;;  %v6155_v5 = vadd.f32 %v5870_v7, %v577_v34  ;;  %v504_v25 = vld [vmem:[%s5865_s24 + $0x58] sm:$0xff]  ;;  %v1422_v26 = vld [vmem:[%s8463_s1 + $0xd0] sm:$0xff]  ;;  %v525_v41 = vld [vmem:[%s5865_s24 + $0x100] sm:$0xff] }
  0x35   : > { %5266 = vmatprep.subr.msk.mxu1 %vm703_vm0, %v5971_v61  ;;  %v6125_v35 = vadd.f32 %v5870_v7, %v578_v17  ;;  %v8490_v60 = vmax.f32 %v6114_v30, 0.0  ;;  %v582_v12 = vmul.f32 %v5860_v6, %v527_v48  ;;  %v8491_v21 = vmax.f32 %v6143_v55, 0.0 }
  0x36   : > { %1521 = vperm.xlu1 %5618, %v1411_v13   ;;  %1516 = vperm.xlu0 %5617, %v1410_v18   ;;  %v524_v13 = vld [vmem:[%s5865_s24 + $0xf8] sm:$0xff]  ;;  %v584_v18 = vmul.f32 %v5860_v6, %v529_v8  ;;  %v6188_v29 = vadd.f32 %v5870_v7, %v576_v4  ;;  %v559_v48 = vmul.f32 %v5860_v6, %v504_v25  ;;  %v1424_v4 = vld [vmem:[%s8463_s1 + $0xe0] sm:$0xff] }
  0x37   : > { %v579_v22 = vmul.f32 %v5860_v6, %v524_v13  ;;  %v8483_v8 = vmax.f32 %v6125_v35, 0.0  ;;  %v520_v13 = vld [vmem:[%s5865_s24 + $0xd8] sm:$0xff] }
  0x38   : > { %5267 = vmatpush3.xpose.msk.msra.mxu1 %vm703_vm0, %v5971_v61 }
  0x39   : > { %5268 = vmatprep.subr.msk.mxu1 %vm703_vm0, %v5995_v11  ;;  %v6118_v32 = vadd.f32 %v5870_v7, %v579_v22  ;;  %v1423_v22 = vld [vmem:[%s8463_s1 + $0xd8] sm:$0xff] }
  0x3a   : > { %1531 = vperm.xlu1 %5618, %v1413_v27   ;;  %1526 = vperm.xlu0 %5617, %v1412_v36   ;;  %v1419_v27 = vld [vmem:[%s8463_s1 + $0xb8] sm:$0xff]  ;;  %v639_v36 = vadd.f32 %v5870_v7, %v584_v18 }
  0x3b   : > { %v8482_v45 = vmax.f32 %v6118_v32, 0.0 }
  0x3c   : > { %5269 = vmatpush3.xpose.msk.msra.mxu1 %vm703_vm0, %v5995_v11  ;;  %v6168_v15 = vmax.f32 %v639_v36, 0.0  ;;  %v519_v36 = vld [vmem:[%s5865_s24 + $0xd0] sm:$0xff] }
  0x3d   : > { %5270 = vmatprep.subr.msk.mxu1 %vm703_vm0, %v6014_v23  ;;  %4955 = vmatprep.subr.msk.mxu0 %vm703_vm0, %v8482_v45  ;;  %v517_v45 = vld [vmem:[%s5865_s24 + $0xc0] sm:$0xff] }
  0x3e   : > { %1541 = vperm.xlu1 %5618, %v1415_v49   ;;  %1536 = vperm.xlu0 %5617, %v1414_v62   ;;  %v561_v49 = vmul.f32 %v5860_v6, %v506_v31  ;;  %v505_v62 = vld [vmem:[%s5865_s24 + $0x60] sm:$0xff]  ;;  %v8484_v31 = vmax.f32 %v6155_v5, 0.0 }
  0x3f   : > { %4956 = vmatpush3.xpose.msk.msra.mxu0 %vm703_vm0, %v8490_v60  ;;  %v560_v17 = vmul.f32 %v5860_v6, %v505_v62  ;;  %v1425_v62 = vld [vmem:[%s8463_s1 + $0xe8] sm:$0xff]  ;;  %v674_v60 = vmax.f32 %v6078_v63, 0.0  ;;  %v8515_v63 = vmax.f32 %v6188_v29, 0.0 }
  0x40   : > { %5271 = vmatpush3.xpose.msk.msra.mxu1 %vm703_vm0, %v6014_v23  ;;  %v6173_v18 = vadd.f32 %v5870_v7, %v561_v49  ;;  %4957 = vmatprep.subr.msk.mxu0 %vm703_vm0, %v8483_v8 }
  0x41   : > { %5272 = vmatprep.subr.msk.mxu1 %vm703_vm0, %v6056_v46  ;;  %v6206_v49 = vadd.f32 %v5870_v7, %v560_v17  ;;  %v580_v17 = vmul.f32 %v5860_v6, %v525_v41  ;;  %v502_v41 = vld [vmem:[%s5865_s24 + $0x48] sm:$0xff] }
  0x42   : > { %1551 = vperm.xlu1 %5618, %v1417_v9   ;;  %1546 = vperm.xlu0 %5617, %v1416_v16   ;;  %v638_v9 = vadd.f32 %v5870_v7, %v583_v40  ;;  %v526_v16 = vld [vmem:[%s5865_s24 + $0x108] sm:$0xff] }
  0x43   : > { %4958 = vmatpush3.xpose.msk.msra.mxu0 %vm703_vm0, %v8491_v21  ;;  %v581_v34 = vmul.f32 %v5860_v6, %v526_v16  ;;  %v658_v21 = vmax.f32 %v5991_v10, 0.0  ;;  %v653_v10 = vmax.f32 %v5953_v54, 0.0  ;;  %v672_v54 = vmax.f32 %v6064_v50, 0.0 }
  0x44   : > { %5273 = vmatpush3.xpose.msk.msra.mxu1 %vm703_vm0, %v6056_v46  ;;  %v6201_v40 = vmax.f32 %v638_v9, 0.0  ;;  %4959 = vmatprep.subr.msk.mxu0 %vm703_vm0, %v8484_v31  ;;  %v574_v9 = vmul.f32 %v5860_v6, %v519_v36  ;;  %v8493_v36 = vmax.f32 %v6206_v49, 0.0  ;;  %v671_v50 = vmax.f32 %v6051_v44, 0.0 }
  0x45   : > { %5274 = vmatprep.subr.msk.mxu1 %vm703_vm0, %v6083_v2  ;;  %v636_v16 = vadd.f32 %v5870_v7, %v581_v34  ;;  %v1427_v34 = vld [vmem:[%s8463_s1 + $0xf8] sm:$0xff]  ;;  %v670_v44 = vmax.f32 %v6048_v43, 0.0  ;;  %v668_v43 = vmax.f32 %v6038_v38, 0.0  ;;  %v8508_v38 = vmax.f32 %v6173_v18, 0.0 }
  0x46   : > { %1561 = vperm.xlu1 %5618, %v1419_v27   ;;  %1556 = vperm.xlu0 %5617, %v1418_v33   ;;  %v575_v27 = vmul.f32 %v5860_v6, %v520_v13  ;;  %v637_v33 = vadd.f32 %v5870_v7, %v582_v12  ;;  %v8485_v13 = vmax.f32 %v6188_v29, 0.0 }
  0x48   : > { %5275 = vmatpush3.xpose.msk.msra.mxu1 %vm703_vm0, %v6083_v2  ;;  %v6221_v12 = vadd.f32 %v5870_v7, %v575_v27  ;;  %v6234_v25 = vmax.f32 %v637_v33, 0.0  ;;  %v6238_v27 = vadd.f32 %v5870_v7, %v559_v48  ;;  %v1426_v33 = vld [vmem:[%s8463_s1 + $0xf0] sm:$0xff]  ;;  %v6253_v48 = vadd.f32 %v5870_v7, %v574_v9 }
  0x49   : > { %5276 = vmatprep.subr.msk.mxu1 %vm703_vm0, %v6105_v24  ;;  %v557_v9 = vmul.f32 %v5860_v6, %v502_v41 }
  0x4a   : > { %1571 = vperm.xlu1 %5618, %v1421_v53   ;;  %1566 = vperm.xlu0 %5617, %v1420_v0   ;;  %v8492_v53 = vmax.f32 %v6173_v18, 0.0  ;;  %v503_v0 = vld [vmem:[%s5865_s24 + $0x50] sm:$0xff]  ;;  %v8494_v31 = vmax.f32 %v6238_v27, 0.0  ;;  %v8495_v18 = vmov 0.0  }
  0x4b   : > { %2363 = vst.msk [vmem:[#allocation3 + $0x1a0] sm:$0xff] %vm2359_vm1, %v8495_v18  ;;  %2360 = vst.msk [vmem:[#allocation3 + $0x8] sm:$0xff] %vm2359_vm1, %v8495_v18 }
  0x4c   : > { %5277 = vmatpush3.xpose.msk.msra.mxu1 %vm703_vm0, %v6105_v24  ;;  %4960 = vmatpush3.xpose.msk.msra.mxu0 %vm703_vm0, %v8492_v53  ;;  %v1436_v53 = vld [vmem:[%s8463_s1 + $0x140] sm:$0xff]  ;;  %2361 = vst.msk [vmem:[#allocation3 + $0x10] sm:$0xff] %vm2359_vm1, %v8495_v18  ;;  %2362 = vst.msk [vmem:[#allocation3 + $0x18] sm:$0xff] %vm2359_vm1, %v8495_v18 }
  0x4d   : > { %5278 = vmatprep.subr.msk.mxu1 %vm703_vm0, %v6135_v47  ;;  %4961 = vmatprep.subr.msk.mxu0 %vm703_vm0, %v8485_v13  ;;  %v1429_v13 = vld [vmem:[%s8463_s1 + $0x108] sm:$0xff]  ;;  %2364 = vst.msk [vmem:[#allocation3 + $0x1a8] sm:$0xff] %vm2359_vm1, %v8495_v18  ;;  %2365 = vst.msk [vmem:[#allocation3 + $0x1b0] sm:$0xff] %vm2359_vm1, %v8495_v18 }
  0x4e   : > { %1581 = vperm.xlu1 %5618, %v1423_v22   ;;  %1576 = vperm.xlu0 %5617, %v1422_v26   ;;  %v518_v22 = vld [vmem:[%s5865_s24 + $0xc8] sm:$0xff]  ;;  %v558_v26 = vmul.f32 %v5860_v6, %v503_v0  ;;  %v8486_v0 = vmax.f32 %v6221_v12, 0.0  ;;  %s5699_s24 = smov 48   ;;  %1733 = vst.msk [vmem:[#allocation2 + $0x18] sm:$0xff] %vm1732_vm2, %v8495_v18  ;;  %1734 = vst.msk [vmem:[#allocation2 + $0x1a0] sm:$0xff] %vm1732_vm2, %v8495_v18 }
  0x50   : > { %5279 = vmatpush3.xpose.msk.msra.mxu1 %vm703_vm0, %v6135_v47  ;;  %4962 = vmatpush3.xpose.msk.msra.mxu0 %vm703_vm0, %v8493_v36  ;;  %v6269_v8 = vadd.f32 %v5870_v7, %v558_v26  ;;  %v652_v36 = vmax.f32 %v5947_v52, 0.0  ;;  %v657_v52 = vmax.f32 %v5979_v1, 0.0  ;;  %v656_v1 = vmax.f32 %v5966_v59, 0.0  ;;  %v1442_v59 = vld [vmem:[%s8463_s1 + $0x170] sm:$0xff] }
  0x51   : > { %5280 = vmatprep.subr.msk.mxu1 %vm703_vm0, %v6168_v15  ;;  %4963 = vmatprep.subr.msk.mxu0 %vm703_vm0, %v8486_v0  ;;  %v6341_v0 = vld [vmem:[%s8466_s4 + $0x8] sm:$0xff] }
  0x52   : > { %1591 = vperm.xlu1 %5618, %v1425_v62   ;;  %1586 = vperm.xlu0 %5617, %v1424_v4   ;;  %v573_v62 = vmul.f32 %v5860_v6, %v518_v22  ;;  %v635_v4 = vadd.f32 %v5870_v7, %v580_v17  ;;  %v6265_v22 = vmax.f32 %v636_v16, 0.0  ;;  %v1428_v16 = vld [vmem:[%s8463_s1 + $0x100] sm:$0xff]  ;;  %v572_v17 = vmul.f32 %v5860_v6, %v517_v45 }
  0x53   : > { %v6296_v6 = vadd.f32 %v5870_v7, %v557_v9  ;;  %v661_v45 = vmax.f32 %v6269_v8, 0.0  ;;  %v1433_v9 = vld [vmem:[%s8463_s1 + $0x128] sm:$0xff]  ;;  %v8509_v8 = vmax.f32 %v6143_v55, 0.0  ;;  %v8516_v55 = vmax.f32 %v6155_v5, 0.0  ;;  %v2465_v5 = vld [vmem:[#allocation3 + $0x1a0] sm:$0xff] }
  0x54   : > { %5281 = vmatpush3.xpose.msk.msra.mxu1 %vm703_vm0, %v6168_v15  ;;  %v6283_v26 = vadd.f32 %v5870_v7, %v573_v62  ;;  %4964 = vmatpush3.xpose.msk.msra.mxu0 %vm703_vm0, %v8494_v31  ;;  %v6293_v41 = vmax.f32 %v635_v4, 0.0  ;;  %v1430_v4 = vld [vmem:[%s8463_s1 + $0x110] sm:$0xff]  ;;  %v1439_v31 = vld [vmem:[%s8463_s1 + $0x158] sm:$0xff] }
  0x55   : > { %5282 = vmatprep.subr.msk.mxu1 %vm703_vm0, %v6201_v40 }
  0x56   : > { %1601 = vperm.xlu1 %5618, %v1427_v34   ;;  %1596 = vperm.xlu0 %5617, %v1426_v33   ;;  %v8487_v34 = vmax.f32 %v6253_v48, 0.0  ;;  %v1431_v33 = vld [vmem:[%s8463_s1 + $0x118] sm:$0xff]  ;;  %v8488_v62 = vmax.f32 %v6283_v26, 0.0 }
  0x58   : > { %5283 = vmatpush3.xpose.msk.msra.mxu1 %vm703_vm0, %v6201_v40  ;;  %4965 = vmatprep.subr.msk.mxu0 %vm703_vm0, %v8487_v34  ;;  %v659_v34 = vmax.f32 %v6002_v14, 0.0  ;;  %v1434_v14 = vld [vmem:[%s8463_s1 + $0x130] sm:$0xff] }
  0x59   : > { %5284 = vmatprep.subr.msk.mxu1 %vm703_vm0, %v6234_v25  ;;  %4966 = vmatpush3.xpose.msk.msra.mxu0 %vm703_vm0, %v661_v45 }
  0x5a   : > { %1611 = vperm.xlu1 %5618, %v1429_v13   ;;  %1606 = vperm.xlu0 %5617, %v1428_v16   ;;  %v6306_v13 = vadd.f32 %v5870_v7, %v572_v17  ;;  %v660_v7 = vmax.f32 %v6296_v6, 0.0  ;;  %v1035_v16 = vld [vmem:[%s8467_s5 + $0x8] sm:$0xff] }
  0x5b   : > { %4967 = vmatprep.subr.msk.mxu0 %vm703_vm0, %v8488_v62  ;;  %v1034_v62 = vld [vmem:[%s8467_s5] sm:$0xff] }
  0x5c   : > { %5285 = vmatpush3.xpose.msk.msra.mxu1 %vm703_vm0, %v6234_v25  ;;  %v8489_v17 = vmax.f32 %v6306_v13, 0.0 }
  0x5d   : > { %5286 = vmatprep.subr.msk.mxu1 %vm703_vm0, %v6265_v22  ;;  %4968 = vmatpush3.xpose.msk.msra.mxu0 %vm703_vm0, %v660_v7 }
  0x5e   : > { %1621 = vperm.xlu1 %5618, %v1431_v33   ;;  %1616 = vperm.xlu0 %5617, %v1430_v4   ;;  %v1432_v33 = vld [vmem:[%s8463_s1 + $0x120] sm:$0xff]  ;;  %v6346_v4 = vld [vmem:[%s8466_s4 + $0x10] sm:$0xff] }
  0x5f   : > { %4969 = vmatprep.subr.msk.mxu0 %vm703_vm0, %v8489_v17  ;;  %v651_v17 = vmax.f32 %v5944_v51, 0.0  ;;  %v8512_v51 = vmax.f32 %v6283_v26, 0.0 }
  0x60   : > { %5287 = vmatpush3.xpose.msk.msra.mxu1 %vm703_vm0, %v6265_v22 }
  0x61   : > { %5288 = vmatprep.subr.msk.mxu1 %vm703_vm0, %v6293_v41  ;;  %4970 = vmatpush3.xpose.msk.msra.mxu0 %vm703_vm0, %v659_v34 }
  0x62   : > { %1631 = vperm.xlu1 %5618, %v1433_v9   ;;  %1626 = vperm.xlu0 %5617, %v1432_v33   ;;  %v1435_v9 = vld [vmem:[%s8463_s1 + $0x138] sm:$0xff] }
  0x63   : > { %v6369_v33 = vld [vmem:[%s8466_s4 + $0x18] sm:$0xff]  ;;  %4971 = vmatprep.subr.msk.mxu0 %vm703_vm0, %v674_v60 }
  0x64   : > { %5289 = vmatpush3.xpose.msk.msra.mxu1 %vm703_vm0, %v6293_v41 }
  0x65   : > { %5296 = vmatprep.subr.mxu1 %v1035_v16  ;;  %4972 = vmatpush3.xpose.msk.msra.mxu0 %vm703_vm0, %v658_v21 }
  0x66   : > { %1641 = vperm.xlu1 %5618, %v1435_v9   ;;  %1636 = vperm.xlu0 %5617, %v1434_v14   ;;  %v654_v9 = vmax.f32 %v5960_v57, 0.0  ;;  %v655_v14 = vmax.f32 %v5963_v58, 0.0  ;;  %v1438_v57 = vld [vmem:[%s8463_s1 + $0x150] sm:$0xff]  ;;  %v1441_v58 = vld [vmem:[%s8463_s1 + $0x168] sm:$0xff] }
  0x67   : > { %5291 = vmatmul.mubr.msk.f32.vlgmr.msra.gmra.mxu1 %vm703_vm0, %v6341_v0 }
  0x68   : > { %5293 = vmatprep.mubr.msk.f32.mxu1 %vm703_vm0, %v6346_v4  ;;  %5297 = vmatpush3.msra.mxu1 %v1035_v16  ;;  %v673_v16 = vmax.f32 %v6069_v56, 0.0  ;;  %v8514_v56 = vmax.f32 %v6221_v12, 0.0 }
  0x69   : > { %5298 = vmatprep.subr.mxu1 %v1034_v62 }
  0x6a   : > { %5299 = vmatpush3.msra.mxu1 %v1034_v62  ;;  %1646 = vperm.xlu1 %5618, %v1436_v53   ;;  %v1437_v62 = vld [vmem:[%s8463_s1 + $0x148] sm:$0xff]  ;;  %v1440_v53 = vld [vmem:[%s8463_s1 + $0x160] sm:$0xff] }
  0x6b   : > { %5294 = vmatmul.mubr.msk.f32.gmra.mxu1 %vm703_vm0, %v6369_v33  ;;  %4973 = vmatprep.subr.msk.mxu0 %vm703_vm0, %v673_v16 }
  0x6c   : > { %5300 = vmatprep.mubr.msk.f32.mxu1 %vm703_vm0, %v651_v17  ;;  %1661 = vperm.xlu0 %5617, %v1439_v31   ;;  %v1443_v31 = vld [vmem:[%s8463_s1 + $0x178] sm:$0xff] }
  0x6d   : > { %4974 = vmatpush3.xpose.msk.msra.mxu0 %vm703_vm0, %v657_v52 }
  0x6e   : > { %1651 = vperm.xlu1 %5618, %v1437_v62   ;;  %4975 = vmatprep.subr.msk.mxu0 %vm703_vm0, %v672_v54  ;;  %v669_v62 = vmax.f32 %v6041_v39, 0.0  ;;  %v8506_v39 = vmax.f32 %v6238_v27, 0.0 }
  0x6f   : > { %5301 = vmatmul.mubr.msk.f32.vlgmr.msra.gmra.mxu1 %vm703_vm0, %v652_v36 }
  0x70   : > { %5303 = vmatprep.mubr.msk.f32.mxu1 %vm703_vm0, %v653_v10  ;;  %1666 = vperm.xlu0 %5617, %v1440_v53  }
  0x71   : > { %4976 = vmatpush3.xpose.msk.msra.mxu0 %vm703_vm0, %v656_v1 }
  0x72   : > { %1656 = vperm.xlu1 %5618, %v1438_v57   ;;  %4977 = vmatprep.subr.msk.mxu0 %vm703_vm0, %v671_v50 }
  0x73   : > { %5304 = vmatmul.mubr.msk.f32.gmra.mxu1 %vm703_vm0, %v654_v9 }
  0x74   : > { %5306 = vmatprep.mubr.msk.f32.mxu1 %vm703_vm0, %v655_v14  ;;  %1671 = vperm.xlu0 %5617, %v1441_v58  }
  0x75   : > { %4978 = vmatpush3.xpose.msk.msra.mxu0 %vm703_vm0, %v655_v14 }
  0x76   : > { %1676 = vperm.xlu1 %5618, %v1442_v59   ;;  %4979 = vmatprep.subr.msk.mxu0 %vm703_vm0, %v670_v44 }
  0x77   : > { %5307 = vmatmul.mubr.msk.f32.gmra.mxu1 %vm703_vm0, %v656_v1 }
  0x78   : > { %5309 = vmatprep.mubr.msk.f32.mxu1 %vm703_vm0, %v657_v52 }
  0x79   : > { %4980 = vmatpush3.xpose.msk.msra.mxu0 %vm703_vm0, %v654_v9 }
  0x7a   : > { %1681 = vperm.xlu1 %5618, %v1443_v31   ;;  %4981 = vmatprep.subr.msk.mxu0 %vm703_vm0, %v669_v62 }
  0x7b   : > { %5310 = vmatmul.mubr.msk.f32.gmra.mxu1 %vm703_vm0, %v658_v21  ;;  %v667_v21 = vmax.f32 %v6035_v37, 0.0  ;;  %v8510_v37 = vmax.f32 %v6114_v30, 0.0  ;;  %v8513_v30 = vmax.f32 %v6253_v48, 0.0 }
  0x7c   : > { %5312 = vmatprep.mubr.msk.f32.mxu1 %vm703_vm0, %v659_v34  ;;  %v8507_v34 = vmax.f32 %v6206_v49, 0.0 }
  0x7d   : > { %4982 = vmatpush3.xpose.msk.msra.mxu0 %vm703_vm0, %v653_v10 }
  0x7e   : > { %4983 = vmatprep.subr.msk.mxu0 %vm703_vm0, %v668_v43  ;;  %2798 = vrot.lane.b32.xlu1 %v2465_v5, %s5699_s24 }
  0x7f   : > { %5313 = vmatmul.mubr.msk.f32.gmra.mxu1 %vm703_vm0, %v660_v7 }
  0x80   : > { %5315 = vmatprep.mubr.msk.f32.mxu1 %vm703_vm0, %v661_v45 }
  0x81   : > { %4984 = vmatpush3.xpose.msk.msra.mxu0 %vm703_vm0, %v652_v36  ;;  %v6595_v36 = vld [vmem:[%s8468_s6] ss:$0 sm:$0xff] }
  0x82   : > { %4985 = vmatprep.subr.msk.mxu0 %vm703_vm0, %v667_v21 }
  0x83   : > { %5316 = vmatmul.mubr.msk.f32.gmra.mxu1 %vm703_vm0, %v8506_v39 }
  0x84   : > { %5318 = vmatprep.mubr.msk.f32.mxu1 %vm703_vm0, %v8507_v34 }
  0x85   : > { %4986 = vmatpush3.xpose.msk.msra.mxu0 %vm703_vm0, %v651_v17 }
  0x87   : > { %5319 = vmatmul.mubr.msk.f32.gmra.mxu1 %vm703_vm0, %v8508_v38 }
  0x88   : > { %5321 = vmatprep.mubr.msk.f32.mxu1 %vm703_vm0, %v8509_v8  ;;  %4988 = vmatmul.mubr.msk.f32.vlgmr.msra.gmra.mxu0 %vm703_vm0, %v5845_v3  ;;  %v8511_v3 = vmax.f32 %v6306_v13, 0.0 }
  0x89   : > { %4989 = vmatprep.mubr.msk.f32.mxu0 %vm703_vm0, %v6341_v0 }
  0x8b   : > { %5322 = vmatmul.mubr.msk.f32.gmra.mxu1 %vm703_vm0, %v8510_v37 }
  0x8c   : > { %5324 = vmatprep.mubr.msk.f32.mxu1 %vm703_vm0, %v667_v21  ;;  %4990 = vmatmul.mubr.msk.f32.gmra.mxu0 %vm703_vm0, %v6341_v0 }
  0x8d   : > { %4991 = vmatprep.mubr.msk.f32.mxu0 %vm703_vm0, %v6346_v4 }
  0x8f   : > { %5325 = vmatmul.mubr.msk.f32.gmra.mxu1 %vm703_vm0, %v668_v43 }
  0x90   : > { %5327 = vmatprep.mubr.msk.f32.mxu1 %vm703_vm0, %v669_v62  ;;  %4992 = vmatmul.mubr.msk.f32.gmra.mxu0 %vm703_vm0, %v6346_v4 }
  0x91   : > { %4993 = vmatprep.mubr.msk.f32.mxu0 %vm703_vm0, %v6369_v33 }
  0x93   : > { %5328 = vmatmul.mubr.msk.f32.gmra.mxu1 %vm703_vm0, %v670_v44 }
  0x94   : > { %5330 = vmatprep.mubr.msk.f32.mxu1 %vm703_vm0, %v671_v50  ;;  %4994 = vmatmul.mubr.msk.f32.gmra.mxu0 %vm703_vm0, %v6369_v33 }
  0x97   : > { %5331 = vmatmul.mubr.msk.f32.gmra.mxu1 %vm703_vm0, %v672_v54 }
  0x98   : > { %5333 = vmatprep.mubr.msk.f32.mxu1 %vm703_vm0, %v673_v16 }
  0x9b   : > { %5334 = vmatmul.mubr.msk.f32.gmra.mxu1 %vm703_vm0, %v674_v60  ;;  %v8517_v60 = vmax.f32 %v6125_v35, 0.0  ;;  %v8518_v35 = vmax.f32 %v6118_v32, 0.0 }
  0x9c   : > { %5336 = vmatprep.mubr.msk.f32.mxu1 %vm703_vm0, %v8511_v3 }
  0x9f   : > { %5337 = vmatmul.mubr.msk.f32.gmra.mxu1 %vm703_vm0, %v8512_v51 }
  0xa0   : > { %5339 = vmatprep.mubr.msk.f32.mxu1 %vm703_vm0, %v8513_v30 }
  0xa3   : > { %5340 = vmatmul.mubr.msk.f32.gmra.mxu1 %vm703_vm0, %v8514_v56 }
  0xa4   : > { %5342 = vmatprep.mubr.msk.f32.mxu1 %vm703_vm0, %v8515_v63 }
  0xa7   : > { %5343 = vmatmul.mubr.msk.f32.gmra.mxu1 %vm703_vm0, %v8516_v55 }
  0xa8   : > { %5345 = vmatprep.mubr.msk.f32.mxu1 %vm703_vm0, %v8517_v60 }
  0xab   : > { %5346 = vmatmul.mubr.msk.f32.gmra.mxu1 %vm703_vm0, %v8518_v35 }
  0xac   : > { %5348 = vmatprep.mubr.msk.f32.mxu1 %vm703_vm0, %v6293_v41 }
  0xaf   : > { %5349 = vmatmul.mubr.msk.f32.gmra.mxu1 %vm703_vm0, %v6265_v22 }
  0xb0   : > { %5351 = vmatprep.mubr.msk.f32.mxu1 %vm703_vm0, %v6234_v25 }
  0xb3   : > { %5352 = vmatmul.mubr.msk.f32.gmra.mxu1 %vm703_vm0, %v6201_v40 }
  0xb4   : > { %5354 = vmatprep.mubr.msk.f32.mxu1 %vm703_vm0, %v6168_v15 }
  0xb7   : > { %5355 = vmatmul.mubr.msk.f32.gmra.mxu1 %vm703_vm0, %v6135_v47 }
  0xb8   : > { %5357 = vmatprep.mubr.msk.f32.mxu1 %vm703_vm0, %v6105_v24 }
  0xbb   : > { %5358 = vmatmul.mubr.msk.f32.gmra.mxu1 %vm703_vm0, %v6083_v2  ;;  %v1457_v2 = vpop.permute.xlu0 %1456 }
  0xbc   : > { %5360 = vmatprep.mubr.msk.f32.mxu1 %vm703_vm0, %v6056_v46  ;;  %v1467_v46 = vpop.permute.xlu1 %1466 }
  0xbf   : > { %5361 = vmatmul.mubr.msk.f32.gmra.mxu1 %vm703_vm0, %v6014_v23 }
  0xc0   : > { %5363 = vmatprep.mubr.msk.f32.mxu1 %vm703_vm0, %v5995_v11  ;;  %v1472_v23 = vpop.permute.xlu1 %1471  ;;  %v1462_v11 = vpop.permute.xlu0 %1461 }
  0xc3   : > { %5364 = vmatmul.mubr.msk.f32.gmra.mxu1 %vm703_vm0, %v5971_v61 }
  0xc4   : > { %5366 = vmatprep.mubr.msk.f32.mxu1 %vm703_vm0, %v5931_v42  ;;  %v1447_v24 = vpop.permute.xlu1 %1446  ;;  %v6568_v61 = vpop.permute.xlu0 %1476 }
  0xc7   : > { %5367 = vmatmul.mubr.msk.f32.gmra.mxu1 %vm703_vm0, %v5910_v28 }
  0xc8   : > { %5369 = vmatprep.mubr.msk.f32.mxu1 %vm703_vm0, %v5889_v20  ;;  %v6566_v32 = vpop.permute.xlu1 %1481  ;;  %v1452_v42 = vpop.permute.xlu0 %1451 }
  0xcb   : > { %5370 = vmatmul.mubr.msk.f32.gmra.mxu1 %vm703_vm0, %v5887_v19 }
  0xcc   : > { %v6570_v47 = vpop.permute.xlu1 %1491  ;;  %v6574_v28 = vpop.permute.xlu0 %1486 }
  0xd0   : > { %v6572_v15 = vpop.permute.xlu1 %1501  ;;  %v6578_v29 = vpop.permute.xlu0 %1496 }
  0xd4   : > { %v6576_v20 = vpop.permute.xlu1 %1511  ;;  %v6586_v12 = vpop.permute.xlu0 %1506 }
  0xd8   : > { %v6582_v40 = vpop.permute.xlu1 %1521  ;;  %v6600_v26 = vpop.permute.xlu0 %1516 }
  0xdc   : > { %v6597_v48 = vpop.permute.xlu1 %1531  ;;  %v6609_v54 = vpop.permute.xlu0 %1526 }
  0xe0   : > { %v6604_v33 = vpop.permute.xlu1 %1541  ;;  %v6621_v34 = vpop.permute.xlu0 %1536 }
  0xe4   : > { %v6617_v31 = vpop.permute.xlu1 %1551 }
  0xe8   : > { %v6630_v55 = vpop.permute.xlu1 %1561 }
 0x127   : > { %v6580_v19 = vpop.f32.mrf.mxu1 }
 0x129   : > { %v6584_v49 = vpop.f32.mrf.mxu1 }
 0x12b   : > { %v6588_v25 = vpop.f32.mrf.mxu1 }
 0x12c   : > { %8519 = vst [vmem:[#allocation11_spill] sm:$0xff] %v6588_v25 }
 0x12d   : > { %v6590_v27 = vpop.f32.mrf.mxu1 }
 0x12e   : > { %8520 = vst [vmem:[#allocation12_spill] sm:$0xff] %v6590_v27 }
 0x12f   : > { %v5302_v0 = vpop.f32.mrf.mxu1 }
 0x130   : > { %v1115_v22 = vadd.f32 %v5302_v0, %v6595_v36 }
 0x131   : > { %v1109_v41 = vpop.f32.mrf.mxu1 }
 0x132   : > { %v1349_v6 = vmax.f32 %v1115_v22, 0.0  ;;  %v1110_v45 = vadd.f32 %v6595_v36, %v1109_v41 }
 0x133   : > { %v5305_v13 = vpop.f32.mrf.mxu1 }
 0x134   : > { %v1685_v7 = vmul.f32 %v1452_v42, %v1349_v6  ;;  %v1348_v17 = vmax.f32 %v1110_v45, 0.0  ;;  %v1125_v4 = vadd.f32 %v5305_v13, %v6595_v36  ;;  %v6647_v13 = vpop.permute.xlu1 %1571 }
 0x135   : > { %v1119_v16 = vpop.f32.mrf.mxu1 }
 0x136   : > { %1736 = vst.msk [vmem:[#allocation2 + $0x28] sm:$0xff] %vm1732_vm2, %v1685_v7  ;;  %v1684_v10 = vmul.f32 %v1447_v24, %v1348_v17  ;;  %v1351_v52 = vmax.f32 %v1125_v4, 0.0  ;;  %v1120_v9 = vadd.f32 %v6595_v36, %v1119_v16  ;;  %1929 = vrot.lane.b32.xlu1 %v1685_v7, %s5700_s25 }
 0x137   : > { %v5308_v53 = vpop.f32.mrf.mxu1 }
 0x138   : > { %1735 = vst.msk [vmem:[#allocation2 + $0x20] sm:$0xff] %vm1732_vm2, %v1684_v10  ;;  %v1687_v14 = vmul.f32 %v1462_v11, %v1351_v52  ;;  %v1350_v1 = vmax.f32 %v1120_v9, 0.0  ;;  %v1135_v57 = vadd.f32 %v5308_v53, %v6595_v36 }
 0x139   : > { %v1129_v50 = vpop.f32.mrf.mxu1 }
 0x13a   : > { %1738 = vst.msk [vmem:[#allocation2 + $0x38] sm:$0xff] %vm1732_vm2, %v1687_v14  ;;  %v1686_v58 = vmul.f32 %v1457_v2, %v1350_v1  ;;  %v1353_v59 = vmax.f32 %v1135_v57, 0.0  ;;  %v1130_v44 = vadd.f32 %v6595_v36, %v1129_v50  ;;  %1933 = vrot.lane.b32.xlu0 %v1687_v14, %s5700_s25  ;;  %1927 = vrot.lane.b32.xlu1 %v1684_v10, %s5700_s25  ;;  %v6637_v2 = vpop.permute.xlu0 %1546  ;;  %v6670_v57 = vpop.permute.xlu1 %1581 }
 0x13b   : > { %v5311_v62 = vpop.f32.mrf.mxu1 }
 0x13c   : > { %1737 = vst.msk [vmem:[#allocation2 + $0x30] sm:$0xff] %vm1732_vm2, %v1686_v58  ;;  %v1689_v43 = vmul.f32 %v1472_v23, %v1353_v59  ;;  %v1352_v39 = vmax.f32 %v1130_v44, 0.0  ;;  %v1145_v21 = vadd.f32 %v5311_v62, %v6595_v36 }
 0x13d   : > { %v1139_v38 = vpop.f32.mrf.mxu1 }
 0x13e   : > { %1740 = vst.msk [vmem:[#allocation2 + $0x48] sm:$0xff] %vm1732_vm2, %v1689_v43  ;;  %v1688_v8 = vmul.f32 %v1467_v46, %v1352_v39  ;;  %v1355_v37 = vmax.f32 %v1145_v21, 0.0  ;;  %v1140_v3 = vadd.f32 %v6595_v36, %v1139_v38  ;;  %1937 = vrot.lane.b32.xlu0 %v1689_v43, %s5700_s25  ;;  %1931 = vrot.lane.b32.xlu1 %v1686_v58, %s5700_s25  ;;  %v6654_v16 = vpop.permute.xlu0 %1556 }
 0x13f   : > { %v5314_v51 = vpop.f32.mrf.mxu1  ;;  %v1831_v35 = vld [vmem:[#allocation2 + $0x1f] sm:$0xff] }
 0x140   : > { %1739 = vst.msk [vmem:[#allocation2 + $0x40] sm:$0xff] %vm1732_vm2, %v1688_v8  ;;  %v1691_v30 = vmul.f32 %v6566_v32, %v1355_v37  ;;  %v1354_v56 = vmax.f32 %v1140_v3, 0.0  ;;  %v1155_v63 = vadd.f32 %v5314_v51, %v6595_v36  ;;  %v6691_v51 = vpop.permute.xlu1 %1591 }
 0x141   : > { %v1149_v60 = vpop.f32.mrf.mxu1 }
 0x142   : > { %1742 = vst.msk [vmem:[#allocation2 + $0x58] sm:$0xff] %vm1732_vm2, %v1691_v30  ;;  %v1690_v5 = vmul.f32 %v6568_v61, %v1354_v56  ;;  %v1357_v46 = vmax.f32 %v1155_v63, 0.0  ;;  %v1150_v23 = vadd.f32 %v6595_v36, %v1149_v60  ;;  %1935 = vrot.lane.b32.xlu0 %v1688_v8, %s5700_s25  ;;  %2119 = vrot.lane.b32.xlu1 %v1831_v35, %s5701_s26  ;;  %v1832_v61 = vld [vmem:[#allocation2 + $0x27] sm:$0xff] }
 0x143   : > { %v5317_v24 = vpop.f32.mrf.mxu1  ;;  %v1834_v22 = vld [vmem:[#allocation2 + $0x37] sm:$0xff] }
 0x144   : > { %1741 = vst.msk [vmem:[#allocation2 + $0x50] sm:$0xff] %vm1732_vm2, %v1690_v5  ;;  %v1693_v11 = vmul.f32 %v6570_v47, %v1357_v46  ;;  %v1356_v32 = vmax.f32 %v1150_v23, 0.0  ;;  %v1165_v42 = vadd.f32 %v5317_v24, %v6595_v36 }
 0x145   : > { %v1159_v0 = vpop.f32.mrf.mxu1 }
 0x146   : > { %1744 = vst.msk [vmem:[#allocation2 + $0x68] sm:$0xff] %vm1732_vm2, %v1693_v11  ;;  %v1692_v41 = vmul.f32 %v6574_v28, %v1356_v32  ;;  %v1359_v6 = vmax.f32 %v1165_v42, 0.0  ;;  %v1160_v45 = vadd.f32 %v6595_v36, %v1159_v0  ;;  %2121 = vrot.lane.b32.xlu0 %v1832_v61, %s5701_s26  ;;  %2125 = vrot.lane.b32.xlu1 %v1834_v22, %s5701_s26  ;;  %v6714_v0 = vpop.permute.xlu1 %1601 }
 0x147   : > { %v5320_v47 = vpop.f32.mrf.mxu1  ;;  %v1836_v50 = vld [vmem:[#allocation2 + $0x47] sm:$0xff]  ;;  %v1835_v35 = vld [vmem:[#allocation2 + $0x3f] sm:$0xff] }
 0x148   : > { %1743 = vst.msk [vmem:[#allocation2 + $0x60] sm:$0xff] %vm1732_vm2, %v1692_v41  ;;  %v6651_v7 = vmul.f32 %v6572_v15, %v1359_v6  ;;  %v1358_v17 = vmax.f32 %v1160_v45, 0.0  ;;  %v1175_v4 = vadd.f32 %v5320_v47, %v6595_v36 }
 0x149   : > { %v1169_v28 = vpop.f32.mrf.mxu1 }
 0x14a   : > { %1746 = vst.msk [vmem:[#allocation2 + $0x78] sm:$0xff] %vm1732_vm2, %v6651_v7  ;;  %v6659_v10 = vmul.f32 %v6578_v29, %v1358_v17  ;;  %v1361_v52 = vmax.f32 %v1175_v4, 0.0  ;;  %v1170_v9 = vadd.f32 %v6595_v36, %v1169_v28  ;;  %1941 = vrot.lane.b32.xlu0 %v1691_v30, %s5700_s25  ;;  %1945 = vrot.lane.b32.xlu1 %v1693_v11, %s5700_s25 }
 0x14b   : > { %v5323_v15 = vpop.f32.mrf.mxu1  ;;  %v1837_v28 = vld [vmem:[#allocation2 + $0x4f] sm:$0xff] }
 0x14c   : > { %1745 = vst.msk [vmem:[#allocation2 + $0x70] sm:$0xff] %vm1732_vm2, %v6659_v10  ;;  %v6667_v53 = vmul.f32 %v6576_v20, %v1361_v52  ;;  %v1360_v14 = vmax.f32 %v1170_v9, 0.0  ;;  %v1185_v1 = vadd.f32 %v5323_v15, %v6595_v36  ;;  %v6678_v20 = vpop.permute.xlu0 %1566 }
 0x14d   : > { %v1179_v29 = vpop.f32.mrf.mxu1 }
 0x14e   : > { %1748 = vst.msk [vmem:[#allocation2 + $0x88] sm:$0xff] %vm1732_vm2, %v6667_v53  ;;  %v1696_v58 = vmul.f32 %v6586_v12, %v1360_v14  ;;  %v1363_v59 = vmax.f32 %v1185_v1, 0.0  ;;  %v1180_v44 = vadd.f32 %v6595_v36, %v1179_v29  ;;  %1939 = vrot.lane.b32.xlu0 %v1690_v5, %s5700_s25  ;;  %2129 = vrot.lane.b32.xlu1 %v1836_v50, %s5701_s26  ;;  %v1833_v12 = vld [vmem:[#allocation2 + $0x2f] sm:$0xff]  ;;  %v1838_v5 = vld [vmem:[#allocation2 + $0x57] sm:$0xff] }
 0x14f   : > { %v5326_v62 = vpop.f32.mrf.mxu1  ;;  %v1840_v61 = vld [vmem:[#allocation2 + $0x67] sm:$0xff] }
 0x150   : > { %1747 = vst.msk [vmem:[#allocation2 + $0x80] sm:$0xff] %vm1732_vm2, %v1696_v58  ;;  %v6682_v43 = vmul.f32 %v6582_v40, %v1363_v59  ;;  %v1362_v39 = vmax.f32 %v1180_v44, 0.0  ;;  %v1195_v21 = vadd.f32 %v5326_v62, %v6595_v36  ;;  %v6698_v60 = vpop.permute.xlu0 %1576 }
 0x151   : > { %v1189_v38 = vpop.f32.mrf.mxu1 }
 0x152   : > { %1750 = vst.msk [vmem:[#allocation2 + $0x98] sm:$0xff] %vm1732_vm2, %v6682_v43  ;;  %v1698_v8 = vmul.f32 %v6600_v26, %v1362_v39  ;;  %v1365_v37 = vmax.f32 %v1195_v21, 0.0  ;;  %v1190_v3 = vadd.f32 %v6595_v36, %v1189_v38  ;;  %2123 = vrot.lane.b32.xlu0 %v1833_v12, %s5701_s26  ;;  %1943 = vrot.lane.b32.xlu1 %v1692_v41, %s5700_s25 }
 0x153   : > { %v5329_v40 = vpop.f32.mrf.mxu1 }
 0x154   : > { %1749 = vst.msk [vmem:[#allocation2 + $0x90] sm:$0xff] %vm1732_vm2, %v1698_v8  ;;  %v6695_v30 = vmul.f32 %v6597_v48, %v1365_v37  ;;  %v1364_v56 = vmax.f32 %v1190_v3, 0.0  ;;  %v1205_v63 = vadd.f32 %v5329_v40, %v6595_v36 }
 0x155   : > { %v1199_v26 = vpop.f32.mrf.mxu1 }
 0x156   : > { %1752 = vst.msk [vmem:[#allocation2 + $0xa8] sm:$0xff] %vm1732_vm2, %v6695_v30  ;;  %v6703_v46 = vmul.f32 %v6609_v54, %v1364_v56  ;;  %v1367_v23 = vmax.f32 %v1205_v63, 0.0  ;;  %v1200_v24 = vadd.f32 %v6595_v36, %v1199_v26  ;;  %2127 = vrot.lane.b32.xlu0 %v1835_v35, %s5701_s26  ;;  %2133 = vrot.lane.b32.xlu1 %v1838_v5, %s5701_s26  ;;  %v1839_v26 = vld [vmem:[#allocation2 + $0x5f] sm:$0xff] }
 0x157   : > { %v5332_v48 = vpop.f32.mrf.mxu1  ;;  %v1843_v12 = vld [vmem:[#allocation2 + $0x7f] sm:$0xff] }
 0x158   : > { %1751 = vst.msk [vmem:[#allocation2 + $0xa0] sm:$0xff] %vm1732_vm2, %v6703_v46  ;;  %v6711_v11 = vmul.f32 %v6604_v33, %v1367_v23  ;;  %v1366_v32 = vmax.f32 %v1200_v24, 0.0  ;;  %v1215_v42 = vadd.f32 %v5332_v48, %v6595_v36  ;;  %v6725_v33 = vpop.permute.xlu0 %1586 }
 0x159   : > { %v1209_v54 = vpop.f32.mrf.mxu1 }
 0x15a   : > { %1754 = vst.msk [vmem:[#allocation2 + $0xb8] sm:$0xff] %vm1732_vm2, %v6711_v11  ;;  %v6719_v22 = vmul.f32 %v6621_v34, %v1366_v32  ;;  %v1369_v41 = vmax.f32 %v1215_v42, 0.0  ;;  %v1210_v6 = vadd.f32 %v6595_v36, %v1209_v54  ;;  %1949 = vrot.lane.b32.xlu0 %v6651_v7, %s5700_s25  ;;  %2137 = vrot.lane.b32.xlu1 %v1840_v61, %s5701_s26 }
 0x15b   : > { %v5335_v45 = vpop.f32.mrf.mxu1  ;;  %v1845_v54 = vld [vmem:[#allocation2 + $0x8f] sm:$0xff] }
 0x15c   : > { %1753 = vst.msk [vmem:[#allocation2 + $0xb0] sm:$0xff] %vm1732_vm2, %v6719_v22  ;;  %v6730_v47 = vmul.f32 %v6617_v31, %v1369_v41  ;;  %v1368_v17 = vmax.f32 %v1210_v6, 0.0  ;;  %v1225_v34 = vadd.f32 %v5335_v45, %v6595_v36  ;;  %v6741_v31 = vpop.permute.xlu1 %1611  ;;  %v1597_v29 = vpop.permute.xlu0 %1596 }
 0x15d   : > { %v1219_v4 = vpop.f32.mrf.mxu1 }
 0x15e   : > { %1756 = vst.msk [vmem:[#allocation2 + $0xc8] sm:$0xff] %vm1732_vm2, %v6730_v47  ;;  %v6736_v7 = vmul.f32 %v6637_v2, %v1368_v17  ;;  %v1371_v52 = vmax.f32 %v1225_v34, 0.0  ;;  %v1220_v9 = vadd.f32 %v6595_v36, %v1219_v4  ;;  %2131 = vrot.lane.b32.xlu0 %v1837_v28, %s5701_s26  ;;  %1951 = vrot.lane.b32.xlu1 %v1696_v58, %s5700_s25  ;;  %v1841_v4 = vld [vmem:[#allocation2 + $0x6f] sm:$0xff] }
 0x15f   : > { %v5338_v15 = vpop.f32.mrf.mxu1 }
 0x160   : > { %1755 = vst.msk [vmem:[#allocation2 + $0xc0] sm:$0xff] %vm1732_vm2, %v6736_v7  ;;  %v6746_v14 = vmul.f32 %v6630_v55, %v1371_v52  ;;  %v1370_v1 = vmax.f32 %v1220_v9, 0.0  ;;  %v1235_v2 = vadd.f32 %v5338_v15, %v6595_v36 }
 0x161   : > { %v1229_v50 = vpop.f32.mrf.mxu1 }
 0x162   : > { %1758 = vst.msk [vmem:[#allocation2 + $0xd8] sm:$0xff] %vm1732_vm2, %v6746_v14  ;;  %v6752_v59 = vmul.f32 %v6654_v16, %v1370_v1  ;;  %v1373_v58 = vmax.f32 %v1235_v2, 0.0  ;;  %v1230_v44 = vadd.f32 %v6595_v36, %v1229_v50  ;;  %1947 = vrot.lane.b32.xlu0 %v6659_v10, %s5700_s25  ;;  %1955 = vrot.lane.b32.xlu1 %v1698_v8, %s5700_s25  ;;  %v6764_v16 = vpop.permute.xlu1 %1621  ;;  %v1842_v50 = vld [vmem:[#allocation2 + $0x77] sm:$0xff] }
 0x163   : > { %v5341_v55 = vpop.f32.mrf.mxu1 }
 0x164   : > { %1757 = vst.msk [vmem:[#allocation2 + $0xd0] sm:$0xff] %vm1732_vm2, %v6752_v59  ;;  %v6761_v62 = vmul.f32 %v6647_v13, %v1373_v58  ;;  %v1372_v39 = vmax.f32 %v1230_v44, 0.0  ;;  %v1245_v21 = vadd.f32 %v5341_v55, %v6595_v36  ;;  %v1607_v13 = vpop.permute.xlu0 %1606  ;;  %v1847_v58 = vld [vmem:[#allocation2 + $0x9f] sm:$0xff] }
 0x165   : > { %v1239_v38 = vpop.f32.mrf.mxu1 }
 0x166   : > { %1760 = vst.msk [vmem:[#allocation2 + $0xe8] sm:$0xff] %vm1732_vm2, %v6761_v62  ;;  %v6769_v10 = vmul.f32 %v6678_v20, %v1372_v39  ;;  %v1375_v8 = vmax.f32 %v1245_v21, 0.0  ;;  %v1240_v37 = vadd.f32 %v6595_v36, %v1239_v38  ;;  %1953 = vrot.lane.b32.xlu0 %v6667_v53, %s5700_s25  ;;  %2143 = vrot.lane.b32.xlu1 %v1843_v12, %s5701_s26 }
 0x167   : > { %v5344_v3 = vpop.f32.mrf.mxu1 }
 0x168   : > { %1759 = vst.msk [vmem:[#allocation2 + $0xe0] sm:$0xff] %vm1732_vm2, %v6769_v10  ;;  %v6778_v40 = vmul.f32 %v6670_v57, %v1375_v8  ;;  %v1374_v56 = vmax.f32 %v1240_v37, 0.0  ;;  %v1255_v20 = vadd.f32 %v5344_v3, %v6595_v36  ;;  %v1632_v57 = vpop.permute.xlu1 %1631  ;;  %v1617_v32 = vpop.permute.xlu0 %1616 }
 0x169   : > { %v1249_v63 = vpop.f32.mrf.mxu1 }
 0x16a   : > { %1762 = vst.msk [vmem:[#allocation2 + $0xf8] sm:$0xff] %vm1732_vm2, %v6778_v40  ;;  %v6784_v53 = vmul.f32 %v6698_v60, %v1374_v56  ;;  %v1377_v35 = vmax.f32 %v1255_v20, 0.0  ;;  %v1250_v5 = vadd.f32 %v6595_v36, %v1249_v63  ;;  %2135 = vrot.lane.b32.xlu0 %v1839_v26, %s5701_s26  ;;  %1959 = vrot.lane.b32.xlu1 %v6703_v46, %s5700_s25 }
 0x16b   : > { %v5347_v23 = vpop.f32.mrf.mxu1 }
 0x16c   : > { %1761 = vst.msk [vmem:[#allocation2 + $0xf0] sm:$0xff] %vm1732_vm2, %v6784_v53  ;;  %v6793_v24 = vmul.f32 %v6691_v51, %v1377_v35  ;;  %v1376_v48 = vmax.f32 %v1250_v5, 0.0  ;;  %v1265_v60 = vadd.f32 %v5347_v23, %v6595_v36  ;;  %v1844_v23 = vld [vmem:[#allocation2 + $0x87] sm:$0xff] }
 0x16d   : > { %v1259_v42 = vpop.f32.mrf.mxu1 }
 0x16e   : > { %1764 = vst.msk [vmem:[#allocation2 + $0x108] sm:$0xff] %vm1732_vm2, %v6793_v24  ;;  %v6799_v61 = vmul.f32 %v6725_v33, %v1376_v48  ;;  %v1379_v46 = vmax.f32 %v1265_v60, 0.0  ;;  %v1260_v41 = vadd.f32 %v6595_v36, %v1259_v42  ;;  %1957 = vrot.lane.b32.xlu0 %v6682_v43, %s5700_s25  ;;  %2147 = vrot.lane.b32.xlu1 %v1845_v54, %s5701_s26  ;;  %v1642_v33 = vpop.permute.xlu1 %1641  ;;  %v1849_v48 = vld [vmem:[#allocation2 + $0xaf] sm:$0xff] }
 0x16f   : > { %v5350_v51 = vpop.f32.mrf.mxu1 }
 0x170   : > { %1763 = vst.msk [vmem:[#allocation2 + $0x100] sm:$0xff] %vm1732_vm2, %v6799_v61  ;;  %v6808_v6 = vmul.f32 %v6714_v0, %v1379_v46  ;;  %v1378_v45 = vmax.f32 %v1260_v41, 0.0  ;;  %v1275_v17 = vadd.f32 %v5350_v51, %v6595_v36  ;;  %v1627_v0 = vpop.permute.xlu0 %1626 }
 0x171   : > { %v1269_v34 = vpop.f32.mrf.mxu1 }
 0x172   : > { %1766 = vst.msk [vmem:[#allocation2 + $0x118] sm:$0xff] %vm1732_vm2, %v6808_v6  ;;  %v6813_v28 = vmul.f32 %v1597_v29, %v1378_v45  ;;  %v1381_v43 = vmax.f32 %v1275_v17, 0.0  ;;  %v1270_v52 = vadd.f32 %v6595_v36, %v1269_v34  ;;  %2139 = vrot.lane.b32.xlu0 %v1841_v4, %s5701_s26  ;;  %1963 = vrot.lane.b32.xlu1 %v6719_v22, %s5700_s25 }
 0x173   : > { %v5353_v9 = vpop.f32.mrf.mxu1 }
 0x174   : > { %1765 = vst.msk [vmem:[#allocation2 + $0x110] sm:$0xff] %vm1732_vm2, %v6813_v28  ;;  %v6822_v15 = vmul.f32 %v6741_v31, %v1381_v43  ;;  %v1380_v1 = vmax.f32 %v1270_v52, 0.0  ;;  %v1285_v2 = vadd.f32 %v5353_v9, %v6595_v36  ;;  %v1647_v31 = vpop.permute.xlu1 %1646  ;;  %v1637_v8 = vpop.permute.xlu0 %1636 }
 0x175   : > { %v1279_v29 = vpop.f32.mrf.mxu1 }
 0x176   : > { %1768 = vst.msk [vmem:[#allocation2 + $0x128] sm:$0xff] %vm1732_vm2, %v6822_v15  ;;  %v6827_v44 = vmul.f32 %v1607_v13, %v1380_v1  ;;  %v1383_v22 = vmax.f32 %v1285_v2, 0.0  ;;  %v1280_v55 = vadd.f32 %v6595_v36, %v1279_v29  ;;  %2141 = vrot.lane.b32.xlu0 %v1842_v50, %s5701_s26  ;;  %2151 = vrot.lane.b32.xlu1 %v1847_v58, %s5701_s26  ;;  %v1846_v1 = vld [vmem:[#allocation2 + $0x97] sm:$0xff]  ;;  %v1851_v2 = vld [vmem:[#allocation2 + $0xbf] sm:$0xff] }
 0x177   : > { %v5356_v39 = vpop.f32.mrf.mxu1 }
 0x178   : > { %1767 = vst.msk [vmem:[#allocation2 + $0x120] sm:$0xff] %vm1732_vm2, %v6827_v44  ;;  %v6835_v21 = vmul.f32 %v6764_v16, %v1383_v22  ;;  %v1382_v38 = vmax.f32 %v1280_v55, 0.0  ;;  %v1295_v12 = vadd.f32 %v5356_v39, %v6595_v36  ;;  %v1652_v35 = vpop.permute.xlu1 %1651 }
 0x179   : > { %v1289_v37 = vpop.f32.mrf.mxu1 }
 0x17a   : > { %1770 = vst.msk [vmem:[#allocation2 + $0x138] sm:$0xff] %vm1732_vm2, %v6835_v21  ;;  %v6840_v13 = vmul.f32 %v1617_v32, %v1382_v38  ;;  %v1385_v3 = vmax.f32 %v1295_v12, 0.0  ;;  %v1290_v56 = vadd.f32 %v6595_v36, %v1289_v37  ;;  %1961 = vrot.lane.b32.xlu0 %v6695_v30, %s5700_s25  ;;  %1967 = vrot.lane.b32.xlu1 %v6736_v7, %s5700_s25 }
 0x17b   : > { %v5359_v16 = vpop.f32.mrf.mxu1 }
 0x17c   : > { %1769 = vst.msk [vmem:[#allocation2 + $0x130] sm:$0xff] %vm1732_vm2, %v6840_v13  ;;  %v6849_v20 = vmul.f32 %v1632_v57, %v1385_v3  ;;  %v1384_v63 = vmax.f32 %v1290_v56, 0.0  ;;  %v1305_v26 = vadd.f32 %v5359_v16, %v6595_v36  ;;  %v1662_v57 = vpop.permute.xlu0 %1661 }
 0x17d   : > { %v1299_v5 = vpop.f32.mrf.mxu1 }
 0x17e   : > { %1772 = vst.msk [vmem:[#allocation2 + $0x148] sm:$0xff] %vm1732_vm2, %v6849_v20  ;;  %v6854_v30 = vmul.f32 %v1627_v0, %v1384_v63  ;;  %v1387_v60 = vmax.f32 %v1305_v26, 0.0  ;;  %v1300_v7 = vadd.f32 %v6595_v36, %v1299_v5  ;;  %2145 = vrot.lane.b32.xlu0 %v1844_v23, %s5701_s26  ;;  %2155 = vrot.lane.b32.xlu1 %v1849_v48, %s5701_s26  ;;  %v1853_v5 = vld [vmem:[#allocation2 + $0xcf] sm:$0xff] }
 0x17f   : > { %v5362_v32 = vpop.f32.mrf.mxu1 }
 0x180   : > { %1771 = vst.msk [vmem:[#allocation2 + $0x140] sm:$0xff] %vm1732_vm2, %v6854_v30  ;;  %v6861_v42 = vmul.f32 %v1642_v33, %v1387_v60  ;;  %v1386_v54 = vmax.f32 %v1300_v7, 0.0  ;;  %v1315_v46 = vadd.f32 %v5362_v32, %v6595_v36  ;;  %v1657_v33 = vpop.permute.xlu1 %1656  ;;  %v1667_v0 = vpop.permute.xlu0 %1666  ;;  %v1855_v32 = vld [vmem:[#allocation2 + $0xdf] sm:$0xff] }
 0x181   : > { %v1309_v41 = vpop.f32.mrf.mxu1 }
 0x182   : > { %1774 = vst.msk [vmem:[#allocation2 + $0x158] sm:$0xff] %vm1732_vm2, %v6861_v42  ;;  %v6866_v51 = vmul.f32 %v1637_v8, %v1386_v54  ;;  %v1389_v45 = vmax.f32 %v1315_v46, 0.0  ;;  %v1310_v17 = vadd.f32 %v6595_v36, %v1309_v41  ;;  %1965 = vrot.lane.b32.xlu0 %v6711_v11, %s5700_s25  ;;  %1971 = vrot.lane.b32.xlu1 %v6752_v59, %s5700_s25  ;;  %v1852_v54 = vld [vmem:[#allocation2 + $0xc7] sm:$0xff]  ;;  %v1854_v46 = vld [vmem:[#allocation2 + $0xd7] sm:$0xff]  ;;  %v1859_v41 = vld [vmem:[#allocation2 + $0xff] sm:$0xff] }
 0x183   : > { %v5365_v34 = vpop.f32.mrf.mxu1 }
 0x184   : > { %1773 = vst.msk [vmem:[#allocation2 + $0x150] sm:$0xff] %vm1732_vm2, %v6866_v51  ;;  %v6875_v4 = vmul.f32 %v1652_v35, %v1389_v45  ;;  %v1388_v43 = vmax.f32 %v1310_v17, 0.0  ;;  %v1325_v52 = vadd.f32 %v5365_v34, %v6595_v36  ;;  %v1677_v39 = vpop.permute.xlu1 %1676  ;;  %v1672_v37 = vpop.permute.xlu0 %1671  ;;  %v1848_v35 = vld [vmem:[#allocation2 + $0xa7] sm:$0xff]  ;;  %v1861_v17 = vld [vmem:[#allocation2 + $0x10f] sm:$0xff] }
 0x185   : > { %v1319_v9 = vpop.f32.mrf.mxu1  ;;  %v1856_v45 = vld [vmem:[#allocation2 + $0xe7] sm:$0xff] }
 0x186   : > { %1776 = vst.msk [vmem:[#allocation2 + $0x168] sm:$0xff] %vm1732_vm2, %v6875_v4  ;;  %v6880_v11 = vmul.f32 %v1647_v31, %v1388_v43  ;;  %v1391_v59 = vmax.f32 %v1325_v52, 0.0  ;;  %v1320_v29 = vadd.f32 %v6595_v36, %v1319_v9  ;;  %2149 = vrot.lane.b32.xlu0 %v1846_v1, %s5701_s26  ;;  %2159 = vrot.lane.b32.xlu1 %v1851_v2, %s5701_s26  ;;  %v1786_v9 = vld [vmem:[#allocation2 + $0x39] sm:$0xff] }
 0x187   : > { %v5368_v50 = vpop.f32.mrf.mxu1 }
 0x188   : > { %1775 = vst.msk [vmem:[#allocation2 + $0x160] sm:$0xff] %vm1732_vm2, %v6880_v11  ;;  %v6887_v58 = vmul.f32 %v1662_v57, %v1391_v59  ;;  %v1390_v22 = vmax.f32 %v1320_v29, 0.0  ;;  %v1335_v55 = vadd.f32 %v5368_v50, %v6595_v36  ;;  %v1682_v48 = vpop.permute.xlu1 %1681 }
 0x189   : > { %v1329_v38 = vpop.f32.mrf.mxu1 }
 0x18a   : > { %1778 = vst.msk [vmem:[#allocation2 + $0x178] sm:$0xff] %vm1732_vm2, %v6887_v58  ;;  %v6892_v31 = vmul.f32 %v1657_v33, %v1390_v22  ;;  %v1393_v12 = vmax.f32 %v1335_v55, 0.0  ;;  %v1330_v8 = vadd.f32 %v6595_v36, %v1329_v38  ;;  %1969 = vrot.lane.b32.xlu0 %v6730_v47, %s5700_s25  ;;  %1975 = vrot.lane.b32.xlu1 %v6769_v10, %s5700_s25  ;;  %v1863_v22 = vld [vmem:[#allocation2 + $0x11f] sm:$0xff]  ;;  %v1788_v38 = vld [vmem:[#allocation2 + $0x49] sm:$0xff] }
 0x18b   : > { %v5371_v3 = vpop.f32.mrf.mxu1 }
 0x18c   : > { %1777 = vst.msk [vmem:[#allocation2 + $0x170] sm:$0xff] %vm1732_vm2, %v6892_v31  ;;  %v6901_v56 = vmul.f32 %v1672_v37, %v1393_v12  ;;  %v1392_v16 = vmax.f32 %v1330_v8, 0.0  ;;  %v1345_v63 = vadd.f32 %v5371_v3, %v6595_v36 }
 0x18d   : > { %v1339_v26 = vpop.f32.mrf.mxu1 }
 0x18e   : > { %1780 = vst.msk [vmem:[#allocation2 + $0x188] sm:$0xff] %vm1732_vm2, %v6901_v56  ;;  %v6906_v47 = vmul.f32 %v1667_v0, %v1392_v16  ;;  %v1395_v23 = vmax.f32 %v1345_v63, 0.0  ;;  %v1340_v10 = vadd.f32 %v6595_v36, %v1339_v26  ;;  %2153 = vrot.lane.b32.xlu0 %v1848_v35, %s5701_s26  ;;  %2163 = vrot.lane.b32.xlu1 %v1853_v5, %s5701_s26  ;;  %v1850_v36 = vld [vmem:[#allocation2 + $0xb7] sm:$0xff]  ;;  %v1865_v5 = vld [vmem:[#allocation2 + $0x12f] sm:$0xff] }
 0x18f   : > { %v1858_v0 = vld [vmem:[#allocation2 + $0xf7] sm:$0xff] }
 0x190   : > { %1779 = vst.msk [vmem:[#allocation2 + $0x180] sm:$0xff] %vm1732_vm2, %v6906_v47  ;;  %v6913_v60 = vmul.f32 %v1682_v48, %v1395_v23  ;;  %v1394_v7 = vmax.f32 %v1340_v10, 0.0  ;;  %v1862_v35 = vld [vmem:[#allocation2 + $0x117] sm:$0xff] }
 0x191   : > { %v1790_v23 = vld [vmem:[#allocation2 + $0x59] sm:$0xff] }
 0x192   : > { %1782 = vst.msk [vmem:[#allocation2 + $0x198] sm:$0xff] %vm1732_vm2, %v6913_v60  ;;  %v6917_v57 = vmul.f32 %v1677_v39, %v1394_v7  ;;  %1973 = vrot.lane.b32.xlu0 %v6746_v14, %s5700_s25  ;;  %1979 = vrot.lane.b32.xlu1 %v6784_v53, %s5700_s25  ;;  %v1857_v14 = vld [vmem:[#allocation2 + $0xef] sm:$0xff]  ;;  %v6937_v53 = vpop.permute.xlu1 %2798  ;;  %v1860_v39 = vld [vmem:[#allocation2 + $0x107] sm:$0xff] }
 0x194   : > { %1781 = vst.msk [vmem:[#allocation2 + $0x190] sm:$0xff] %vm1732_vm2, %v6917_v57 }
 0x196   : > { %2157 = vrot.lane.b32.xlu0 %v1850_v36, %s5701_s26  ;;  %2167 = vrot.lane.b32.xlu1 %v1855_v32, %s5701_s26 }
 0x19a   : > { %1977 = vrot.lane.b32.xlu0 %v6761_v62, %s5700_s25  ;;  %1983 = vrot.lane.b32.xlu1 %v6799_v61, %s5700_s25 }
 0x19e   : > { %2161 = vrot.lane.b32.xlu0 %v1852_v54, %s5701_s26  ;;  %2171 = vrot.lane.b32.xlu1 %v1857_v14, %s5701_s26  ;;  %v1864_v54 = vld [vmem:[#allocation2 + $0x127] sm:$0xff] }
 0x19f   : > { %v1792_v14 = vld [vmem:[#allocation2 + $0x69] sm:$0xff] }
 0x1a2   : > { %1981 = vrot.lane.b32.xlu0 %v6778_v40, %s5700_s25  ;;  %1987 = vrot.lane.b32.xlu1 %v6813_v28, %s5700_s25 }
 0x1a6   : > { %2165 = vrot.lane.b32.xlu0 %v1854_v46, %s5701_s26  ;;  %2175 = vrot.lane.b32.xlu1 %v1859_v41, %s5701_s26 }
 0x1a8   : > { %v1930_v62 = vpop.permute.xlu1 %1929 }
 0x1aa   : > { %1985 = vrot.lane.b32.xlu0 %v6793_v24, %s5700_s25  ;;  %1991 = vrot.lane.b32.xlu1 %v6827_v44, %s5700_s25  ;;  %v1783_v24 = vld [vmem:[#allocation2 + $0x21] sm:$0xff] }
 0x1ac   : > { %v1934_v61 = vpop.permute.xlu0 %1933  ;;  %v1928_v40 = vpop.permute.xlu1 %1927 }
 0x1ad   : > { %v2263_v34 = vsel %vm1732_vm2, %v1783_v24, %v1928_v40  ;;  %v2266_v1 = vsel %vm1732_vm2, %v1786_v9, %v1934_v61  ;;  %v1866_v40 = vld [vmem:[#allocation2 + $0x137] sm:$0xff] }
 0x1ae   : > { %2169 = vrot.lane.b32.xlu0 %v1856_v45, %s5701_s26  ;;  %2179 = vrot.lane.b32.xlu1 %v1861_v17, %s5701_s26  ;;  %v1867_v45 = vld [vmem:[#allocation2 + $0x13f] sm:$0xff]  ;;  %v1789_v17 = vld [vmem:[#allocation2 + $0x51] sm:$0xff] }
 0x1b0   : > { %v1938_v28 = vpop.permute.xlu0 %1937  ;;  %v1932_v33 = vpop.permute.xlu1 %1931 }
 0x1b1   : > { %v2268_v12 = vsel %vm1732_vm2, %v1788_v38, %v1938_v28 }
 0x1b2   : > { %1989 = vrot.lane.b32.xlu0 %v6808_v6, %s5700_s25  ;;  %1995 = vrot.lane.b32.xlu1 %v6840_v13, %s5700_s25  ;;  %v1784_v6 = vld [vmem:[#allocation2 + $0x29] sm:$0xff] }
 0x1b3   : > { %v2264_v13 = vsel %vm1732_vm2, %v1784_v6, %v1930_v62 }
 0x1b4   : > { %v1936_v44 = vpop.permute.xlu0 %1935  ;;  %v2120_v43 = vpop.permute.xlu1 %2119 }
 0x1b5   : > { %v6953_v52 = vsel %vm703_vm0, %v2263_v34, %v2120_v43  ;;  %v1868_v34 = vld [vmem:[#allocation2 + $0x147] sm:$0xff] }
 0x1b6   : > { %2366 = vst.msk [vmem:[#allocation3 + $0x20] sm:$0xff] %vm2359_vm1, %v6953_v52  ;;  %2173 = vrot.lane.b32.xlu0 %v1858_v0, %s5701_s26  ;;  %2001 = vrot.lane.b32.xlu1 %v6849_v20, %s5700_s25  ;;  %v1795_v0 = vld [vmem:[#allocation2 + $0x81] sm:$0xff] }
 0x1b8   : > { %v2122_v2 = vpop.permute.xlu0 %2121  ;;  %v2126_v59 = vpop.permute.xlu1 %2125 }
 0x1b9   : > { %v6963_v29 = vsel %vm703_vm0, %v2264_v13, %v2122_v2  ;;  %v6966_v50 = vsel %vm703_vm0, %v2266_v1, %v2126_v59  ;;  %v1869_v2 = vld [vmem:[#allocation2 + $0x14f] sm:$0xff] }
 0x1ba   : > { %2367 = vst.msk [vmem:[#allocation3 + $0x28] sm:$0xff] %vm2359_vm1, %v6963_v29  ;;  %2369 = vst.msk [vmem:[#allocation3 + $0x38] sm:$0xff] %vm2359_vm1, %v6966_v50  ;;  %1993 = vrot.lane.b32.xlu0 %v6822_v15, %s5700_s25  ;;  %2183 = vrot.lane.b32.xlu1 %v1863_v22, %s5701_s26  ;;  %v1785_v15 = vld [vmem:[#allocation2 + $0x31] sm:$0xff] }
 0x1bc   : > { %v1942_v20 = vpop.permute.xlu0 %1941  ;;  %v1946_v55 = vpop.permute.xlu1 %1945 }
 0x1bd   : > { %v2270_v10 = vsel %vm1732_vm2, %v1790_v23, %v1942_v20  ;;  %v2272_v46 = vsel %vm1732_vm2, %v1792_v14, %v1946_v55  ;;  %v1870_v20 = vld [vmem:[#allocation2 + $0x157] sm:$0xff]  ;;  %v2957_v14 = vld [vmem:[%s8469_s7 + $0x40] sm:$0xff] }
 0x1be   : > { %2177 = vrot.lane.b32.xlu0 %v1860_v39, %s5701_s26  ;;  %1999 = vrot.lane.b32.xlu1 %v6854_v30, %s5700_s25  ;;  %v2265_v30 = vsel %vm1732_vm2, %v1785_v15, %v1932_v33 }
 0x1bf   : > { %5372 = vmatprep.subr.mxu0 %v2957_v14 }
 0x1c0   : > { %v1940_v8 = vpop.permute.xlu0 %1939  ;;  %v2130_v37 = vpop.permute.xlu1 %2129  ;;  %5373 = vmatpush3.msra.mxu0 %v2957_v14 }
 0x1c1   : > { %v6980_v3 = vsel %vm703_vm0, %v2268_v12, %v2130_v37 }
 0x1c2   : > { %2371 = vst.msk [vmem:[#allocation3 + $0x48] sm:$0xff] %vm2359_vm1, %v6980_v3  ;;  %1997 = vrot.lane.b32.xlu0 %v6835_v21, %s5700_s25  ;;  %2005 = vrot.lane.b32.xlu1 %v6861_v42, %s5700_s25  ;;  %v1787_v21 = vld [vmem:[#allocation2 + $0x41] sm:$0xff] }
 0x1c3   : > { %v2267_v42 = vsel %vm1732_vm2, %v1787_v21, %v1936_v44 }
 0x1c4   : > { %v2124_v16 = vpop.permute.xlu0 %2123  ;;  %v1944_v63 = vpop.permute.xlu1 %1943 }
 0x1c5   : > { %v6990_v26 = vsel %vm703_vm0, %v2265_v30, %v2124_v16  ;;  %v1878_v16 = vld [vmem:[#allocation2 + $0x197] sm:$0xff] }
 0x1c6   : > { %2368 = vst.msk [vmem:[#allocation3 + $0x30] sm:$0xff] %vm2359_vm1, %v6990_v26  ;;  %2181 = vrot.lane.b32.xlu0 %v1862_v35, %s5701_s26  ;;  %2187 = vrot.lane.b32.xlu1 %v1865_v5, %s5701_s26  ;;  %v1799_v35 = vld [vmem:[#allocation2 + $0xa1] sm:$0xff] }
 0x1c8   : > { %v2128_v48 = vpop.permute.xlu0 %2127  ;;  %v2134_v7 = vpop.permute.xlu1 %2133 }
 0x1c9   : > { %v6999_v36 = vsel %vm703_vm0, %v2267_v42, %v2128_v48  ;;  %v7002_v32 = vsel %vm703_vm0, %v2270_v10, %v2134_v7  ;;  %v1872_v48 = vld [vmem:[#allocation2 + $0x167] sm:$0xff] }
 0x1ca   : > { %2370 = vst.msk [vmem:[#allocation3 + $0x40] sm:$0xff] %vm2359_vm1, %v6999_v36  ;;  %2373 = vst.msk [vmem:[#allocation3 + $0x58] sm:$0xff] %vm2359_vm1, %v7002_v32  ;;  %2185 = vrot.lane.b32.xlu0 %v1864_v54, %s5701_s26  ;;  %2009 = vrot.lane.b32.xlu1 %v6875_v4, %s5700_s25  ;;  %v2269_v4 = vsel %vm1732_vm2, %v1789_v17, %v1940_v8 }
 0x1cc   : > { %v1950_v41 = vpop.permute.xlu0 %1949  ;;  %v2138_v62 = vpop.permute.xlu1 %2137 }
 0x1cd   : > { %v7013_v61 = vsel %vm703_vm0, %v2272_v46, %v2138_v62  ;;  %v2956_v46 = vld [vmem:[%s8469_s7 + $0x38] sm:$0xff] }
 0x1ce   : > { %2375 = vst.msk [vmem:[#allocation3 + $0x68] sm:$0xff] %vm2359_vm1, %v7013_v61  ;;  %2189 = vrot.lane.b32.xlu0 %v1866_v40, %s5701_s26  ;;  %2191 = vrot.lane.b32.xlu1 %v1867_v45, %s5701_s26 }
 0x1cf   : > { %5374 = vmatprep.subr.mxu0 %v2956_v46 }
 0x1d0   : > { %v2132_v28 = vpop.permute.xlu0 %2131  ;;  %v1952_v33 = vpop.permute.xlu1 %1951  ;;  %5375 = vmatpush3.msra.mxu0 %v2956_v46 }
 0x1d1   : > { %v7021_v24 = vsel %vm703_vm0, %v2269_v4, %v2132_v28  ;;  %v2275_v6 = vsel %vm1732_vm2, %v1795_v0, %v1952_v33  ;;  %v1873_v28 = vld [vmem:[#allocation2 + $0x16f] sm:$0xff]  ;;  %v2953_v0 = vld [vmem:[%s8469_s7 + $0x20] sm:$0xff] }
 0x1d2   : > { %2372 = vst.msk [vmem:[#allocation3 + $0x50] sm:$0xff] %vm2359_vm1, %v7021_v24  ;;  %2003 = vrot.lane.b32.xlu0 %v6866_v51, %s5700_s25  ;;  %2193 = vrot.lane.b32.xlu1 %v1868_v34, %s5701_s26  ;;  %v1791_v51 = vld [vmem:[#allocation2 + $0x61] sm:$0xff] }
 0x1d3   : > { %v2954_v33 = vld [vmem:[%s8469_s7 + $0x28] sm:$0xff] }
 0x1d4   : > { %v1948_v44 = vpop.permute.xlu0 %1947  ;;  %v1956_v43 = vpop.permute.xlu1 %1955 }
 0x1d6   : > { %2007 = vrot.lane.b32.xlu0 %v6880_v11, %s5700_s25  ;;  %2013 = vrot.lane.b32.xlu1 %v6887_v58, %s5700_s25  ;;  %v2271_v11 = vsel %vm1732_vm2, %v1791_v51, %v1944_v63  ;;  %v1871_v63 = vld [vmem:[#allocation2 + $0x15f] sm:$0xff] }
 0x1d8   : > { %v1954_v9 = vpop.permute.xlu0 %1953  ;;  %v2144_v13 = vpop.permute.xlu1 %2143 }
 0x1d9   : > { %v7034_v1 = vsel %vm703_vm0, %v2275_v6, %v2144_v13  ;;  %v1803_v6 = vld [vmem:[#allocation2 + $0xc1] sm:$0xff] }
 0x1da   : > { %2378 = vst.msk [vmem:[#allocation3 + $0x80] sm:$0xff] %vm2359_vm1, %v7034_v1  ;;  %2011 = vrot.lane.b32.xlu0 %v6892_v31, %s5700_s25  ;;  %2195 = vrot.lane.b32.xlu1 %v1869_v2, %s5701_s26  ;;  %v1797_v31 = vld [vmem:[#allocation2 + $0x91] sm:$0xff] }
 0x1db   : > { %v2277_v55 = vsel %vm1732_vm2, %v1797_v31, %v1956_v43  ;;  %v1874_v43 = vld [vmem:[#allocation2 + $0x177] sm:$0xff] }
 0x1dc   : > { %v2136_v58 = vpop.permute.xlu0 %2135  ;;  %v1960_v59 = vpop.permute.xlu1 %1959 }
 0x1dd   : > { %v7043_v22 = vsel %vm703_vm0, %v2271_v11, %v2136_v58  ;;  %v2279_v5 = vsel %vm1732_vm2, %v1799_v35, %v1960_v59  ;;  %v2952_v11 = vld [vmem:[%s8469_s7 + $0x18] sm:$0xff]  ;;  %v1877_v35 = vld [vmem:[#allocation2 + $0x18f] sm:$0xff] }
 0x1de   : > { %2374 = vst.msk [vmem:[#allocation3 + $0x60] sm:$0xff] %vm2359_vm1, %v7043_v22  ;;  %2015 = vrot.lane.b32.xlu0 %v6906_v47, %s5700_s25  ;;  %2197 = vrot.lane.b32.xlu1 %v1870_v20, %s5701_s26  ;;  %v1793_v47 = vld [vmem:[#allocation2 + $0x71] sm:$0xff]  ;;  %v1875_v59 = vld [vmem:[#allocation2 + $0x17f] sm:$0xff] }
 0x1df   : > { %v2273_v8 = vsel %vm1732_vm2, %v1793_v47, %v1948_v44  ;;  %v2951_v20 = vld [vmem:[%s8469_s7 + $0x10] sm:$0xff] }
 0x1e0   : > { %v7051_v39 = vpop.permute.xlu0 %1957  ;;  %v2148_v38 = vpop.permute.xlu1 %2147  ;;  %v1805_v47 = vld [vmem:[#allocation2 + $0xd1] sm:$0xff] }
 0x1e1   : > { %v7054_v12 = vsel %vm703_vm0, %v2277_v55, %v2148_v38  ;;  %v2950_v38 = vld [vmem:[%s8469_s7 + $0x8] sm:$0xff] }
 0x1e2   : > { %2380 = vst.msk [vmem:[#allocation3 + $0x90] sm:$0xff] %vm2359_vm1, %v7054_v12  ;;  %2019 = vrot.lane.b32.xlu0 %v6917_v57, %s5700_s25  ;;  %2017 = vrot.lane.b32.xlu1 %v6901_v56, %s5700_s25  ;;  %v1794_v57 = vld [vmem:[#allocation2 + $0x79] sm:$0xff] }
 0x1e3   : > { %v2274_v56 = vsel %vm1732_vm2, %v1794_v57, %v1950_v41  ;;  %v1796_v41 = vld [vmem:[#allocation2 + $0x89] sm:$0xff] }
 0x1e4   : > { %v2140_v37 = vpop.permute.xlu0 %2139  ;;  %v1964_v15 = vpop.permute.xlu1 %1963  ;;  %v2276_v62 = vsel %vm1732_vm2, %v1796_v41, %v1954_v9 }
 0x1e5   : > { %v7064_v30 = vsel %vm703_vm0, %v2273_v8, %v2140_v37 }
 0x1e6   : > { %2376 = vst.msk [vmem:[#allocation3 + $0x70] sm:$0xff] %vm2359_vm1, %v7064_v30  ;;  %2213 = vrot.lane.b32.xlu0 %v1878_v16, %s5701_s26  ;;  %2199 = vrot.lane.b32.xlu1 %v1871_v63, %s5701_s26  ;;  %v2949_v63 = vld [vmem:[%s8469_s7] sm:$0xff] }
 0x1e8   : > { %v2142_v21 = vpop.permute.xlu0 %2141  ;;  %v2152_v23 = vpop.permute.xlu1 %2151 }
 0x1e9   : > { %v7073_v42 = vsel %vm703_vm0, %v2274_v56, %v2142_v21  ;;  %v7076_v10 = vsel %vm703_vm0, %v2279_v5, %v2152_v23  ;;  %v7171_v21 = vld [vmem:[#allocation3 + $0x38] sm:$0xff]  ;;  %v1802_v23 = vld [vmem:[#allocation2 + $0xb9] sm:$0xff] }
 0x1ea   : > { %2377 = vst.msk [vmem:[#allocation3 + $0x78] sm:$0xff] %vm2359_vm1, %v7073_v42  ;;  %2382 = vst.msk [vmem:[#allocation3 + $0xa0] sm:$0xff] %vm2359_vm1, %v7076_v10  ;;  %2201 = vrot.lane.b32.xlu1 %v1872_v48, %s5701_s26  ;;  %2516 = vrot.lane.b32.xlu0 %v6953_v52, %s8497_s30  ;;  %v1801_v52 = vld [vmem:[#allocation2 + $0xb1] sm:$0xff]  ;;  %v1807_v48 = vld [vmem:[#allocation2 + $0xe1] sm:$0xff] }
 0x1eb   : > { %v2281_v40 = vsel %vm1732_vm2, %v1801_v52, %v1964_v15  ;;  %v7185_v52 = vld [vmem:[#allocation3 + $0x48] sm:$0xff] }
 0x1ec   : > { %v7085_v7 = vpop.permute.xlu0 %1961  ;;  %v1968_v54 = vpop.permute.xlu1 %1967 }
 0x1ed   : > { %v2283_v13 = vsel %vm1732_vm2, %v1803_v6, %v1968_v54 }
 0x1ee   : > { %2021 = vrot.lane.b32.xlu1 %v6913_v60, %s5700_s25  ;;  %2518 = vrot.lane.b32.xlu0 %v6963_v29, %s8497_s30  ;;  %v2955_v60 = vld [vmem:[%s8469_s7 + $0x30] sm:$0xff] }
 0x1ef   : > { %5376 = vmatprep.subr.mxu0 %v2955_v60 }
 0x1f0   : > { %v2146_v45 = vpop.permute.xlu0 %2145  ;;  %v2156_v17 = vpop.permute.xlu1 %2155  ;;  %5377 = vmatpush3.msra.mxu0 %v2955_v60  ;;  %v1809_v60 = vld [vmem:[#allocation2 + $0xf1] sm:$0xff] }
 0x1f1   : > { %v7103_v29 = vsel %vm703_vm0, %v2276_v62, %v2146_v45  ;;  %v7106_v4 = vsel %vm703_vm0, %v2281_v40, %v2156_v17  ;;  %5378 = vmatprep.subr.mxu0 %v2954_v33  ;;  %v7187_v62 = vld [vmem:[#allocation3 + $0x40] sm:$0xff]  ;;  %v7197_v45 = vld [vmem:[#allocation3 + $0x58] sm:$0xff] }
 0x1f2   : > { %2379 = vst.msk [vmem:[#allocation3 + $0x88] sm:$0xff] %vm2359_vm1, %v7103_v29  ;;  %2384 = vst.msk [vmem:[#allocation3 + $0xb0] sm:$0xff] %vm2359_vm1, %v7106_v4  ;;  %2203 = vrot.lane.b32.xlu1 %v1873_v28, %s5701_s26  ;;  %2520 = vrot.lane.b32.xlu0 %v6990_v26, %s8497_s30  ;;  %v1798_v26 = vld [vmem:[#allocation2 + $0x99] sm:$0xff]  ;;  %v1804_v17 = vld [vmem:[#allocation2 + $0xc9] sm:$0xff] }
 0x1f3   : > { %5379 = vmatpush3.msra.mxu0 %v2954_v33  ;;  %v2278_v9 = vsel %vm1732_vm2, %v1798_v26, %v7051_v39  ;;  %v1876_v39 = vld [vmem:[#allocation2 + $0x187] sm:$0xff] }
 0x1f4   : > { %v1966_v34 = vpop.permute.xlu0 %1965  ;;  %v1972_v44 = vpop.permute.xlu1 %1971  ;;  %5380 = vmatprep.subr.mxu0 %v2953_v0  ;;  %v7211_v26 = vld [vmem:[#allocation3 + $0x68] sm:$0xff] }
 0x1f5   : > { %5381 = vmatpush3.msra.mxu0 %v2953_v0  ;;  %v2285_v37 = vsel %vm1732_vm2, %v1805_v47, %v1972_v44 }
 0x1f6   : > { %2205 = vrot.lane.b32.xlu1 %v1874_v43, %s5701_s26  ;;  %2522 = vrot.lane.b32.xlu0 %v6966_v50, %s8497_s30 }
 0x1f7   : > { %5382 = vmatprep.subr.mxu0 %v2952_v11 }
 0x1f8   : > { %v2150_v2 = vpop.permute.xlu0 %2149  ;;  %v2160_v51 = vpop.permute.xlu1 %2159  ;;  %5383 = vmatpush3.msra.mxu0 %v2952_v11 }
 0x1f9   : > { %v7131_v58 = vsel %vm703_vm0, %v2278_v9, %v2150_v2  ;;  %v7134_v50 = vsel %vm703_vm0, %v2283_v13, %v2160_v51  ;;  %5384 = vmatprep.subr.mxu0 %v2951_v20  ;;  %v7221_v9 = vld [vmem:[#allocation3 + $0x50] sm:$0xff]  ;;  %v1806_v13 = vld [vmem:[#allocation2 + $0xd9] sm:$0xff] }
 0x1fa   : > { %2381 = vst.msk [vmem:[#allocation3 + $0x98] sm:$0xff] %vm2359_vm1, %v7131_v58  ;;  %2386 = vst.msk [vmem:[#allocation3 + $0xc0] sm:$0xff] %vm2359_vm1, %v7134_v50  ;;  %2207 = vrot.lane.b32.xlu1 %v1875_v59, %s5701_s26  ;;  %2524 = vrot.lane.b32.xlu0 %v6999_v36, %s8497_s30  ;;  %v1800_v36 = vld [vmem:[#allocation2 + $0xa9] sm:$0xff]  ;;  %v1811_v2 = vld [vmem:[#allocation2 + $0x101] sm:$0xff] }
 0x1fb   : > { %5385 = vmatpush3.msra.mxu0 %v2951_v20  ;;  %v2280_v8 = vsel %vm1732_vm2, %v1800_v36, %v7085_v7  ;;  %v2282_v7 = vsel %vm1732_vm2, %v1802_v23, %v1966_v34  ;;  %v1813_v36 = vld [vmem:[#allocation2 + $0x111] sm:$0xff] }
 0x1fc   : > { %v1970_v31 = vpop.permute.xlu0 %1969  ;;  %v1976_v55 = vpop.permute.xlu1 %1975  ;;  %5386 = vmatprep.subr.mxu0 %v2950_v38 }
 0x1fd   : > { %5387 = vmatpush3.msra.mxu0 %v2950_v38  ;;  %v2287_v54 = vsel %vm1732_vm2, %v1807_v48, %v1976_v55  ;;  %v2284_v28 = vsel %vm1732_vm2, %v1804_v17, %v1970_v31  ;;  %v7235_v55 = vld [vmem:[#allocation3 + $0x78] sm:$0xff] }
 0x1fe   : > { %2209 = vrot.lane.b32.xlu1 %v1876_v39, %s5701_s26  ;;  %2526 = vrot.lane.b32.xlu0 %v6980_v3, %s8497_s30  ;;  %v1808_v38 = vld [vmem:[#allocation2 + $0xe9] sm:$0xff] }
 0x1ff   : > { %5388 = vmatprep.subr.mxu0 %v2949_v63  ;;  %v1812_v17 = vld [vmem:[#allocation2 + $0x109] sm:$0xff] }
 0x200   : > { %v2154_v15 = vpop.permute.xlu0 %2153  ;;  %v2164_v16 = vpop.permute.xlu1 %2163  ;;  %5389 = vmatpush3.msra.mxu0 %v2949_v63  ;;  %v7257_v63 = vld [vmem:[#allocation3 + $0x88] sm:$0xff] }
 0x201   : > { %v7159_v57 = vsel %vm703_vm0, %v2280_v8, %v2154_v15  ;;  %v7162_v3 = vsel %vm703_vm0, %v2285_v37, %v2164_v16 }
 0x202   : > { %2383 = vst.msk [vmem:[#allocation3 + $0xa8] sm:$0xff] %vm2359_vm1, %v7159_v57  ;;  %2388 = vst.msk [vmem:[#allocation3 + $0xd0] sm:$0xff] %vm2359_vm1, %v7162_v3  ;;  %2211 = vrot.lane.b32.xlu1 %v1877_v35, %s5701_s26  ;;  %2528 = vrot.lane.b32.xlu0 %v7021_v24, %s8497_s30  ;;  %s8414_s26 = scalar_lea.hbm %s8477_s15, %s5569_s20 }
 0x204   : > { %v1974_v56 = vpop.permute.xlu0 %1973  ;;  %v1980_v5 = vpop.permute.xlu1 %1979 }
 0x205   : > { %v2289_v33 = vsel %vm1732_vm2, %v1809_v60, %v1980_v5  ;;  %v2286_v51 = vsel %vm1732_vm2, %v1806_v13, %v1974_v56  ;;  %v1810_v56 = vld [vmem:[#allocation2 + $0xf9] sm:$0xff]  ;;  %v1817_v13 = vld [vmem:[#allocation2 + $0x131] sm:$0xff] }
 0x206   : > { %2708 = vrot.lane.b32.xlu1 %v7171_v21, %s5699_s24  ;;  %2530 = vrot.lane.b32.xlu0 %v7002_v32, %s8497_s30 }
 0x208   : > { %v2158_v14 = vpop.permute.xlu0 %2157  ;;  %v2168_v24 = vpop.permute.xlu1 %2167 }
 0x209   : > { %v7180_v46 = vsel %vm703_vm0, %v2282_v7, %v2158_v14  ;;  %v7183_v41 = vsel %vm703_vm0, %v2287_v54, %v2168_v24  ;;  %v7279_v54 = vld [vmem:[#allocation3 + $0x90] sm:$0xff] }
 0x20a   : > { %2385 = vst.msk [vmem:[#allocation3 + $0xb8] sm:$0xff] %vm2359_vm1, %v7180_v46  ;;  %2390 = vst.msk [vmem:[#allocation3 + $0xe0] sm:$0xff] %vm2359_vm1, %v7183_v41  ;;  %2712 = vrot.lane.b32.xlu1 %v7185_v52, %s5699_s24  ;;  %2710 = vrot.lane.b32.xlu0 %v7187_v62, %s5699_s24  ;;  %v7281_v14 = vld [vmem:[#allocation3 + $0x70] sm:$0xff] }
 0x20c   : > { %v1978_v32 = vpop.permute.xlu0 %1977  ;;  %v1984_v40 = vpop.permute.xlu1 %1983 }
 0x20d   : > { %v2291_v11 = vsel %vm1732_vm2, %v1811_v2, %v1984_v40  ;;  %v2288_v47 = vsel %vm1732_vm2, %v1808_v38, %v1978_v32 }
 0x20e   : > { %2716 = vrot.lane.b32.xlu1 %v7197_v45, %s5699_s24  ;;  %2532 = vrot.lane.b32.xlu0 %v7043_v22, %s8497_s30 }
 0x210   : > { %v2162_v34 = vpop.permute.xlu0 %2161  ;;  %v2172_v44 = vpop.permute.xlu1 %2171 }
 0x211   : > { %v7206_v43 = vsel %vm703_vm0, %v2284_v28, %v2162_v34  ;;  %v7209_v0 = vsel %vm703_vm0, %v2289_v33, %v2172_v44  ;;  %v7303_v44 = vld [vmem:[#allocation3 + $0xa0] sm:$0xff] }
 0x212   : > { %2387 = vst.msk [vmem:[#allocation3 + $0xc8] sm:$0xff] %vm2359_vm1, %v7206_v43  ;;  %2392 = vst.msk [vmem:[#allocation3 + $0xf0] sm:$0xff] %vm2359_vm1, %v7209_v0  ;;  %2720 = vrot.lane.b32.xlu1 %v7211_v26, %s5699_s24  ;;  %2534 = vrot.lane.b32.xlu0 %v7013_v61, %s8497_s30 }
 0x214   : > { %v1982_v22 = vpop.permute.xlu0 %1981  ;;  %v1988_v6 = vpop.permute.xlu1 %1987 }
 0x215   : > { %v2293_v8 = vsel %vm1732_vm2, %v1813_v36, %v1988_v6  ;;  %v2290_v5 = vsel %vm1732_vm2, %v1810_v56, %v1982_v22  ;;  %v7305_v22 = vld [vmem:[#allocation3 + $0x80] sm:$0xff] }
 0x216   : > { %2542 = vrot.lane.b32.xlu1 %v7103_v29, %s8497_s30  ;;  %2714 = vrot.lane.b32.xlu0 %v7221_v9, %s5699_s24  ;;  %v1814_v6 = vld [vmem:[#allocation2 + $0x119] sm:$0xff] }
 0x218   : > { %v2166_v59 = vpop.permute.xlu0 %2165  ;;  %v2176_v20 = vpop.permute.xlu1 %2175 }
 0x219   : > { %v7230_v61 = vsel %vm703_vm0, %v2286_v51, %v2166_v59  ;;  %v7233_v31 = vsel %vm703_vm0, %v2291_v11, %v2176_v20 }
 0x21a   : > { %2389 = vst.msk [vmem:[#allocation3 + $0xd8] sm:$0xff] %vm2359_vm1, %v7230_v61  ;;  %2394 = vst.msk [vmem:[#allocation3 + $0x100] sm:$0xff] %vm2359_vm1, %v7233_v31  ;;  %2724 = vrot.lane.b32.xlu1 %v7235_v55, %s5699_s24  ;;  %2536 = vrot.lane.b32.xlu0 %v7064_v30, %s8497_s30 }
 0x21c   : > { %v1986_v29 = vpop.permute.xlu0 %1985  ;;  %v1992_v39 = vpop.permute.xlu1 %1991 }
 0x21d   : > { %v2292_v60 = vsel %vm1732_vm2, %v1812_v17, %v1986_v29 }
 0x21e   : > { %2546 = vrot.lane.b32.xlu1 %v7131_v58, %s8497_s30  ;;  %2538 = vrot.lane.b32.xlu0 %v7073_v42, %s8497_s30  ;;  %v7259_v58 = vld [vmem:[#allocation3 + $0x60] sm:$0xff] }
 0x220   : > { %v2170_v37 = vpop.permute.xlu0 %2169  ;;  %v2180_v15 = vpop.permute.xlu1 %2179 }
 0x221   : > { %v7252_v16 = vsel %vm703_vm0, %v2288_v47, %v2170_v37  ;;  %v7255_v30 = vsel %vm703_vm0, %v2293_v8, %v2180_v15  ;;  %v1819_v37 = vld [vmem:[#allocation2 + $0x141] sm:$0xff]  ;;  %v1818_v15 = vld [vmem:[#allocation2 + $0x139] sm:$0xff] }
 0x222   : > { %2391 = vst.msk [vmem:[#allocation3 + $0xe8] sm:$0xff] %vm2359_vm1, %v7252_v16  ;;  %2396 = vst.msk [vmem:[#allocation3 + $0x110] sm:$0xff] %vm2359_vm1, %v7255_v30  ;;  %2728 = vrot.lane.b32.xlu1 %v7257_v63, %s5699_s24  ;;  %2718 = vrot.lane.b32.xlu0 %v7259_v58, %s5699_s24 }
 0x224   : > { %v1990_v42 = vpop.permute.xlu0 %1989  ;;  %v1996_v35 = vpop.permute.xlu1 %1995 }
 0x225   : > { %v2294_v2 = vsel %vm1732_vm2, %v1814_v6, %v1990_v42  ;;  %v2297_v51 = vsel %vm1732_vm2, %v1817_v13, %v1996_v35  ;;  %v1821_v6 = vld [vmem:[#allocation2 + $0x151] sm:$0xff] }
 0x226   : > { %2550 = vrot.lane.b32.xlu1 %v7159_v57, %s8497_s30  ;;  %2540 = vrot.lane.b32.xlu0 %v7034_v1, %s8497_s30  ;;  %v1815_v1 = vld [vmem:[#allocation2 + $0x121] sm:$0xff] }
 0x227   : > { %v2295_v57 = vsel %vm1732_vm2, %v1815_v1, %v1992_v39  ;;  %v7327_v39 = vld [vmem:[#allocation3 + $0xb0] sm:$0xff] }
 0x228   : > { %v2174_v23 = vpop.permute.xlu0 %2173  ;;  %v7274_v48 = vpop.permute.xlu1 %2001 }
 0x229   : > { %v7277_v7 = vsel %vm703_vm0, %v2290_v5, %v2174_v23 }
 0x22a   : > { %2393 = vst.msk [vmem:[#allocation3 + $0xf8] sm:$0xff] %vm2359_vm1, %v7277_v7  ;;  %2730 = vrot.lane.b32.xlu1 %v7279_v54, %s5699_s24  ;;  %2722 = vrot.lane.b32.xlu0 %v7281_v14, %s5699_s24 }
 0x22c   : > { %v1994_v24 = vpop.permute.xlu0 %1993  ;;  %v2184_v32 = vpop.permute.xlu1 %2183 }
 0x22d   : > { %v7291_v40 = vsel %vm703_vm0, %v2295_v57, %v2184_v32  ;;  %v7359_v57 = vld [vmem:[#allocation3 + $0xc0] sm:$0xff] }
 0x22e   : > { %2398 = vst.msk [vmem:[#allocation3 + $0x120] sm:$0xff] %vm2359_vm1, %v7291_v40  ;;  %2554 = vrot.lane.b32.xlu1 %v7180_v46, %s8497_s30  ;;  %2544 = vrot.lane.b32.xlu0 %v7054_v12, %s8497_s30 }
 0x230   : > { %v2178_v28 = vpop.permute.xlu0 %2177  ;;  %v2000_v33 = vpop.permute.xlu1 %1999 }
 0x231   : > { %v7301_v34 = vsel %vm703_vm0, %v2292_v60, %v2178_v28  ;;  %v2299_v42 = vsel %vm1732_vm2, %v1819_v37, %v2000_v33  ;;  %v7409_v37 = vld [vmem:[#allocation3 + $0xc8] sm:$0xff] }
 0x232   : > { %2395 = vst.msk [vmem:[#allocation3 + $0x108] sm:$0xff] %vm2359_vm1, %v7301_v34  ;;  %2734 = vrot.lane.b32.xlu1 %v7303_v44, %s5699_s24  ;;  %2726 = vrot.lane.b32.xlu0 %v7305_v22, %s5699_s24 }
 0x234   : > { %v1998_v12 = vpop.permute.xlu0 %1997  ;;  %v7313_v46 = vpop.permute.xlu1 %2005 }
 0x235   : > { %v2298_v35 = vsel %vm1732_vm2, %v1818_v15, %v1998_v12  ;;  %v7384_v12 = vld [vmem:[#allocation3 + $0xd0] sm:$0xff] }
 0x236   : > { %2558 = vrot.lane.b32.xlu1 %v7206_v43, %s8497_s30  ;;  %2548 = vrot.lane.b32.xlu0 %v7076_v10, %s8497_s30  ;;  %v7329_v43 = vld [vmem:[#allocation3 + $0x98] sm:$0xff] }
 0x237   : > { %v1816_v10 = vld [vmem:[#allocation2 + $0x129] sm:$0xff] }
 0x238   : > { %v2182_v11 = vpop.permute.xlu0 %2181  ;;  %v2188_v59 = vpop.permute.xlu1 %2187  ;;  %v2296_v38 = vsel %vm1732_vm2, %v1816_v10, %v1994_v24 }
 0x239   : > { %v7322_v20 = vsel %vm703_vm0, %v2294_v2, %v2182_v11  ;;  %v7325_v29 = vsel %vm703_vm0, %v2297_v51, %v2188_v59  ;;  %v1822_v51 = vld [vmem:[#allocation2 + $0x159] sm:$0xff] }
 0x23a   : > { %2397 = vst.msk [vmem:[#allocation3 + $0x118] sm:$0xff] %vm2359_vm1, %v7322_v20  ;;  %2400 = vst.msk [vmem:[#allocation3 + $0x130] sm:$0xff] %vm2359_vm1, %v7325_v29  ;;  %2738 = vrot.lane.b32.xlu1 %v7327_v39, %s5699_s24  ;;  %2732 = vrot.lane.b32.xlu0 %v7329_v43, %s5699_s24  ;;  %v2302_v11 = vsel %vm1732_vm2, %v1822_v51, %v7313_v46  ;;  %v1823_v46 = vld [vmem:[#allocation2 + $0x161] sm:$0xff] }
 0x23b   : > { %v7453_v51 = vld [vmem:[#allocation3 + $0xe8] sm:$0xff] }
 0x23c   : > { %v2186_v36 = vpop.permute.xlu0 %2185  ;;  %v7340_v47 = vpop.permute.xlu1 %2009 }
 0x23d   : > { %v7343_v8 = vsel %vm703_vm0, %v2296_v38, %v2186_v36  ;;  %v7407_v36 = vld [vmem:[#allocation3 + $0xe0] sm:$0xff] }
 0x23e   : > { %2399 = vst.msk [vmem:[#allocation3 + $0x128] sm:$0xff] %vm2359_vm1, %v7343_v8  ;;  %2562 = vrot.lane.b32.xlu1 %v7230_v61, %s8497_s30  ;;  %2552 = vrot.lane.b32.xlu0 %v7106_v4, %s8497_s30  ;;  %v7361_v61 = vld [vmem:[#allocation3 + $0xa8] sm:$0xff]  ;;  %v1820_v4 = vld [vmem:[#allocation2 + $0x149] sm:$0xff] }
 0x23f   : > { %v2300_v24 = vsel %vm1732_vm2, %v1820_v4, %v7274_v48  ;;  %v7386_v48 = vld [vmem:[#allocation3 + $0xb8] sm:$0xff] }
 0x240   : > { %v2190_v56 = vpop.permute.xlu0 %2189  ;;  %v2192_v5 = vpop.permute.xlu1 %2191  ;;  %v7429_v4 = vld [vmem:[#allocation3 + $0xd8] sm:$0xff] }
 0x241   : > { %v7354_v23 = vsel %vm703_vm0, %v2298_v35, %v2190_v56  ;;  %v7357_v1 = vsel %vm703_vm0, %v2299_v42, %v2192_v5  ;;  %v7427_v5 = vld [vmem:[#allocation3 + $0xf0] sm:$0xff]  ;;  %v7538_v18 = vld [vmem:[#allocation3 + $0x118] sm:$0xff] }
 0x242   : > { %2401 = vst.msk [vmem:[#allocation3 + $0x138] sm:$0xff] %vm2359_vm1, %v7354_v23  ;;  %2402 = vst.msk [vmem:[#allocation3 + $0x140] sm:$0xff] %vm2359_vm1, %v7357_v1  ;;  %2742 = vrot.lane.b32.xlu1 %v7359_v57, %s5699_s24  ;;  %2736 = vrot.lane.b32.xlu0 %v7361_v61, %s5699_s24 }
 0x244   : > { %v2004_v32 = vpop.permute.xlu0 %2003  ;;  %v2194_v17 = vpop.permute.xlu1 %2193 }
 0x245   : > { %v7374_v60 = vsel %vm703_vm0, %v2300_v24, %v2194_v17  ;;  %v2301_v13 = vsel %vm1732_vm2, %v1821_v6, %v2004_v32 }
 0x246   : > { %2403 = vst.msk [vmem:[#allocation3 + $0x148] sm:$0xff] %vm2359_vm1, %v7374_v60  ;;  %2566 = vrot.lane.b32.xlu1 %v7252_v16, %s8497_s30  ;;  %2556 = vrot.lane.b32.xlu0 %v7134_v50, %s8497_s30 }
 0x248   : > { %v2008_v28 = vpop.permute.xlu0 %2007  ;;  %v7382_v33 = vpop.permute.xlu1 %2013 }
 0x249   : > { %v2303_v15 = vsel %vm1732_vm2, %v1823_v46, %v2008_v28  ;;  %v1830_v28 = vld [vmem:[#allocation2 + $0x199] sm:$0xff]  ;;  %v7575_v27 = vld [vmem:[#allocation3 + $0x138] sm:$0xff] }
 0x24a   : > { %2746 = vrot.lane.b32.xlu1 %v7384_v12, %s5699_s24  ;;  %2740 = vrot.lane.b32.xlu0 %v7386_v48, %s5699_s24 }
 0x24c   : > { %v2012_v16 = vpop.permute.xlu0 %2011  ;;  %v2196_v2 = vpop.permute.xlu1 %2195 }
 0x24d   : > { %v7394_v50 = vsel %vm703_vm0, %v2301_v13, %v2196_v2  ;;  %v7451_v2 = vld [vmem:[#allocation3 + $0x100] sm:$0xff] }
 0x24e   : > { %2404 = vst.msk [vmem:[#allocation3 + $0x150] sm:$0xff] %vm2359_vm1, %v7394_v50  ;;  %2570 = vrot.lane.b32.xlu1 %v7277_v7, %s8497_s30  ;;  %2560 = vrot.lane.b32.xlu0 %v7162_v3, %s8497_s30 }
 0x250   : > { %v2016_v59 = vpop.permute.xlu0 %2015  ;;  %v2198_v10 = vpop.permute.xlu1 %2197 }
 0x251   : > { %v7405_v38 = vsel %vm703_vm0, %v2302_v11, %v2198_v10 }
 0x252   : > { %2405 = vst.msk [vmem:[#allocation3 + $0x158] sm:$0xff] %vm2359_vm1, %v7405_v38  ;;  %2750 = vrot.lane.b32.xlu1 %v7407_v36, %s5699_s24  ;;  %2744 = vrot.lane.b32.xlu0 %v7409_v37, %s5699_s24 }
 0x254   : > { %v7417_v3 = vpop.permute.xlu0 %2019  ;;  %v2018_v7 = vpop.permute.xlu1 %2017 }
 0x256   : > { %2574 = vrot.lane.b32.xlu1 %v7301_v34, %s8497_s30  ;;  %2564 = vrot.lane.b32.xlu0 %v7183_v41, %s8497_s30  ;;  %v1824_v41 = vld [vmem:[#allocation2 + $0x169] sm:$0xff] }
 0x257   : > { %v2304_v34 = vsel %vm1732_vm2, %v1824_v41, %v7340_v47 }
 0x258   : > { %v2214_v42 = vpop.permute.xlu0 %2213  ;;  %v2200_v35 = vpop.permute.xlu1 %2199 }
 0x259   : > { %v7425_v56 = vsel %vm703_vm0, %v2303_v15, %v2200_v35 }
 0x25a   : > { %2406 = vst.msk [vmem:[#allocation3 + $0x160] sm:$0xff] %vm2359_vm1, %v7425_v56  ;;  %2754 = vrot.lane.b32.xlu1 %v7427_v5, %s5699_s24  ;;  %2748 = vrot.lane.b32.xlu0 %v7429_v4, %s5699_s24 }
 0x25c   : > { %v2202_v24 = vpop.permute.xlu1 %2201  ;;  %v2517_v32 = vpop.permute.xlu0 %2516 }
 0x25d   : > { %v7440_v17 = vsel %vm703_vm0, %v2304_v34, %v2202_v24  ;;  %v7481_v24 = vld [vmem:[#allocation3 + $0x110] sm:$0xff] }
 0x25e   : > { %2407 = vst.msk [vmem:[#allocation3 + $0x168] sm:$0xff] %vm2359_vm1, %v7440_v17  ;;  %2578 = vrot.lane.b32.xlu1 %v7322_v20, %s8497_s30  ;;  %2568 = vrot.lane.b32.xlu0 %v7209_v0, %s8497_s30  ;;  %v1825_v0 = vld [vmem:[#allocation2 + $0x171] sm:$0xff] }
 0x25f   : > { %v2305_v11 = vsel %vm1732_vm2, %v1825_v0, %v2012_v16  ;;  %v1828_v0 = vld [vmem:[#allocation2 + $0x189] sm:$0xff] }
 0x260   : > { %v2022_v6 = vpop.permute.xlu1 %2021  ;;  %v7448_v13 = vpop.permute.xlu0 %2518 }
 0x261   : > { %v2310_v47 = vsel %vm1732_vm2, %v1830_v28, %v2022_v6  ;;  %v7483_v28 = vld [vmem:[#allocation3 + $0xf8] sm:$0xff] }
 0x262   : > { %2758 = vrot.lane.b32.xlu1 %v7451_v2, %s5699_s24  ;;  %2752 = vrot.lane.b32.xlu0 %v7453_v51, %s5699_s24  ;;  %v7460_v20 = vsel %vm703_vm0, %v2310_v47, %v2214_v42  ;;  %v1826_v42 = vld [vmem:[#allocation2 + $0x179] sm:$0xff] }
 0x263   : > { %2413 = vst.msk [vmem:[#allocation3 + $0x198] sm:$0xff] %vm2359_vm1, %v7460_v20  ;;  %v2306_v35 = vsel %vm1732_vm2, %v1826_v42, %v7382_v33 }
 0x264   : > { %v2204_v10 = vpop.permute.xlu1 %2203  ;;  %v2521_v46 = vpop.permute.xlu0 %2520 }
 0x265   : > { %v7466_v15 = vsel %vm703_vm0, %v2305_v11, %v2204_v10  ;;  %v2308_v11 = vsel %vm1732_vm2, %v1828_v0, %v2018_v7 }
 0x266   : > { %2408 = vst.msk [vmem:[#allocation3 + $0x170] sm:$0xff] %vm2359_vm1, %v7466_v15  ;;  %2582 = vrot.lane.b32.xlu1 %v7343_v8, %s8497_s30  ;;  %2572 = vrot.lane.b32.xlu0 %v7233_v31, %s8497_s30  ;;  %v1827_v31 = vld [vmem:[#allocation2 + $0x181] sm:$0xff] }
 0x267   : > { %v2307_v8 = vsel %vm1732_vm2, %v1827_v31, %v2016_v59 }
 0x268   : > { %v2206_v41 = vpop.permute.xlu1 %2205  ;;  %v7476_v16 = vpop.permute.xlu0 %2522 }
 0x269   : > { %v7479_v34 = vsel %vm703_vm0, %v2306_v35, %v2206_v41  ;;  %v7509_v35 = vld [vmem:[#allocation3 + $0x120] sm:$0xff]  ;;  %v7511_v41 = vld [vmem:[#allocation3 + $0x108] sm:$0xff] }
 0x26a   : > { %2409 = vst.msk [vmem:[#allocation3 + $0x178] sm:$0xff] %vm2359_vm1, %v7479_v34  ;;  %2762 = vrot.lane.b32.xlu1 %v7481_v24, %s5699_s24  ;;  %2756 = vrot.lane.b32.xlu0 %v7483_v28, %s5699_s24 }
 0x26c   : > { %v2208_v33 = vpop.permute.xlu1 %2207  ;;  %v7492_v6 = vpop.permute.xlu0 %2524 }
 0x26d   : > { %v7495_v47 = vsel %vm703_vm0, %v2307_v8, %v2208_v33  ;;  %v2414_v8 = vld [vmem:[#allocation3 + $0x8] sm:$0xff] }
 0x26e   : > { %2410 = vst.msk [vmem:[#allocation3 + $0x180] sm:$0xff] %vm2359_vm1, %v7495_v47  ;;  %2586 = vrot.lane.b32.xlu1 %v7354_v23, %s8497_s30  ;;  %2576 = vrot.lane.b32.xlu0 %v7255_v30, %s8497_s30  ;;  %v1829_v30 = vld [vmem:[#allocation2 + $0x191] sm:$0xff]  ;;  %v2852_v0 = vsel %vm2359_vm1, %v2414_v8, %v2517_v32 }
 0x26f   : > { %v2309_v23 = vsel %vm1732_vm2, %v1829_v30, %v7417_v3  ;;  %v2415_v3 = vld [vmem:[#allocation3 + $0x10] sm:$0xff]  ;;  %v2416_v30 = vld [vmem:[#allocation3 + $0x18] sm:$0xff] }
 0x270   : > { %v2210_v10 = vpop.permute.xlu1 %2209  ;;  %v7504_v59 = vpop.permute.xlu0 %2526 }
 0x271   : > { %v7507_v42 = vsel %vm703_vm0, %v2308_v11, %v2210_v10 }
 0x272   : > { %2411 = vst.msk [vmem:[#allocation3 + $0x188] sm:$0xff] %vm2359_vm1, %v7507_v42  ;;  %2766 = vrot.lane.b32.xlu1 %v7509_v35, %s5699_s24  ;;  %2760 = vrot.lane.b32.xlu0 %v7511_v41, %s5699_s24 }
 0x274   : > { %v2212_v7 = vpop.permute.xlu1 %2211  ;;  %v7521_v31 = vpop.permute.xlu0 %2528 }
 0x275   : > { %v7524_v33 = vsel %vm703_vm0, %v2309_v23, %v2212_v7  ;;  %v7536_v7 = vld [vmem:[#allocation3 + $0x130] sm:$0xff] }
 0x276   : > { %2412 = vst.msk [vmem:[#allocation3 + $0x190] sm:$0xff] %vm2359_vm1, %v7524_v33  ;;  %2590 = vrot.lane.b32.xlu1 %v7374_v60, %s8497_s30  ;;  %2580 = vrot.lane.b32.xlu0 %v7291_v40, %s8497_s30  ;;  %v2853_v40 = vsel %vm2359_vm1, %v2415_v3, %v7448_v13  ;;  %v2854_v60 = vsel %vm2359_vm1, %v2416_v30, %v2521_v46  ;;  %v7556_v3 = vld [vmem:[#allocation3 + $0x140] sm:$0xff]  ;;  %v7558_v46 = vld [vmem:[#allocation3 + $0x128] sm:$0xff] }
 0x278   : > { %v2709_v11 = vpop.permute.xlu1 %2708  ;;  %v7533_v10 = vpop.permute.xlu0 %2530 }
 0x279   : > { %v2901_v23 = vsel %vm2900_vm3, %v2852_v0, %v2709_v11 }
 0x27a   : > { %2770 = vrot.lane.b32.xlu1 %v7536_v7, %s5699_s24  ;;  %2764 = vrot.lane.b32.xlu0 %v7538_v18, %s5699_s24 }
 0x27b   : > { %5390 = vmatprep.mubr.msk.f32.mxu0 %vm2965_vm4, %v2901_v23 }
 0x27c   : > { %v2713_v32 = vpop.permute.xlu1 %2712  ;;  %v2711_v8 = vpop.permute.xlu0 %2710 }
 0x27d   : > { %v2903_v0 = vsel %vm2900_vm3, %v2854_v60, %v2713_v32  ;;  %v2902_v11 = vsel %vm2900_vm3, %v2853_v40, %v2711_v8  ;;  %v2418_v8 = vld [vmem:[#allocation3 + $0x28] sm:$0xff] }
 0x27e   : > { %2594 = vrot.lane.b32.xlu1 %v7405_v38, %s8497_s30  ;;  %2584 = vrot.lane.b32.xlu0 %v7325_v29, %s8497_s30  ;;  %v2417_v29 = vld [vmem:[#allocation3 + $0x20] sm:$0xff] }
 0x27f   : > { %5391 = vmatmul.mubr.msk.f32.vlgmr.msra.gmra.mxu0 %vm2965_vm4, %v2902_v11  ;;  %v2855_v40 = vsel %vm2359_vm1, %v2417_v29, %v7476_v16  ;;  %v7573_v11 = vld [vmem:[#allocation3 + $0x150] sm:$0xff] }
 0x280   : > { %5393 = vmatprep.mubr.msk.f32.mxu0 %vm2965_vm4, %v2903_v0  ;;  %v2717_v23 = vpop.permute.xlu1 %2716  ;;  %v2533_v13 = vpop.permute.xlu0 %2532 }
 0x282   : > { %2774 = vrot.lane.b32.xlu1 %v7556_v3, %s5699_s24  ;;  %2768 = vrot.lane.b32.xlu0 %v7558_v46, %s5699_s24 }
 0x284   : > { %v2721_v38 = vpop.permute.xlu1 %2720  ;;  %v2535_v30 = vpop.permute.xlu0 %2534 }
 0x286   : > { %2598 = vrot.lane.b32.xlu1 %v7440_v17, %s8497_s30  ;;  %2588 = vrot.lane.b32.xlu0 %v7357_v1, %s8497_s30  ;;  %v2856_v17 = vsel %vm2359_vm1, %v2418_v8, %v7492_v6  ;;  %v7594_v8 = vld [vmem:[#allocation3 + $0x148] sm:$0xff] }
 0x287   : > { %v2905_v1 = vsel %vm2900_vm3, %v2856_v17, %v2717_v23  ;;  %v2419_v23 = vld [vmem:[#allocation3 + $0x30] sm:$0xff] }
 0x288   : > { %v7570_v60 = vpop.permute.xlu1 %2542  ;;  %v2715_v32 = vpop.permute.xlu0 %2714 }
 0x289   : > { %v2904_v0 = vsel %vm2900_vm3, %v2855_v40, %v2715_v32  ;;  %v7592_v32 = vld [vmem:[#allocation3 + $0x160] sm:$0xff] }
 0x28a   : > { %2778 = vrot.lane.b32.xlu1 %v7573_v11, %s5699_s24  ;;  %2772 = vrot.lane.b32.xlu0 %v7575_v27, %s5699_s24 }
 0x28b   : > { %5394 = vmatmul.mubr.msk.f32.gmra.mxu0 %vm2965_vm4, %v2904_v0 }
 0x28c   : > { %5396 = vmatprep.mubr.msk.f32.mxu0 %vm2965_vm4, %v2905_v1  ;;  %v2725_v16 = vpop.permute.xlu1 %2724  ;;  %v2537_v29 = vpop.permute.xlu0 %2536  ;;  %v2858_v1 = vsel %vm2359_vm1, %v7171_v21, %v7521_v31  ;;  %v2859_v21 = vsel %vm2359_vm1, %v7187_v62, %v7533_v10  ;;  %v7627_v31 = vld [vmem:[#allocation3 + $0x180] sm:$0xff] }
 0x28d   : > { %v2907_v25 = vsel %vm2900_vm3, %v2858_v1, %v2721_v38  ;;  %v2860_v38 = vsel %vm2359_vm1, %v7185_v52, %v2533_v13  ;;  %v2463_v1 = vld [vmem:[#allocation3 + $0x190] sm:$0xff]  ;;  %v2861_v52 = vsel %vm2359_vm1, %v7221_v9, %v2535_v30 }
 0x28e   : > { %2602 = vrot.lane.b32.xlu1 %v7479_v34, %s8497_s30  ;;  %2592 = vrot.lane.b32.xlu0 %v7394_v50, %s8497_s30  ;;  %v2857_v34 = vsel %vm2359_vm1, %v2419_v23, %v7504_v59 }
 0x290   : > { %v7590_v6 = vpop.permute.xlu1 %2546  ;;  %v2539_v40 = vpop.permute.xlu0 %2538 }
 0x292   : > { %2782 = vrot.lane.b32.xlu1 %v7592_v32, %s5699_s24  ;;  %2776 = vrot.lane.b32.xlu0 %v7594_v8, %s5699_s24 }
 0x294   : > { %v2729_v0 = vpop.permute.xlu1 %2728  ;;  %v2719_v17 = vpop.permute.xlu0 %2718 }
 0x295   : > { %v2906_v50 = vsel %vm2900_vm3, %v2857_v34, %v2719_v17  ;;  %v7615_v34 = vld [vmem:[#allocation3 + $0x170] sm:$0xff]  ;;  %v7617_v17 = vld [vmem:[#allocation3 + $0x158] sm:$0xff] }
 0x296   : > { %2606 = vrot.lane.b32.xlu1 %v7507_v42, %s8497_s30  ;;  %2596 = vrot.lane.b32.xlu0 %v7425_v56, %s8497_s30 }
 0x297   : > { %5397 = vmatmul.mubr.msk.f32.gmra.mxu0 %vm2965_vm4, %v2906_v50  ;;  %v2909_v50 = vsel %vm2900_vm3, %v2860_v38, %v2725_v16  ;;  %v2467_v38 = vld [vmem:[#allocation3 + $0x1b0] sm:$0xff] }
 0x298   : > { %5399 = vmatprep.mubr.msk.f32.mxu0 %vm2965_vm4, %v2907_v25  ;;  %v7613_v59 = vpop.permute.xlu1 %2550  ;;  %v2541_v23 = vpop.permute.xlu0 %2540 }
 0x29a   : > { %2786 = vrot.lane.b32.xlu1 %v7615_v34, %s5699_s24  ;;  %2780 = vrot.lane.b32.xlu0 %v7617_v17, %s5699_s24 }
 0x29c   : > { %v2731_v56 = vpop.permute.xlu1 %2730  ;;  %v2723_v42 = vpop.permute.xlu0 %2722 }
 0x29d   : > { %v2908_v25 = vsel %vm2900_vm3, %v2859_v21, %v2723_v42  ;;  %v7640_v21 = vld [vmem:[#allocation3 + $0x168] sm:$0xff]  ;;  %v2862_v42 = vsel %vm2359_vm1, %v7197_v45, %v2537_v29 }
 0x29e   : > { %2790 = vrot.lane.b32.xlu1 %v7627_v31, %s5699_s24  ;;  %2600 = vrot.lane.b32.xlu0 %v7466_v15, %s8497_s30 }
 0x29f   : > { %5400 = vmatmul.mubr.msk.f32.gmra.mxu0 %vm2965_vm4, %v2908_v25  ;;  %v2911_v25 = vsel %vm2900_vm3, %v2862_v42, %v2729_v0  ;;  %v2466_v42 = vld [vmem:[#allocation3 + $0x1a8] sm:$0xff] }
 0x2a0   : > { %5402 = vmatprep.mubr.msk.f32.mxu0 %vm2965_vm4, %v2909_v50  ;;  %v7638_v62 = vpop.permute.xlu1 %2554  ;;  %v2545_v10 = vpop.permute.xlu0 %2544  ;;  %v2863_v50 = vsel %vm2359_vm1, %v7259_v58, %v2539_v40  ;;  %v2865_v58 = vsel %vm2359_vm1, %v7281_v14, %v7570_v60 }
 0x2a1   : > { %v2912_v45 = vsel %vm2900_vm3, %v2863_v50, %v2731_v56  ;;  %v2869_v50 = vsel %vm2359_vm1, %v7279_v54, %v7613_v59  ;;  %v2871_v54 = vsel %vm2359_vm1, %v7303_v44, %v7638_v62 }
 0x2a2   : > { %2794 = vrot.lane.b32.xlu1 %v2463_v1, %s5699_s24  ;;  %2784 = vrot.lane.b32.xlu0 %v7640_v21, %s5699_s24  ;;  %v7659_v1 = vld [vmem:[#allocation3 + $0x178] sm:$0xff] }
 0x2a4   : > { %v2735_v15 = vpop.permute.xlu1 %2734  ;;  %v2727_v13 = vpop.permute.xlu0 %2726 }
 0x2a5   : > { %v2910_v16 = vsel %vm2900_vm3, %v2861_v52, %v2727_v13  ;;  %v2914_v0 = vsel %vm2900_vm3, %v2865_v58, %v2735_v15  ;;  %v2867_v15 = vsel %vm2359_vm1, %v7305_v22, %v7590_v6  ;;  %v2464_v13 = vld [vmem:[#allocation3 + $0x198] sm:$0xff]  ;;  %v3974_v22 = vld [vmem:[%s8474_s12] sm:$0xff] }
 0x2a6   : > { %2610 = vrot.lane.b32.xlu1 %v7460_v20, %s8497_s30  ;;  %2604 = vrot.lane.b32.xlu0 %v7495_v47, %s8497_s30  ;;  %v2864_v20 = vsel %vm2359_vm1, %v7211_v26, %v2541_v23  ;;  %v2462_v26 = vld [vmem:[#allocation3 + $0x188] sm:$0xff]  ;;  %v2866_v23 = vsel %vm2359_vm1, %v7235_v55, %v2545_v10 }
 0x2a7   : > { %5403 = vmatmul.mubr.msk.f32.gmra.mxu0 %vm2965_vm4, %v2910_v16 }
 0x2a8   : > { %5405 = vmatprep.mubr.msk.f32.mxu0 %vm2965_vm4, %v2911_v25  ;;  %v2559_v9 = vpop.permute.xlu1 %2558  ;;  %v2549_v30 = vpop.permute.xlu0 %2548 }
 0x2a9   : > { %v2868_v6 = vsel %vm2359_vm1, %v7257_v63, %v2549_v30 }
 0x2aa   : > { %2802 = vrot.lane.b32.xlu1 %v2467_v38, %s5699_s24  ;;  %2788 = vrot.lane.b32.xlu0 %v7659_v1, %s5699_s24 }
 0x2ab   : > { %5406 = vmatmul.mubr.msk.f32.gmra.mxu0 %vm2965_vm4, %v2912_v45 }
 0x2ac   : > { %v2739_v47 = vpop.permute.xlu1 %2738  ;;  %v2733_v29 = vpop.permute.xlu0 %2732 }
 0x2ad   : > { %v2913_v40 = vsel %vm2900_vm3, %v2864_v20, %v2733_v29  ;;  %v2916_v16 = vsel %vm2900_vm3, %v2867_v15, %v2739_v47 }
 0x2ae   : > { %2608 = vrot.lane.b32.xlu0 %v7524_v33, %s8497_s30  ;;  %5408 = vmatprep.mubr.msk.f32.mxu0 %vm2965_vm4, %v2913_v40 }
 0x2af   : > { %5409 = vmatmul.mubr.msk.f32.gmra.mxu0 %vm2965_vm4, %v2914_v0 }
 0x2b0   : > { %v2563_v56 = vpop.permute.xlu1 %2562  ;;  %v2553_v52 = vpop.permute.xlu0 %2552 }
 0x2b1   : > { %v2870_v63 = vsel %vm2359_vm1, %v7329_v43, %v2553_v52 }
 0x2b2   : > { %2792 = vrot.lane.b32.xlu0 %v2462_v26, %s5699_s24 }
 0x2b4   : > { %v2743_v14 = vpop.permute.xlu1 %2742  ;;  %v2737_v60 = vpop.permute.xlu0 %2736 }
 0x2b5   : > { %v2915_v33 = vsel %vm2900_vm3, %v2866_v23, %v2737_v60  ;;  %v2918_v20 = vsel %vm2900_vm3, %v2869_v50, %v2743_v14  ;;  %v2873_v14 = vsel %vm2359_vm1, %v7327_v39, %v2559_v9 }
 0x2b6   : > { %2796 = vrot.lane.b32.xlu0 %v2464_v13, %s5699_s24  ;;  %5411 = vmatprep.mubr.msk.f32.mxu0 %vm2965_vm4, %v2915_v33 }
 0x2b7   : > { %5412 = vmatmul.mubr.msk.f32.gmra.mxu0 %vm2965_vm4, %v2916_v16  ;;  %v2875_v16 = vsel %vm2359_vm1, %v7359_v57, %v2563_v56 }
 0x2b8   : > { %v2567_v25 = vpop.permute.xlu1 %2566  ;;  %v2557_v55 = vpop.permute.xlu0 %2556 }
 0x2b9   : > { %v2872_v23 = vsel %vm2359_vm1, %v7361_v61, %v2557_v55 }
 0x2ba   : > { %2800 = vrot.lane.b32.xlu0 %v2466_v42, %s5699_s24  ;;  %s485_s24 = sand.u32 1, %s5687_s19  }
 0x2bb   : > { %s5567_s27 = smul.u32 96, %s485_s24  ;;  %s8421_s22 = scalar_lea.sflag [#allocation5], %s485_s24 }
 0x2bc   : > { %v2747_v10 = vpop.permute.xlu1 %2746  ;;  %v2741_v38 = vpop.permute.xlu0 %2740 }
 0x2bd   : > { %v2917_v45 = vsel %vm2900_vm3, %v2868_v6, %v2741_v38  ;;  %v2920_v40 = vsel %vm2900_vm3, %v2871_v54, %v2747_v10  ;;  %v2877_v10 = vsel %vm2359_vm1, %v7384_v12, %v2567_v25  ;;  %s8378_s25 = scalar_lea.vmem [#allocation4], %s5567_s27  ;;  %s5639_s27 = sshll.u32 %s5704_s23, 4  ;;  %s5640_s27 = int_to_ptr.vmem [resolvable:$false] %s5639_s27 }
 0x2be   : > { %3977 = vperm.xlu0 %5617, %v3974_v22   ;;  %5414 = vmatprep.mubr.msk.f32.mxu0 %vm2965_vm4, %v2917_v45  ;;  %s4608_s29 = sshll.u32 %s8378_s25, 4  ;;  %s5641_s16 = scalar_lea.vmem %s5640_s27, 3072  ;;  %s8416_s29 = int_to_ptr.vmem [resolvable:$true] %s4608_s29 }
 0x2bf   : > { %5415 = vmatmul.mubr.msk.f32.gmra.mxu0 %vm2965_vm4, %v2918_v20  ;;  %s5635_s30 = scalar_lea.vmem %s8416_s29, 1536  ;;  %p5642_p0 = scmp.lt.s32.totalorder %s8416_s29, %s5640_s27 }
 0x2c0   : > { %v2571_v47 = vpop.permute.xlu1 %2570  ;;  %v2561_v29 = vpop.permute.xlu0 %2560  ;;  %p5636_p11 = scmp.ne.s32.totalorder %s8416_s29, %s5635_s30  ;;  %p5643_p1 = scmp.lt.s32.totalorder %s5641_s16, %s5635_s30 }
 0x2c1   : > { %v2874_v33 = vsel %vm2359_vm1, %v7386_v48, %v2561_v29  ;;  %v2879_v29 = vsel %vm2359_vm1, %v7407_v36, %v2571_v47 }
 0x2c2   : > { %p5637_p12 = pnand %p5636_p11, %p5824_p5  ;;  %p5644_p2 = por %p5643_p1, %p5642_p0 }
 0x2c4   : > { %v2751_v30 = vpop.permute.xlu1 %2750  ;;  %v2745_v58 = vpop.permute.xlu0 %2744  ;;  %p5638_p13 = pneg %p5637_p12 }
 0x2c5   : > { %v2919_v59 = vsel %vm2900_vm3, %v2870_v63, %v2745_v58  ;;  %v2922_v62 = vsel %vm2900_vm3, %v2873_v14, %v2751_v30 }
 0x2c6   : > { %5417 = vmatprep.mubr.msk.f32.mxu0 %vm2965_vm4, %v2919_v59  ;;  %p5645_p3 = pnand %p5644_p2, %p5638_p13 }
 0x2c7   : > { %5418 = vmatmul.mubr.msk.f32.gmra.mxu0 %vm2965_vm4, %v2920_v40 }
 0x2c8   : > { %v2575_v0 = vpop.permute.xlu1 %2574  ;;  %v2565_v26 = vpop.permute.xlu0 %2564 }
 0x2c9   : > { %v2876_v22 = vsel %vm2359_vm1, %v7409_v37, %v2565_v26  ;;  %v2881_v59 = vsel %vm2359_vm1, %v7427_v5, %v2575_v0 }
 0x2cc   : > { %v2755_v43 = vpop.permute.xlu1 %2754  ;;  %v2749_v52 = vpop.permute.xlu0 %2748 }
 0x2cd   : > { %v2921_v44 = vsel %vm2900_vm3, %v2872_v23, %v2749_v52  ;;  %v2924_v9 = vsel %vm2900_vm3, %v2875_v16, %v2755_v43 }
 0x2ce   : > { %5420 = vmatprep.mubr.msk.f32.mxu0 %vm2965_vm4, %v2921_v44 }
 0x2cf   : > { %5421 = vmatmul.mubr.msk.f32.gmra.mxu0 %vm2965_vm4, %v2922_v62 }
 0x2d0   : > { %v2579_v60 = vpop.permute.xlu1 %2578  ;;  %v2569_v15 = vpop.permute.xlu0 %2568 }
 0x2d1   : > { %v2878_v45 = vsel %vm2359_vm1, %v7429_v4, %v2569_v15  ;;  %v2883_v52 = vsel %vm2359_vm1, %v7451_v2, %v2579_v60 }
 0x2d4   : > { %v2759_v13 = vpop.permute.xlu1 %2758  ;;  %v2753_v61 = vpop.permute.xlu0 %2752 }
 0x2d5   : > { %v2923_v39 = vsel %vm2900_vm3, %v2874_v33, %v2753_v61  ;;  %v2926_v56 = vsel %vm2900_vm3, %v2877_v10, %v2759_v13 }
 0x2d6   : > { %5423 = vmatprep.mubr.msk.f32.mxu0 %vm2965_vm4, %v2923_v39 }
 0x2d7   : > { %5424 = vmatmul.mubr.msk.f32.gmra.mxu0 %vm2965_vm4, %v2924_v9 }
 0x2d8   : > { %v2583_v42 = vpop.permute.xlu1 %2582  ;;  %v2573_v55 = vpop.permute.xlu0 %2572 }
 0x2d9   : > { %v2880_v58 = vsel %vm2359_vm1, %v7453_v51, %v2573_v55  ;;  %v2885_v33 = vsel %vm2359_vm1, %v7481_v24, %v2583_v42 }
 0x2dc   : > { %v2763_v6 = vpop.permute.xlu1 %2762  ;;  %v2757_v48 = vpop.permute.xlu0 %2756 }
 0x2dd   : > { %v2925_v57 = vsel %vm2900_vm3, %v2876_v22, %v2757_v48  ;;  %v2928_v25 = vsel %vm2900_vm3, %v2879_v29, %v2763_v6 }
 0x2de   : > { %5426 = vmatprep.mubr.msk.f32.mxu0 %vm2965_vm4, %v2925_v57 }
 0x2df   : > { %5427 = vmatmul.mubr.msk.f32.gmra.mxu0 %vm2965_vm4, %v2926_v56 }
 0x2e0   : > { %v2587_v38 = vpop.permute.xlu1 %2586  ;;  %v2577_v50 = vpop.permute.xlu0 %2576 }
 0x2e1   : > { %v2882_v23 = vsel %vm2359_vm1, %v7483_v28, %v2577_v50 }
 0x2e4   : > { %v2767_v20 = vpop.permute.xlu1 %2766  ;;  %v2761_v37 = vpop.permute.xlu0 %2760 }
 0x2e5   : > { %v2927_v12 = vsel %vm2900_vm3, %v2878_v45, %v2761_v37  ;;  %v2930_v47 = vsel %vm2900_vm3, %v2881_v59, %v2767_v20 }
 0x2e6   : > { %5429 = vmatprep.mubr.msk.f32.mxu0 %vm2965_vm4, %v2927_v12 }
 0x2e7   : > { %5430 = vmatmul.mubr.msk.f32.gmra.mxu0 %vm2965_vm4, %v2928_v25 }
 0x2e8   : > { %v2591_v63 = vpop.permute.xlu1 %2590  ;;  %v2581_v30 = vpop.permute.xlu0 %2580 }
 0x2e9   : > { %v2884_v62 = vsel %vm2359_vm1, %v7511_v41, %v2581_v30  ;;  %v2887_v41 = vsel %vm2359_vm1, %v7509_v35, %v2587_v38 }
 0x2ec   : > { %v2771_v54 = vpop.permute.xlu1 %2770  ;;  %v2765_v4 = vpop.permute.xlu0 %2764 }
 0x2ed   : > { %v2929_v36 = vsel %vm2900_vm3, %v2880_v58, %v2765_v4  ;;  %v2932_v0 = vsel %vm2900_vm3, %v2883_v52, %v2771_v54  ;;  %v7823_v52 = vpop.f32.mrf.mxu0 }
 0x2ee   : > { %5432 = vmatprep.mubr.msk.f32.mxu0 %vm2965_vm4, %v2929_v36 }
 0x2ef   : > { %5433 = vmatmul.mubr.msk.f32.gmra.mxu0 %vm2965_vm4, %v2930_v47 }
 0x2f0   : > { %v2595_v40 = vpop.permute.xlu1 %2594  ;;  %v2585_v26 = vpop.permute.xlu0 %2584 }
 0x2f1   : > { %v2886_v16 = vsel %vm2359_vm1, %v7538_v18, %v2585_v26  ;;  %v2889_v18 = vsel %vm2359_vm1, %v7536_v7, %v2591_v63 }
 0x2f4   : > { %v2775_v43 = vpop.permute.xlu1 %2774  ;;  %v2769_v51 = vpop.permute.xlu0 %2768 }
 0x2f5   : > { %v2931_v5 = vsel %vm2900_vm3, %v2882_v23, %v2769_v51  ;;  %v2934_v60 = vsel %vm2900_vm3, %v2885_v33, %v2775_v43 }
 0x2f6   : > { %5435 = vmatprep.mubr.msk.f32.mxu0 %vm2965_vm4, %v2931_v5 }
 0x2f7   : > { %5436 = vmatmul.mubr.msk.f32.gmra.mxu0 %vm2965_vm4, %v2932_v0 }
 0x2f8   : > { %v2599_v14 = vpop.permute.xlu1 %2598  ;;  %v2589_v44 = vpop.permute.xlu0 %2588 }
 0x2f9   : > { %v2888_v22 = vsel %vm2359_vm1, %v7558_v46, %v2589_v44  ;;  %v2891_v46 = vsel %vm2359_vm1, %v7556_v3, %v2595_v40 }
 0x2fc   : > { %v2779_v15 = vpop.permute.xlu1 %2778  ;;  %v2773_v28 = vpop.permute.xlu0 %2772 }
 0x2fd   : > { %v2933_v2 = vsel %vm2900_vm3, %v2884_v62, %v2773_v28  ;;  %v2936_v24 = vsel %vm2900_vm3, %v2887_v41, %v2779_v15 }
 0x2fe   : > { %5438 = vmatprep.mubr.msk.f32.mxu0 %vm2965_vm4, %v2933_v2 }
 0x2ff   : > { %5439 = vmatmul.mubr.msk.f32.gmra.mxu0 %vm2965_vm4, %v2934_v60 }
 0x300   : > { %v2593_v13 = vpop.permute.xlu0 %2592  ;;  %v2603_v61 = vpop.permute.xlu1 %2602 }
 0x301   : > { %v2890_v38 = vsel %vm2359_vm1, %v7575_v27, %v2593_v13  ;;  %v2893_v27 = vsel %vm2359_vm1, %v7573_v11, %v2599_v14 }
 0x304   : > { %v2777_v39 = vpop.permute.xlu0 %2776  ;;  %v2783_v42 = vpop.permute.xlu1 %2782 }
 0x305   : > { %v2935_v9 = vsel %vm2900_vm3, %v2886_v16, %v2777_v39  ;;  %v2938_v10 = vsel %vm2900_vm3, %v2889_v18, %v2783_v42 }
 0x306   : > { %5441 = vmatprep.mubr.msk.f32.mxu0 %vm2965_vm4, %v2935_v9 }
 0x307   : > { %5442 = vmatmul.mubr.msk.f32.gmra.mxu0 %vm2965_vm4, %v2936_v24 }
 0x308   : > { %v2597_v55 = vpop.permute.xlu0 %2596  ;;  %v2607_v48 = vpop.permute.xlu1 %2606 }
 0x309   : > { %v2892_v29 = vsel %vm2359_vm1, %v7594_v8, %v2597_v55  ;;  %v2895_v8 = vsel %vm2359_vm1, %v7592_v32, %v2603_v61  ;;  %v2897_v36 = vsel %vm2359_vm1, %v7615_v34, %v2607_v48 }
 0x30a   : > { %v2946_v32 = vsel %vm2900_vm3, %v2897_v36, %v6937_v53  ;;  %v7825_v53 = vpop.f32.mrf.mxu0 }
 0x30c   : > { %v2781_v6 = vpop.permute.xlu0 %2780  ;;  %v2787_v56 = vpop.permute.xlu1 %2786 }
 0x30d   : > { %v2937_v35 = vsel %vm2900_vm3, %v2888_v22, %v2781_v6  ;;  %v2940_v45 = vsel %vm2900_vm3, %v2891_v46, %v2787_v56  ;;  %v7827_v5 = vpop.f32.mrf.mxu0  ;;  %v7876_v46 = vld [vmem:[%s8471_s9] sm:$0xff] }
 0x30e   : > { %5444 = vmatprep.mubr.msk.f32.mxu0 %vm2965_vm4, %v2937_v35  ;;  %5154 = vmatprep.mubr.msk.f32.mxu1 %vm1732_vm2, %v7876_v46 }
 0x30f   : > { %5445 = vmatmul.mubr.msk.f32.gmra.mxu0 %vm2965_vm4, %v2938_v10  ;;  %v7829_v0 = vpop.f32.mrf.mxu0 }
 0x310   : > { %v2601_v57 = vpop.permute.xlu0 %2600  ;;  %v2791_v37 = vpop.permute.xlu1 %2790 }
 0x311   : > { %v2942_v3 = vsel %vm2900_vm3, %v2893_v27, %v2791_v37  ;;  %v2894_v58 = vsel %vm2359_vm1, %v7617_v17, %v2601_v57 }
 0x314   : > { %v2785_v50 = vpop.permute.xlu0 %2784  ;;  %v2795_v63 = vpop.permute.xlu1 %2794 }
 0x315   : > { %v2939_v7 = vsel %vm2900_vm3, %v2890_v38, %v2785_v50  ;;  %v2944_v59 = vsel %vm2900_vm3, %v2895_v8, %v2795_v63 }
 0x316   : > { %5447 = vmatprep.mubr.msk.f32.mxu0 %vm2965_vm4, %v2939_v7 }
 0x317   : > { %5448 = vmatmul.mubr.msk.f32.gmra.mxu0 %vm2965_vm4, %v2940_v45 }
 0x318   : > { %v2605_v20 = vpop.permute.xlu0 %2604  ;;  %v2611_v4 = vpop.permute.xlu1 %2610 }
 0x319   : > { %v2896_v47 = vsel %vm2359_vm1, %v7640_v21, %v2605_v20  ;;  %v2899_v43 = vsel %vm2359_vm1, %v7627_v31, %v2611_v4 }
 0x31c   : > { %v2789_v12 = vpop.permute.xlu0 %2788  ;;  %v2803_v26 = vpop.permute.xlu1 %2802 }
 0x31d   : > { %v2941_v25 = vsel %vm2900_vm3, %v2892_v29, %v2789_v12  ;;  %v2948_v51 = vsel %vm2900_vm3, %v2899_v43, %v2803_v26  ;;  %v7885_v12 = vld [vmem:[%s8470_s8] ss:$0 sm:$0xff] }
 0x31e   : > { %5450 = vmatprep.mubr.msk.f32.mxu0 %vm2965_vm4, %v2941_v25 }
 0x31f   : > { %5451 = vmatmul.mubr.msk.f32.gmra.mxu0 %vm2965_vm4, %v2942_v3 }
 0x320   : > { %v2609_v30 = vpop.permute.xlu0 %2608 }
 0x321   : > { %v2898_v23 = vsel %vm2359_vm1, %v7659_v1, %v2609_v30  ;;  %v7831_v1 = vpop.f32.mrf.mxu0 }
 0x323   : > { %v7833_v14 = vpop.f32.mrf.mxu0 }
 0x324   : > { %v2793_v54 = vpop.permute.xlu0 %2792 }
 0x325   : > { %v2943_v11 = vsel %vm2900_vm3, %v2894_v58, %v2793_v54  ;;  %v7835_v31 = vpop.f32.mrf.mxu0 }
 0x326   : > { %5453 = vmatprep.mubr.msk.f32.mxu0 %vm2965_vm4, %v2943_v11 }
 0x327   : > { %5454 = vmatmul.mubr.msk.f32.gmra.mxu0 %vm2965_vm4, %v2944_v59  ;;  %v7837_v44 = vpop.f32.mrf.mxu0 }
 0x328   : > { %v2797_v17 = vpop.permute.xlu0 %2796 }
 0x329   : > { %v2945_v40 = vsel %vm2900_vm3, %v2896_v47, %v2797_v17 }
 0x32a   : > { %5456 = vmatprep.mubr.msk.f32.mxu0 %vm2965_vm4, %v2945_v40 }
 0x32b   : > { %5457 = vmatmul.mubr.msk.f32.gmra.mxu0 %vm2965_vm4, %v2946_v32 }
 0x32c   : > { %v2801_v34 = vpop.permute.xlu0 %2800 }
 0x32d   : > { %v2947_v21 = vsel %vm2900_vm3, %v2898_v23, %v2801_v34 }
 0x32e   : > { %5459 = vmatprep.mubr.msk.f32.mxu0 %vm2965_vm4, %v2947_v21 }
 0x32f   : > { %5460 = vmatmul.mubr.msk.f32.gmra.mxu0 %vm2965_vm4, %v2948_v51 }
 0x330   : > { %5494 = vmatprep.mubr.msk.f32.mxu0 %vm1732_vm2, %v7876_v46 }
 0x33f   : > { %v7839_v62 = vpop.f32.mrf.mxu0 }
 0x341   : > { %v7841_v15 = vpop.f32.mrf.mxu0 }
 0x34b   : > { %v7843_v28 = vpop.f32.mrf.mxu0 }
 0x34d   : > { %v7845_v33 = vpop.f32.mrf.mxu0 }
 0x357   : > { %v7847_v2 = vpop.f32.mrf.mxu0 }
 0x359   : > { %v7849_v60 = vpop.f32.mrf.mxu0 }
 0x35f   : > { %v7851_v13 = vpop.f32.mrf.mxu0 }
 0x361   : > { %v7853_v61 = vpop.f32.mrf.mxu0 }
 0x367   : > { %v7855_v16 = vpop.f32.mrf.mxu0 }
 0x369   : > { %v7857_v39 = vpop.f32.mrf.mxu0 }
 0x36b   : > { %v5407_v41 = vpop.f32.mrf.mxu0 }
 0x36c   : > { %v3232_v34 = vadd.f32 %v5407_v41, %v7885_v12  ;;  %v3222_v41 = vadd.f32 %v7855_v16, %v7885_v12 }
 0x36d   : > { %v3226_v9 = vpop.f32.mrf.mxu0 }
 0x36f   : > { %v5410_v24 = vpop.f32.mrf.mxu0 }
 0x370   : > { %v3242_v59 = vadd.f32 %v5410_v24, %v7885_v12 }
 0x371   : > { %v3236_v42 = vpop.f32.mrf.mxu0 }
 0x372   : > { %v3428_v40 = vmax.f32 %v3242_v59, 0.0  ;;  %v3237_v32 = vadd.f32 %v7885_v12, %v3236_v42  ;;  %v3426_v42 = vmax.f32 %v3232_v34, 0.0 }
 0x374   : > { %v3427_v43 = vmax.f32 %v3237_v32, 0.0  ;;  %v3197_v32 = vadd.f32 %v7885_v12, %v7849_v60 }
 0x376   : > { %v3419_v34 = vmax.f32 %v3197_v32, 0.0 }
 0x377   : > { %v5413_v55 = vpop.f32.mrf.mxu0 }
 0x378   : > { %v3252_v27 = vadd.f32 %v5413_v55, %v7885_v12  ;;  %v3227_v55 = vadd.f32 %v7885_v12, %v3226_v9  ;;  %v3424_v9 = vmax.f32 %v3222_v41, 0.0 }
 0x379   : > { %v3246_v22 = vpop.f32.mrf.mxu0 }
 0x37a   : > { %v3430_v54 = vmax.f32 %v3252_v27, 0.0  ;;  %v3247_v8 = vadd.f32 %v7885_v12, %v3246_v22 }
 0x37c   : > { %v3429_v36 = vmax.f32 %v3247_v8, 0.0 }
 0x37f   : > { %v7859_v6 = vpop.f32.mrf.mxu0 }
 0x381   : > { %v7861_v18 = vpop.f32.mrf.mxu0 }
 0x387   : > { %v7863_v48 = vpop.f32.mrf.mxu0 }
 0x389   : > { %v7865_v35 = vpop.f32.mrf.mxu0 }
 0x38f   : > { %v7867_v10 = vpop.f32.mrf.mxu0 }
 0x391   : > { %v7869_v57 = vpop.f32.mrf.mxu0 }
 0x397   : > { %v5425_v56 = vpop.f32.mrf.mxu0 }
 0x399   : > { %v7871_v38 = vpop.f32.mrf.mxu0 }
 0x39a   : > { %v3287_v8 = vadd.f32 %v7885_v12, %v7871_v38  ;;  %v3202_v38 = vadd.f32 %v7847_v2, %v7885_v12  ;;  %v3272_v2 = vadd.f32 %v7863_v48, %v7885_v12 }
 0x39c   : > { %v3437_v59 = vmax.f32 %v3287_v8, 0.0 }
 0x39f   : > { %v5428_v50 = vpop.f32.mrf.mxu0 }
 0x3a0   : > { %v3302_v22 = vadd.f32 %v5428_v50, %v7885_v12  ;;  %v3217_v50 = vadd.f32 %v7885_v12, %v7857_v39 }
 0x3a1   : > { %v3296_v7 = vpop.f32.mrf.mxu0 }
 0x3a2   : > { %v3440_v27 = vmax.f32 %v3302_v22, 0.0  ;;  %v3262_v22 = vadd.f32 %v7859_v6, %v7885_v12 }
 0x3a7   : > { %v5431_v45 = vpop.f32.mrf.mxu0 }
 0x3a8   : > { %v3312_v26 = vadd.f32 %v5431_v45, %v7885_v12 }
 0x3a9   : > { %v3306_v20 = vpop.f32.mrf.mxu0 }
 0x3aa   : > { %v3442_v21 = vmax.f32 %v3312_v26, 0.0  ;;  %v3307_v51 = vadd.f32 %v7885_v12, %v3306_v20  ;;  %v3425_v20 = vmax.f32 %v3227_v55, 0.0 }
 0x3ac   : > { %v3441_v45 = vmax.f32 %v3307_v51, 0.0  ;;  %v3267_v51 = vadd.f32 %v7885_v12, %v7865_v35  ;;  %v3182_v35 = vadd.f32 %v7839_v62, %v7885_v12  ;;  %v3177_v62 = vadd.f32 %v7885_v12, %v7841_v15 }
 0x3af   : > { %v5434_v37 = vpop.f32.mrf.mxu0 }
 0x3b0   : > { %v3322_v4 = vadd.f32 %v5434_v37, %v7885_v12 }
 0x3b1   : > { %v3316_v29 = vpop.f32.mrf.mxu0 }
 0x3b2   : > { %v3444_v47 = vmax.f32 %v3322_v4, 0.0  ;;  %v3317_v17 = vadd.f32 %v7885_v12, %v3316_v29  ;;  %v3207_v4 = vadd.f32 %v7885_v12, %v7853_v61  ;;  %v3277_v61 = vadd.f32 %v7885_v12, %v7869_v57 }
 0x3b3   : > { %v3192_v57 = vadd.f32 %v7843_v28, %v7885_v12  ;;  %v3433_v28 = vmax.f32 %v3267_v51, 0.0 }
 0x3b4   : > { %v3443_v23 = vmax.f32 %v3317_v17, 0.0  ;;  %v3435_v26 = vmax.f32 %v3277_v61, 0.0 }
 0x3b5   : > { %v3418_v48 = vmax.f32 %v3192_v57, 0.0 }
 0x3b7   : > { %v5437_v25 = vpop.f32.mrf.mxu0 }
 0x3b8   : > { %v3332_v3 = vadd.f32 %v5437_v25, %v7885_v12  ;;  %v3297_v25 = vadd.f32 %v7885_v12, %v3296_v7  ;;  %v3212_v7 = vadd.f32 %v7851_v13, %v7885_v12  ;;  %v3282_v13 = vadd.f32 %v7867_v10, %v7885_v12 }
 0x3b9   : > { %v3326_v63 = vpop.f32.mrf.mxu0  ;;  %v3420_v10 = vmax.f32 %v3202_v38, 0.0  ;;  %v3465_v38 = vld [vmem:[%s8471_s9 + $0x10] sm:$0xff] }
 0x3ba   : > { %v3446_v30 = vmax.f32 %v3332_v3, 0.0  ;;  %v3327_v58 = vadd.f32 %v7885_v12, %v3326_v63  ;;  %v3292_v63 = vadd.f32 %v5425_v56, %v7885_v12  ;;  %v3422_v56 = vmax.f32 %v3212_v7, 0.0 }
 0x3bb   : > { %v3436_v17 = vmax.f32 %v3282_v13, 0.0 }
 0x3bc   : > { %v3445_v11 = vmax.f32 %v3327_v58, 0.0  ;;  %5122 = vmatprep.subr.msk.mxu1 %vm1732_vm2, %v3446_v30  ;;  %v3439_v30 = vmax.f32 %v3297_v25, 0.0  ;;  %v3423_v58 = vmax.f32 %v3217_v50, 0.0  ;;  %v3257_v25 = vadd.f32 %v7885_v12, %v7861_v18 }
 0x3bd   : > { %5123 = vmatpush3.xpose.msk.msra.mxu1 %vm1732_vm2, %v3430_v54  ;;  %v3438_v54 = vmax.f32 %v3292_v63, 0.0  ;;  %v3416_v63 = vmax.f32 %v3182_v35, 0.0  ;;  %v3415_v18 = vmax.f32 %v3177_v62, 0.0 }
 0x3be   : > { %5124 = vmatprep.subr.msk.mxu1 %vm1732_vm2, %v3445_v11 }
 0x3bf   : > { %v7905_v24 = vpop.f32.mrf.mxu0 }
 0x3c1   : > { %5125 = vmatpush3.xpose.msk.msra.mxu1 %vm1732_vm2, %v3429_v36  ;;  %v7911_v37 = vpop.f32.mrf.mxu0  ;;  %v3421_v36 = vmax.f32 %v3207_v4, 0.0  ;;  %v3800_v4 = vld [vmem:[%s8472_s10 + $0x18] sm:$0xff] }
 0x3c2   : > { %5126 = vmatprep.subr.msk.mxu1 %vm1732_vm2, %v3444_v47 }
 0x3c5   : > { %5127 = vmatpush3.xpose.msk.msra.mxu1 %vm1732_vm2, %v3428_v40 }
 0x3c6   : > { %5128 = vmatprep.subr.msk.mxu1 %vm1732_vm2, %v3443_v23 }
 0x3c7   : > { %v7917_v29 = vpop.f32.mrf.mxu0 }
 0x3c9   : > { %5129 = vmatpush3.xpose.msk.msra.mxu1 %vm1732_vm2, %v3427_v43  ;;  %v7924_v3 = vpop.f32.mrf.mxu0 }
 0x3ca   : > { %5130 = vmatprep.subr.msk.mxu1 %vm1732_vm2, %v3442_v21  ;;  %v3434_v21 = vmax.f32 %v3272_v2, 0.0 }
 0x3cd   : > { %5131 = vmatpush3.xpose.msk.msra.mxu1 %vm1732_vm2, %v3426_v42  ;;  %v3187_v42 = vadd.f32 %v7885_v12, %v7845_v33 }
 0x3ce   : > { %5132 = vmatprep.subr.msk.mxu1 %vm1732_vm2, %v3441_v45 }
 0x3cf   : > { %v7927_v16 = vpop.f32.mrf.mxu0  ;;  %v3417_v41 = vmax.f32 %v3187_v42, 0.0  ;;  %v3337_v42 = vadd.f32 %v7885_v12, %v7911_v37  ;;  %v3802_v37 = vld [vmem:[%s8472_s10 + $0x28] sm:$0xff] }
 0x3d1   : > { %5133 = vmatpush3.xpose.msk.msra.mxu1 %vm1732_vm2, %v3425_v20  ;;  %v7935_v39 = vpop.f32.mrf.mxu0 }
 0x3d2   : > { %5134 = vmatprep.subr.msk.mxu1 %vm1732_vm2, %v3440_v27  ;;  %v3432_v27 = vmax.f32 %v3262_v22, 0.0  ;;  %v8521_v22 = vmov 0.0  }
 0x3d5   : > { %5135 = vmatpush3.xpose.msk.msra.mxu1 %vm1732_vm2, %v3424_v9 }
 0x3d6   : > { %5136 = vmatprep.subr.msk.mxu1 %vm1732_vm2, %v3439_v30  ;;  %v3431_v30 = vmax.f32 %v3257_v25, 0.0 }
 0x3d7   : > { %v7941_v11 = vpop.f32.mrf.mxu0 }
 0x3d9   : > { %5137 = vmatpush3.xpose.msk.msra.mxu1 %vm1732_vm2, %v3423_v58  ;;  %v7949_v47 = vpop.f32.mrf.mxu0 }
 0x3da   : > { %5138 = vmatprep.subr.msk.mxu1 %vm1732_vm2, %v3438_v54  ;;  %v3801_v54 = vld [vmem:[%s8472_s10 + $0x20] sm:$0xff] }
 0x3dd   : > { %5139 = vmatpush3.xpose.msk.msra.mxu1 %vm1732_vm2, %v3422_v56  ;;  %v8003_v56 = vld [vmem:[%s8471_s9 + $0x8] sm:$0xff] }
 0x3de   : > { %5140 = vmatprep.subr.msk.mxu1 %vm1732_vm2, %v3437_v59 }
 0x3df   : > { %v7953_v40 = vpop.f32.mrf.mxu0 }
 0x3e0   : > { %v3382_v61 = vadd.f32 %v7953_v40, %v7885_v12  ;;  %v3372_v40 = vadd.f32 %v7941_v11, %v7885_v12 }
 0x3e1   : > { %5141 = vmatpush3.xpose.msk.msra.mxu1 %vm1732_vm2, %v3421_v36  ;;  %v7961_v23 = vpop.f32.mrf.mxu0 }
 0x3e2   : > { %5142 = vmatprep.subr.msk.mxu1 %vm1732_vm2, %v3436_v17  ;;  %v3456_v32 = vmax.f32 %v3382_v61, 0.0  ;;  %v3377_v2 = vadd.f32 %v7885_v12, %v7961_v23  ;;  %v3454_v57 = vmax.f32 %v3372_v40, 0.0  ;;  %v3362_v23 = vadd.f32 %v7927_v16, %v7885_v12  ;;  %v3973_v61 = vld [vmem:[%s8473_s11] sm:$0xff]  ;;  %v4210_v40 = vld [vmem:[%s8476_s14 + $0xf0] sm:$0xff] }
 0x3e4   : > { %v3452_v11 = vmax.f32 %v3362_v23, 0.0  ;;  %v4208_v23 = vld [vmem:[%s8476_s14 + $0xe0] sm:$0xff] }
 0x3e5   : > { %5143 = vmatpush3.xpose.msk.msra.mxu1 %vm1732_vm2, %v3420_v10 }
 0x3e6   : > { %5144 = vmatprep.subr.msk.mxu1 %vm1732_vm2, %v3435_v26  ;;  %v3455_v26 = vmax.f32 %v3377_v2, 0.0  ;;  %v4195_v2 = vld [vmem:[%s8476_s14 + $0x78] sm:$0xff] }
 0x3e7   : > { %v5455_v43 = vpop.f32.mrf.mxu0 }
 0x3e8   : > { %v3392_v13 = vadd.f32 %v5455_v43, %v7885_v12 }
 0x3e9   : > { %v3386_v60 = vpop.f32.mrf.mxu0  ;;  %5145 = vmatpush3.xpose.msk.msra.mxu1 %vm1732_vm2, %v3419_v34  ;;  %v3367_v34 = vadd.f32 %v7885_v12, %v7949_v47  ;;  %v3352_v47 = vadd.f32 %v7917_v29, %v7885_v12 }
 0x3ea   : > { %5146 = vmatprep.subr.msk.mxu1 %vm1732_vm2, %v3434_v21  ;;  %v3458_v36 = vmax.f32 %v3392_v13, 0.0  ;;  %v3387_v17 = vadd.f32 %v7885_v12, %v3386_v60  ;;  %v3357_v21 = vadd.f32 %v7885_v12, %v7935_v39  ;;  %v3347_v60 = vadd.f32 %v7885_v12, %v7924_v3 }
 0x3eb   : > { %v5458_v55 = vpop.f32.mrf.mxu0  ;;  %v3453_v43 = vmax.f32 %v3367_v34, 0.0  ;;  %v3450_v16 = vmax.f32 %v3352_v47, 0.0  ;;  %v3342_v39 = vadd.f32 %v7905_v24, %v7885_v12  ;;  %v3447_v3 = vmax.f32 %v3337_v42, 0.0  ;;  %v3797_v24 = vld [vmem:[%s8472_s10] sm:$0xff]  ;;  %v4193_v34 = vld [vmem:[%s8476_s14 + $0x68] sm:$0xff]  ;;  %v4206_v47 = vld [vmem:[%s8476_s14 + $0xd0] sm:$0xff] }
 0x3ec   : > { %v3402_v7 = vadd.f32 %v5458_v55, %v7885_v12  ;;  %v3457_v10 = vmax.f32 %v3387_v17, 0.0  ;;  %v3451_v51 = vmax.f32 %v3357_v21, 0.0  ;;  %v3799_v55 = vld [vmem:[%s8472_s10 + $0x10] sm:$0xff]  ;;  %v4191_v21 = vld [vmem:[%s8476_s14 + $0x58] sm:$0xff] }
 0x3ed   : > { %v3396_v45 = vpop.f32.mrf.mxu0  ;;  %5147 = vmatpush3.xpose.msk.msra.mxu1 %vm1732_vm2, %v3418_v48  ;;  %v3449_v48 = vmax.f32 %v3347_v60, 0.0  ;;  %v3448_v29 = vmax.f32 %v3342_v39, 0.0  ;;  %v4189_v60 = vld [vmem:[%s8476_s14 + $0x48] sm:$0xff]  ;;  %v3978_v39 = vpop.permute.xlu0 %3977 }
 0x3ee   : > { %5148 = vmatprep.subr.msk.mxu1 %vm1732_vm2, %v3433_v28  ;;  %v3460_v15 = vmax.f32 %v3402_v7, 0.0  ;;  %v3397_v8 = vadd.f32 %v7885_v12, %v3396_v45 }
 0x3ef   : > { %v5461_v20 = vpop.f32.mrf.mxu0 }
 0x3f0   : > { %v3412_v33 = vadd.f32 %v5461_v20, %v7885_v12  ;;  %v3459_v59 = vmax.f32 %v3397_v8, 0.0 }
 0x3f1   : > { %v3406_v9 = vpop.f32.mrf.mxu0  ;;  %5149 = vmatpush3.xpose.msk.msra.mxu1 %vm1732_vm2, %v3417_v41 }
 0x3f2   : > { %v3462_v6 = vmax.f32 %v3412_v33, 0.0  ;;  %v3407_v50 = vadd.f32 %v7885_v12, %v3406_v9  ;;  %5150 = vmatprep.subr.msk.mxu1 %vm1732_vm2, %v3432_v27  ;;  %v3798_v12 = vld [vmem:[%s8472_s10 + $0x8] sm:$0xff] }
 0x3f4   : > { %v3461_v58 = vmax.f32 %v3407_v50, 0.0  ;;  %5462 = vmatprep.subr.msk.mxu0 %vm1732_vm2, %v3462_v6 }
 0x3f5   : > { %5151 = vmatpush3.xpose.msk.msra.mxu1 %vm1732_vm2, %v3416_v63  ;;  %5463 = vmatpush3.xpose.msk.msra.mxu0 %vm1732_vm2, %v3462_v6 }
 0x3f6   : > { %5152 = vmatprep.subr.msk.mxu1 %vm1732_vm2, %v3431_v30  ;;  %5464 = vmatprep.subr.msk.mxu0 %vm1732_vm2, %v3461_v58 }
 0x3f9   : > { %5153 = vmatpush3.xpose.msk.msra.mxu1 %vm1732_vm2, %v3415_v18  ;;  %5465 = vmatpush3.xpose.msk.msra.mxu0 %vm1732_vm2, %v3461_v58 }
 0x3fa   : > { %5466 = vmatprep.subr.msk.mxu0 %vm1732_vm2, %v3460_v15  ;;  %3831 = vmatprep.subr.mxu1 %v3801_v54 }
 0x3fc   : > { %5155 = vmatmul.mubr.msk.f32.vlgmr.msra.gmra.mxu1 %vm1732_vm2, %v7876_v46  ;;  %v3466_v46 = vld [vmem:[%s8471_s9 + $0x18] sm:$0xff] }
 0x3fd   : > { %5467 = vmatpush3.xpose.msk.msra.mxu0 %vm1732_vm2, %v3460_v15  ;;  %5156 = vmatprep.mubr.msk.f32.mxu1 %vm1732_vm2, %v8003_v56 }
 0x3fe   : > { %5468 = vmatprep.subr.msk.mxu0 %vm1732_vm2, %v3459_v59  ;;  %3832 = vmatpush1.xpose.msra.mxu1 %v3800_v4 }
 0x3ff   : > { %3833 = vmatprep.subr.mxu1 %v3798_v12  ;;  %v4056_v12 = vld [vmem:[%s8475_s13 + $0x8] sm:$0xff] }
 0x400   : > { %5157 = vmatmul.mubr.msk.f32.gmra.mxu1 %vm1732_vm2, %v8003_v56 }
 0x401   : > { %5469 = vmatpush3.xpose.msk.msra.mxu0 %vm1732_vm2, %v3459_v59  ;;  %5158 = vmatprep.mubr.msk.f32.mxu1 %vm1732_vm2, %v3465_v38 }
 0x402   : > { %5470 = vmatprep.subr.msk.mxu0 %vm1732_vm2, %v3458_v36  ;;  %3834 = vmatpush1.xpose.msra.mxu1 %v3797_v24  ;;  %v4227_v24 = vld [vmem:[%s8476_s14 + $0x178] sm:$0xff] }
 0x404   : > { %5159 = vmatmul.mubr.msk.f32.gmra.mxu1 %vm1732_vm2, %v3465_v38 }
 0x405   : > { %5471 = vmatpush3.xpose.msk.msra.mxu0 %vm1732_vm2, %v3458_v36  ;;  %5160 = vmatprep.mubr.msk.f32.mxu1 %vm1732_vm2, %v3466_v46 }
 0x406   : > { %5472 = vmatprep.subr.msk.mxu0 %vm1732_vm2, %v3457_v10 }
 0x408   : > { %5161 = vmatmul.mubr.msk.f32.gmra.mxu1 %vm1732_vm2, %v3466_v46 }
 0x409   : > { %5473 = vmatpush3.xpose.msk.msra.mxu0 %vm1732_vm2, %v3457_v10  ;;  %v4055_v10 = vld [vmem:[%s8475_s13] sm:$0xff] }
 0x40a   : > { %5474 = vmatprep.subr.msk.mxu0 %vm1732_vm2, %v3456_v32 }
 0x40d   : > { %5475 = vmatpush3.xpose.msk.msra.mxu0 %vm1732_vm2, %v3456_v32  ;;  %v4211_v32 = vld [vmem:[%s8476_s14 + $0xf8] sm:$0xff] }
 0x40e   : > { %5476 = vmatprep.subr.msk.mxu0 %vm1732_vm2, %v3455_v26  ;;  %5198 = vmatprep.subr.msk.mxu1 %vm703_vm0, %v4211_v32  ;;  %v4216_v32 = vld [vmem:[%s8476_s14 + $0x120] sm:$0xff] }
 0x411   : > { %5477 = vmatpush3.xpose.msk.msra.mxu0 %vm1732_vm2, %v3455_v26  ;;  %v4194_v26 = vld [vmem:[%s8476_s14 + $0x70] sm:$0xff] }
 0x412   : > { %5478 = vmatprep.subr.msk.mxu0 %vm1732_vm2, %v3454_v57 }
 0x415   : > { %5479 = vmatpush3.xpose.msk.msra.mxu0 %vm1732_vm2, %v3454_v57  ;;  %v4209_v57 = vld [vmem:[%s8476_s14 + $0xe8] sm:$0xff] }
 0x416   : > { %5480 = vmatprep.subr.msk.mxu0 %vm1732_vm2, %v3453_v43 }
 0x419   : > { %5481 = vmatpush3.xpose.msk.msra.mxu0 %vm1732_vm2, %v3453_v43  ;;  %v4192_v43 = vld [vmem:[%s8476_s14 + $0x60] sm:$0xff] }
 0x41a   : > { %5482 = vmatprep.subr.msk.mxu0 %vm1732_vm2, %v3452_v11 }
 0x41d   : > { %5483 = vmatpush3.xpose.msk.msra.mxu0 %vm1732_vm2, %v3452_v11  ;;  %v4207_v11 = vld [vmem:[%s8476_s14 + $0xd8] sm:$0xff] }
 0x41e   : > { %5484 = vmatprep.subr.msk.mxu0 %vm1732_vm2, %v3451_v51 }
 0x421   : > { %5485 = vmatpush3.xpose.msk.msra.mxu0 %vm1732_vm2, %v3451_v51  ;;  %v4190_v51 = vld [vmem:[%s8476_s14 + $0x50] sm:$0xff] }
 0x422   : > { %5486 = vmatprep.subr.msk.mxu0 %vm1732_vm2, %v3450_v16 }
 0x425   : > { %5487 = vmatpush3.xpose.msk.msra.mxu0 %vm1732_vm2, %v3450_v16  ;;  %v4205_v16 = vld [vmem:[%s8476_s14 + $0xc8] sm:$0xff] }
 0x426   : > { %5488 = vmatprep.subr.msk.mxu0 %vm1732_vm2, %v3449_v48 }
 0x429   : > { %5489 = vmatpush3.xpose.msk.msra.mxu0 %vm1732_vm2, %v3449_v48 }
 0x42a   : > { %5490 = vmatprep.subr.msk.mxu0 %vm1732_vm2, %v3448_v29 }
 0x42d   : > { %5491 = vmatpush3.xpose.msk.msra.mxu0 %vm1732_vm2, %v3448_v29 }
 0x42e   : > { %5492 = vmatprep.subr.msk.mxu0 %vm1732_vm2, %v3447_v3 }
 0x431   : > { %5493 = vmatpush3.xpose.msk.msra.mxu0 %vm1732_vm2, %v3447_v3 }
 0x432   : > { %5500 = vmatprep.subr.mxu0 %v3802_v37 }
 0x434   : > { %5495 = vmatmul.mubr.msk.f32.vlgmr.msra.gmra.mxu0 %vm1732_vm2, %v8003_v56 }
 0x435   : > { %5497 = vmatprep.mubr.msk.f32.mxu0 %vm1732_vm2, %v3465_v38  ;;  %5501 = vmatpush3.xpose.msra.mxu0 %v3802_v37  ;;  %v4057_v37 = vld [vmem:[%s8475_s13 + $0x10] sm:$0xff] }
 0x436   : > { %5502 = vmatprep.subr.mxu0 %v3799_v55 }
 0x438   : > { %5498 = vmatmul.mubr.msk.f32.gmra.mxu0 %vm1732_vm2, %v3466_v46 }
 0x439   : > { %5503 = vmatpush3.xpose.msra.mxu0 %v3799_v55  ;;  %v4226_v55 = vld [vmem:[%s8476_s14 + $0x170] sm:$0xff] }
 0x43a   : > { %5510 = vmatprep.subr.mxu0 %v8521_v22 }
 0x4bc   : > { %v8090_v28 = vpop.f32.mrf.mxu1 }
 0x4be   : > { %v8092_v45 = vpop.f32.mrf.mxu1 }
 0x4bf   : > { %3867 = vmatprep.mubr.f32.mxu1 %v8092_v45 }
 0x4c0   : > { %v8095_v35 = vpop.f32.mrf.mxu1  ;;  %3868 = vmatmul.mubr.f32.vlgmr.msra.gmra.mxu1 %v8090_v28 }
 0x4c1   : > { %5199 = vmatpush3.xpose.msk.msra.mxu1 %vm703_vm0, %v4195_v2  ;;  %v4184_v2 = vld [vmem:[%s8476_s14 + $0x20] sm:$0xff] }
 0x4c2   : > { %v8098_v41 = vpop.f32.mrf.mxu1  ;;  %5200 = vmatprep.subr.msk.mxu1 %vm703_vm0, %v4210_v40  ;;  %v4199_v40 = vld [vmem:[%s8476_s14 + $0x98] sm:$0xff] }
 0x4c3   : > { %3872 = vmatprep.mubr.f32.mxu1 %v8098_v41 }
 0x4c4   : > { %v8101_v20 = vpop.f32.mrf.mxu1  ;;  %3873 = vmatmul.mubr.f32.gmra.mxu1 %v8095_v35 }
 0x4c5   : > { %5201 = vmatpush3.xpose.msk.msra.mxu1 %vm703_vm0, %v4194_v26  ;;  %v4215_v26 = vld [vmem:[%s8476_s14 + $0x118] sm:$0xff] }
 0x4c6   : > { %v8104_v27 = vpop.f32.mrf.mxu1  ;;  %5202 = vmatprep.subr.msk.mxu1 %vm703_vm0, %v4209_v57  ;;  %v4183_v57 = vld [vmem:[%s8476_s14 + $0x18] sm:$0xff] }
 0x4c7   : > { %3877 = vmatprep.mubr.f32.mxu1 %v8104_v27 }
 0x4c8   : > { %v8107_v25 = vpop.f32.mrf.mxu1  ;;  %3878 = vmatmul.mubr.f32.gmra.mxu1 %v8101_v20 }
 0x4c9   : > { %5203 = vmatpush3.xpose.msk.msra.mxu1 %vm703_vm0, %v4193_v34  ;;  %v4198_v34 = vld [vmem:[%s8476_s14 + $0x90] sm:$0xff] }
 0x4ca   : > { %v8110_v33 = vpop.f32.mrf.mxu1  ;;  %5204 = vmatprep.subr.msk.mxu1 %vm703_vm0, %v4208_v23  ;;  %v4214_v23 = vld [vmem:[%s8476_s14 + $0x110] sm:$0xff] }
 0x4cb   : > { %3882 = vmatprep.mubr.f32.mxu1 %v8110_v33 }
 0x4cc   : > { %3883 = vmatmul.mubr.f32.gmra.mxu1 %v8107_v25 }
 0x4cd   : > { %5205 = vmatpush3.xpose.msk.msra.mxu1 %vm703_vm0, %v4192_v43  ;;  %v4182_v43 = vld [vmem:[%s8476_s14 + $0x10] sm:$0xff] }
 0x4ce   : > { %5206 = vmatprep.subr.msk.mxu1 %vm703_vm0, %v4207_v11  ;;  %v4197_v11 = vld [vmem:[%s8476_s14 + $0x88] sm:$0xff] }
 0x4d1   : > { %5207 = vmatpush3.xpose.msk.msra.mxu1 %vm703_vm0, %v4191_v21  ;;  %v4213_v21 = vld [vmem:[%s8476_s14 + $0x108] sm:$0xff] }
 0x4d2   : > { %5208 = vmatprep.subr.msk.mxu1 %vm703_vm0, %v4206_v47  ;;  %v4181_v47 = vld [vmem:[%s8476_s14 + $0x8] sm:$0xff] }
 0x4d5   : > { %5209 = vmatpush3.xpose.msk.msra.mxu1 %vm703_vm0, %v4190_v51  ;;  %v4196_v51 = vld [vmem:[%s8476_s14 + $0x80] sm:$0xff] }
 0x4d6   : > { %5210 = vmatprep.subr.msk.mxu1 %vm703_vm0, %v4205_v16  ;;  %v4212_v16 = vld [vmem:[%s8476_s14 + $0x100] sm:$0xff] }
 0x4d9   : > { %5211 = vmatpush3.xpose.msk.msra.mxu1 %vm703_vm0, %v4189_v60  ;;  %v4180_v60 = vld [vmem:[%s8476_s14] sm:$0xff] }
 0x4f4   : > { %v8114_v9 = vpop.f32.mrf.mxu0 }
 0x4f6   : > { %v8116_v6 = vpop.f32.mrf.mxu0 }
 0x4f7   : > { %5504 = vmatprep.mubr.f32.mxu0 %v8116_v6 }
 0x4f8   : > { %v8119_v50 = vpop.f32.mrf.mxu0  ;;  %5505 = vmatmul.mubr.f32.vlgmr.msra.gmra.mxu0 %v8114_v9 }
 0x4fa   : > { %v8122_v63 = vpop.f32.mrf.mxu0 }
 0x4fb   : > { %5507 = vmatprep.mubr.f32.mxu0 %v8122_v63 }
 0x4fc   : > { %5508 = vmatmul.mubr.f32.gmra.mxu0 %v8119_v50 }
 0x4fd   : > { %5518 = vmatprep.mubr.msk.f32.mxu0 %vm5703_vm5, %v8521_v22 }
 0x580   : > { %v3869_v62 = vpop.f32.mrf.mxu1 }
 0x582   : > { %v3871_v30 = vpop.f32.mrf.mxu1 }
 0x583   : > { %v4224_v30 = vld [vmem:[%s8476_s14 + $0x160] sm:$0xff] }
 0x584   : > { %v3874_v7 = vpop.f32.mrf.mxu1 }
 0x586   : > { %v3876_v58 = vpop.f32.mrf.mxu1 }
 0x587   : > { %v4222_v58 = vld [vmem:[%s8476_s14 + $0x150] sm:$0xff] }
 0x588   : > { %v3879_v18 = vpop.f32.mrf.mxu1 }
 0x58a   : > { %v3881_v54 = vpop.f32.mrf.mxu1 }
 0x58b   : > { %v4204_v54 = vld [vmem:[%s8476_s14 + $0xc0] sm:$0xff] }
 0x58c   : > { %v3884_v15 = vpop.f32.mrf.mxu1  ;;  %5212 = vmatprep.subr.msk.mxu1 %vm703_vm0, %v4204_v54 }
 0x58e   : > { %v3886_v8 = vpop.f32.mrf.mxu1 }
 0x58f   : > { %v4188_v8 = vld [vmem:[%s8476_s14 + $0x40] sm:$0xff] }
 0x590   : > { %5213 = vmatpush3.xpose.msk.msra.mxu1 %vm703_vm0, %v4188_v8 }
 0x5b8   : > { %v5506_v56 = vpop.f32.mrf.mxu0 }
 0x5b9   : > { %v3960_v17 = vadd.f32 %v5506_v56, %v3874_v7  ;;  %v4223_v7 = vld [vmem:[%s8476_s14 + $0x158] sm:$0xff] }
 0x5ba   : > { %v3954_v4 = vpop.f32.mrf.mxu0  ;;  %v4203_v56 = vld [vmem:[%s8476_s14 + $0xb8] sm:$0xff] }
 0x5bb   : > { %v3955_v46 = vadd.f32 %v3954_v4, %v3869_v62  ;;  %v4225_v62 = vld [vmem:[%s8476_s14 + $0x168] sm:$0xff]  ;;  %v4219_v4 = vld [vmem:[%s8476_s14 + $0x138] sm:$0xff]  ;;  %5214 = vmatprep.subr.msk.mxu1 %vm703_vm0, %v4203_v56 }
 0x5bc   : > { %v5509_v13 = vpop.f32.mrf.mxu0 }
 0x5bd   : > { %v3970_v59 = vadd.f32 %v5509_v13, %v3884_v15  ;;  %v4220_v15 = vld [vmem:[%s8476_s14 + $0x140] sm:$0xff]  ;;  %v4187_v13 = vld [vmem:[%s8476_s14 + $0x38] sm:$0xff] }
 0x5be   : > { %v3964_v38 = vpop.f32.mrf.mxu0  ;;  %5215 = vmatpush3.xpose.msk.msra.mxu1 %vm703_vm0, %v4187_v13 }
 0x5bf   : > { %v3965_v36 = vadd.f32 %v3964_v38, %v3879_v18  ;;  %5511 = vmatpush3.msra.mxu0 %v3970_v59  ;;  %v4221_v18 = vld [vmem:[%s8476_s14 + $0x148] sm:$0xff]  ;;  %v4202_v59 = vld [vmem:[%s8476_s14 + $0xb0] sm:$0xff] }
 0x5c0   : > { %5512 = vmatprep.subr.mxu0 %v8521_v22  ;;  %v4218_v38 = vld [vmem:[%s8476_s14 + $0x130] sm:$0xff]  ;;  %5216 = vmatprep.subr.msk.mxu1 %vm703_vm0, %v4202_v59 }
 0x5c1   : > { %5513 = vmatpush3.msra.mxu0 %v3965_v36  ;;  %v4186_v36 = vld [vmem:[%s8476_s14 + $0x30] sm:$0xff] }
 0x5c2   : > { %5514 = vmatprep.subr.mxu0 %v8521_v22  ;;  %5217 = vmatpush3.xpose.msk.msra.mxu1 %vm703_vm0, %v4186_v36 }
 0x5c3   : > { %5515 = vmatpush3.msra.mxu0 %v3960_v17  ;;  %v4201_v17 = vld [vmem:[%s8476_s14 + $0xa8] sm:$0xff] }
 0x5c4   : > { %5516 = vmatprep.subr.mxu0 %v8521_v22  ;;  %v4058_v22 = vld [vmem:[%s8475_s13 + $0x18] sm:$0xff]  ;;  %5218 = vmatprep.subr.msk.mxu1 %vm703_vm0, %v4201_v17 }
 0x5c5   : > { %5517 = vmatpush3.msra.mxu0 %v3955_v46  ;;  %v4217_v46 = vld [vmem:[%s8476_s14 + $0x128] sm:$0xff] }
 0x5c6   : > { %5519 = vmatmul.mubr.msk.f32.vlgmr.msra.gmra.mxu0 %vm3980_vm6, %v3973_v61  ;;  %v4185_v61 = vld [vmem:[%s8476_s14 + $0x28] sm:$0xff] }
 0x5c7   : > { %5523 = vmatprep.mubr.msk.f32.mxu0 %vm1732_vm2, %v4055_v10  ;;  %5219 = vmatpush3.xpose.msk.msra.mxu1 %vm703_vm0, %v4185_v61  ;;  %v4200_v10 = vld [vmem:[%s8476_s14 + $0xa0] sm:$0xff] }
 0x5c8   : > { %5220 = vmatprep.subr.msk.mxu1 %vm703_vm0, %v4200_v10 }
 0x5cb   : > { %5221 = vmatpush3.xpose.msk.msra.mxu1 %vm703_vm0, %v4184_v2 }
 0x5cc   : > { %5222 = vmatprep.subr.msk.mxu1 %vm703_vm0, %v4199_v40 }
 0x5cf   : > { %5223 = vmatpush3.xpose.msk.msra.mxu1 %vm703_vm0, %v4183_v57 }
 0x5d0   : > { %5224 = vmatprep.subr.msk.mxu1 %vm703_vm0, %v4198_v34  ;;  %v8522_v34 = vld [vmem:[#allocation11_spill] sm:$0xff] }
 0x5d3   : > { %5225 = vmatpush3.xpose.msk.msra.mxu1 %vm703_vm0, %v4182_v43 }
 0x5d4   : > { %5226 = vmatprep.subr.msk.mxu1 %vm703_vm0, %v4197_v11 }
 0x5d7   : > { %5227 = vmatpush3.xpose.msk.msra.mxu1 %vm703_vm0, %v4181_v47 }
 0x5d8   : > { %5228 = vmatprep.subr.msk.mxu1 %vm703_vm0, %v4196_v51 }
 0x5db   : > { %5229 = vmatpush3.xpose.msk.msra.mxu1 %vm703_vm0, %v4180_v60 }
 0x686   : > { %v4050_v48 = vpop.f32.mrf.mxu0 }
 0x687   : > { %v4051_v29 = vadd.f32 %v4050_v48, %v3978_v39 }
 0x688   : > { %v5520_v42 = vpop.f32.mrf.mxu0 }
 0x689   : > { %v4054_v3 = vmax.f32 %v4051_v29, 0.0 }
 0x68b   : > { %5521 = vmatprep.subr.mxu0 %v4054_v3 }
 0x68c   : > { %5522 = vmatpush3.msra.mxu0 %v4054_v3 }
 0x68d   : > { %5524 = vmatmul.mubr.msk.f32.vlgmr.msra.gmra.mxu0 %vm1732_vm2, %v4056_v12  ;;  %5529 = vmatprep.subr.msk.mxu0 %vm703_vm0, %v4227_v24 }
 0x68e   : > { %5526 = vmatprep.mubr.msk.f32.mxu0 %vm1732_vm2, %v4057_v37  ;;  %5530 = vmatpush3.xpose.msk.msra.mxu0 %vm703_vm0, %v4227_v24 }
 0x68f   : > { %5531 = vmatprep.subr.msk.mxu0 %vm703_vm0, %v4226_v55 }
 0x691   : > { %5527 = vmatmul.mubr.msk.f32.gmra.mxu0 %vm1732_vm2, %v4058_v22 }
 0x692   : > { %5532 = vmatpush3.xpose.msk.msra.mxu0 %vm703_vm0, %v4226_v55 }
 0x693   : > { %5533 = vmatprep.subr.msk.mxu0 %vm703_vm0, %v4225_v62 }
 0x696   : > { %5534 = vmatpush3.xpose.msk.msra.mxu0 %vm703_vm0, %v4225_v62 }
 0x697   : > { %5535 = vmatprep.subr.msk.mxu0 %vm703_vm0, %v4224_v30 }
 0x69a   : > { %5536 = vmatpush3.xpose.msk.msra.mxu0 %vm703_vm0, %v4224_v30 }
 0x69b   : > { %5537 = vmatprep.subr.msk.mxu0 %vm703_vm0, %v4223_v7 }
 0x69e   : > { %5538 = vmatpush3.xpose.msk.msra.mxu0 %vm703_vm0, %v4223_v7 }
 0x69f   : > { %5539 = vmatprep.subr.msk.mxu0 %vm703_vm0, %v4222_v58 }
 0x6a2   : > { %5540 = vmatpush3.xpose.msk.msra.mxu0 %vm703_vm0, %v4222_v58 }
 0x6a3   : > { %5541 = vmatprep.subr.msk.mxu0 %vm703_vm0, %v4221_v18 }
 0x6a6   : > { %5542 = vmatpush3.xpose.msk.msra.mxu0 %vm703_vm0, %v4221_v18 }
 0x6a7   : > { %5543 = vmatprep.subr.msk.mxu0 %vm703_vm0, %v4220_v15 }
 0x6aa   : > { %5544 = vmatpush3.xpose.msk.msra.mxu0 %vm703_vm0, %v4220_v15 }
 0x6ab   : > { %5545 = vmatprep.subr.msk.mxu0 %vm703_vm0, %v4219_v4 }
 0x6ae   : > { %5546 = vmatpush3.xpose.msk.msra.mxu0 %vm703_vm0, %v4219_v4 }
 0x6af   : > { %5547 = vmatprep.subr.msk.mxu0 %vm703_vm0, %v4218_v38 }
 0x6b2   : > { %5548 = vmatpush3.xpose.msk.msra.mxu0 %vm703_vm0, %v4218_v38 }
 0x6b3   : > { %5549 = vmatprep.subr.msk.mxu0 %vm703_vm0, %v4217_v46 }
 0x6b6   : > { %5550 = vmatpush3.xpose.msk.msra.mxu0 %vm703_vm0, %v4217_v46 }
 0x6b7   : > { %5551 = vmatprep.subr.msk.mxu0 %vm703_vm0, %v4216_v32 }
 0x6ba   : > { %5552 = vmatpush3.xpose.msk.msra.mxu0 %vm703_vm0, %v4216_v32 }
 0x6bb   : > { %5553 = vmatprep.subr.msk.mxu0 %vm703_vm0, %v4215_v26 }
 0x6be   : > { %5554 = vmatpush3.xpose.msk.msra.mxu0 %vm703_vm0, %v4215_v26 }
 0x6bf   : > { %5555 = vmatprep.subr.msk.mxu0 %vm703_vm0, %v4214_v23 }
 0x6c2   : > { %5556 = vmatpush3.xpose.msk.msra.mxu0 %vm703_vm0, %v4214_v23 }
 0x6c3   : > { %5557 = vmatprep.subr.msk.mxu0 %vm703_vm0, %v4213_v21 }
 0x6c6   : > { %5558 = vmatpush3.xpose.msk.msra.mxu0 %vm703_vm0, %v4213_v21 }
 0x6c7   : > { %5559 = vmatprep.subr.msk.mxu0 %vm703_vm0, %v4212_v16 }
 0x6ca   : > { %5560 = vmatpush3.xpose.msk.msra.mxu0 %vm703_vm0, %v4212_v16 }
 0x74d   : > { %v5525_v39 = vpop.f32.mrf.mxu0 }
 0x74e   : > { %v4893_v48 = vmul.f32 -1.442695, %v5525_v39 }
 0x74f   : > { %v4137_v29 = vpop.f32.mrf.mxu0 }
 0x750   : > { %5619 = vpow2.f32 %v4893_v48  ;;  %v4892_v42 = vmul.f32 -1.442695, %v4137_v29 }
 0x751   : > { %v5528_v3 = vpop.f32.mrf.mxu0 }
 0x752   : > { %5621 = vpow2.f32 %v4892_v42  ;;  %v4895_v12 = vmul.f32 -1.442695, %v5528_v3 }
 0x753   : > { %v4147_v24 = vpop.f32.mrf.mxu0 }
 0x754   : > { %5623 = vpow2.f32 %v4895_v12  ;;  %v4894_v37 = vmul.f32 -1.442695, %v4147_v24 }
 0x756   : > { %5625 = vpow2.f32 %v4894_v37 }
 0x75d   : > { %v5620_v55 = vpop.eup %5619 }
 0x75e   : > { %v4169_v62 = vadd.f32 1.0, %v5620_v55 }
 0x75f   : > { %v5622_v22 = vpop.eup %5621 }
 0x760   : > { %v4168_v30 = vadd.f32 1.0, %v5622_v22 }
 0x761   : > { %v5624_v7 = vpop.eup %5623 }
 0x762   : > { %5627 = vrcp.f32 %v4168_v30  ;;  %v4171_v58 = vadd.f32 1.0, %v5624_v7 }
 0x763   : > { %v5626_v18 = vpop.eup %5625  ;;  %5629 = vrcp.f32 %v4169_v62 }
 0x764   : > { %v4170_v54 = vadd.f32 1.0, %v5626_v18  ;;  %5631 = vrcp.f32 %v4171_v58 }
 0x766   : > { %5633 = vrcp.f32 %v4170_v54 }
 0x76f   : > { %v5628_v15 = vpop.eup %5627 }
 0x770   : > { %v5630_v8 = vpop.eup %5629  ;;  %5230 = vmatprep.mubr.msk.f32.mxu1 %vm703_vm0, %v5628_v15  ;;  %5561 = vmatprep.mubr.msk.f32.mxu0 %vm703_vm0, %v5628_v15 }
 0x771   : > { %5231 = vmatmul.mubr.msk.f32.vlgmr.msra.gmra.mxu1 %vm703_vm0, %v5628_v15  ;;  %5562 = vmatmul.mubr.msk.f32.vlgmr.msra.gmra.mxu0 %vm703_vm0, %v5630_v8  ;;  %v5632_v56 = vpop.eup %5631 }
 0x772   : > { %5232 = vmatprep.mubr.msk.f32.mxu1 %vm703_vm0, %v5630_v8 }
 0x773   : > { %v5634_v4 = vpop.eup %5633 }
 0x774   : > { %5564 = vmatprep.mubr.msk.f32.mxu0 %vm703_vm0, %v5634_v4 }
 0x775   : > { %5233 = vmatmul.mubr.msk.f32.gmra.mxu1 %vm703_vm0, %v5630_v8  ;;  %5565 = vmatmul.mubr.msk.f32.gmra.mxu0 %vm703_vm0, %v5632_v56 }
 0x776   : > { %5234 = vmatprep.mubr.msk.f32.mxu1 %vm703_vm0, %v5634_v4 }
 0x779   : > { %5235 = vmatmul.mubr.msk.f32.gmra.mxu1 %vm703_vm0, %v5634_v4 }
 0x77a   : > { %5236 = vmatprep.mubr.msk.f32.mxu1 %vm703_vm0, %v5632_v56 }
 0x77d   : > { %5237 = vmatmul.mubr.msk.f32.gmra.mxu1 %vm703_vm0, %v5632_v56 }
 0x831   : > { %v4450_v13 = vpop.f32.mrf.mxu1  ;;  %v5563_v59 = vpop.f32.mrf.mxu0 }
 0x832   : > { %v4558_v38 = vmul.f32 %v4450_v13, %v8090_v28  ;;  %v4563_v36 = vmul.f32 %v5563_v59, %v8114_v9 }
 0x833   : > { %v4452_v17 = vpop.f32.mrf.mxu1  ;;  %v4539_v46 = vpop.f32.mrf.mxu0 }
 0x834   : > { %v4570_v61 = vadd.f32 %v4558_v38, %v7823_v52  ;;  %v4575_v10 = vadd.f32 %v6580_v19, %v4563_v36  ;;  %v4559_v32 = vmul.f32 %v4452_v17, %v8092_v45  ;;  %v4560_v2 = vmul.f32 %v4539_v46, %v8116_v6 }
 0x835   : > { %v4456_v40 = vpop.f32.mrf.mxu1  ;;  %v5566_v26 = vpop.f32.mrf.mxu0 }
 0x836   : > { %4582 = vst [vmem:[%s8378_s25] sm:$0xff] %v4570_v61  ;;  %4587 = vst [vmem:[%s8378_s25 + $0x28] sm:$0xff] %v4575_v10  ;;  %v4571_v52 = vadd.f32 %v4559_v32, %v7825_v53  ;;  %v4572_v19 = vadd.f32 %v4560_v2, %v6584_v49  ;;  %v4561_v28 = vmul.f32 %v4456_v40, %v8095_v35 }
 0x837   : > { %v4569_v45 = vmul.f32 %v5566_v26, %v8119_v50  ;;  %v4458_v9 = vpop.f32.mrf.mxu1  ;;  %v4549_v6 = vpop.f32.mrf.mxu0  ;;  %v8523_v50 = vld [vmem:[#allocation12_spill] sm:$0xff] }
 0x838   : > { %4583 = vst [vmem:[%s8378_s25 + $0x8] sm:$0xff] %v4571_v52  ;;  %4584 = vst [vmem:[%s8378_s25 + $0x10] sm:$0xff] %v4572_v19  ;;  %v4573_v57 = vadd.f32 %v4561_v28, %v7827_v5  ;;  %v4562_v43 = vmul.f32 %v4458_v9, %v8098_v41  ;;  %v4566_v53 = vmul.f32 %v4549_v6, %v8122_v63 }
 0x839   : > { %v4581_v23 = vadd.f32 %v8522_v34, %v4569_v45  ;;  %v4462_v49 = vpop.f32.mrf.mxu1 }
 0x83a   : > { %4585 = vst [vmem:[%s8378_s25 + $0x18] sm:$0xff] %v4573_v57  ;;  %v4574_v35 = vadd.f32 %v4562_v43, %v7829_v0  ;;  %v4578_v11 = vadd.f32 %v4566_v53, %v8523_v50  ;;  %v4564_v21 = vmul.f32 %v4462_v49, %v8101_v20 }
 0x83b   : > { %4593 = vst [vmem:[%s8378_s25 + $0x58] sm:$0xff] %v4581_v23  ;;  %v4464_v5 = vpop.f32.mrf.mxu1 }
 0x83c   : > { %4586 = vst [vmem:[%s8378_s25 + $0x20] sm:$0xff] %v4574_v35  ;;  %4590 = vst [vmem:[%s8378_s25 + $0x40] sm:$0xff] %v4578_v11  ;;  %v4576_v41 = vadd.f32 %v4564_v21, %v7831_v1  ;;  %v4565_v63 = vmul.f32 %v4464_v5, %v8104_v27 }
 0x83d   : > { %v4468_v47 = vpop.f32.mrf.mxu1 }
 0x83e   : > { %4588 = vst [vmem:[%s8378_s25 + $0x30] sm:$0xff] %v4576_v41  ;;  %v4577_v51 = vadd.f32 %v4565_v63, %v7833_v14  ;;  %v4567_v0 = vmul.f32 %v4468_v47, %v8107_v25 }
 0x83f   : > { %v4470_v16 = vpop.f32.mrf.mxu1 }
 0x840   : > { %4589 = vst [vmem:[%s8378_s25 + $0x38] sm:$0xff] %v4577_v51  ;;  %v4579_v20 = vadd.f32 %v4567_v0, %v7835_v31  ;;  %v4568_v60 = vmul.f32 %v4470_v16, %v8110_v33 }
 0x842   : > { %4591 = vst [vmem:[%s8378_s25 + $0x48] sm:$0xff] %v4579_v20  ;;  %v4580_v1 = vadd.f32 %v4568_v60, %v7837_v44 }
 0x844   : > { %4592 = vst [vmem:[%s8378_s25 + $0x50] sm:$0xff] %v4580_v1 }
 0x845   : > { %5648 = shalt.err (!%p5645_p3)
}
 0x846   : > { %s5649_s24 = scalar_lea.hbm %s8414_s26, 1536  ;;  %s5653_s17 = scalar_lea.hbm %s8477_s15, 3072 }
 0x847   : > { %p5650_p4 = scmp.ne.s32.totalorder %s8414_s26, %s5649_s24  ;;  %p5654_p9 = scmp.lt.s32.totalorder %s8414_s26, %s8477_s15 }
 0x848   : > { %p5655_p10 = scmp.lt.s32.totalorder %s5653_s17, %s5649_s24 }
 0x849   : > { %p5651_p7 = pnand %p5650_p4, %p5824_p5 }
 0x84a   : > { %p5656_p11 = por %p5655_p10, %p5654_p9 }
 0x84b   : > { %p5652_p8 = pneg %p5651_p7 }
 0x84d   : > { %p5657_p12 = pnand %p5656_p11, %p5652_p8 }
 0x84f   : > { %5660 = shalt.err (!%p5657_p12)
}
 0x850   : > { %s5705_s30 = smov 384   ;;  %s8524_s27 = smov 24  }
 0x851   : > { %5570 = dma.vmem_to_hbm [thread:$0]  (%p5824_p5), %s8416_s29, 1536, %s8414_s26, %s8421_s22, %s5705_s30, %s5705_s30, %s8524_s27  }
 0x852 PF: > { %p5576_p13 = scmp.ge.s32.totalorder %s5695_s21, 2  ;;  %s4623_s25 = sand.u32 1, %s5683_s18  }
 0x853   : > { %s4624_s0 = scalar_lea.sflag [#allocation5], %s4623_s25 }
 0x854   : > { %p5573_p0 = pnand %p5576_p13, %p5828_p6 }
 0x856   : > { %p5574_p1 = pneg %p5573_p0 }
 0x858   : > { %5678 = dma.done.wait (%p5574_p1), %s4624_s0, 1536  }
 0x859   : > { %5680 = vsyncadd (%p5574_p1), %s4624_s0, 4294965760  ;;  %s8526_s21 = sld [smem:[#allocation8_spill]]  ;;  %s8529_s18 = smov %s5687_s19 }
 0x85a   : > { %s8527_s28 = sld [smem:[#allocation7_spill]] }
 0x85b   : > { %s8528_s20 = sld [smem:[#allocation9_spill]] }
 0x85f   : > { %p25_p2 = scmp.ge.s32.totalorder %s8526_s21, 4  }
 0x860   : > { %s8530_s19 = smov %s8527_s28 }
 0x861   :  { %27 = sbr.rel (!%p25_p2) target bundleno = 5 (0x5), region = 115 }
 0x866   :  { %4629 = vsyncpa [#allocation5], 1 }
 0x867   :  { %4631 = vsyncpa [#allocation5 + $0x1], 1 }

</bundles_post_ra>
